<compile_context>
chip_gen: v5e
topology: v5e:2x2
jax: 0.10.0
libtpu: 0.0.40
codegen_flags: <defaults>
</compile_context>

<pallas_src>
import math
import jax
import jax.numpy as jnp
from jax import lax
from jax.experimental import pallas as pl
from jax.experimental.pallas import tpu as pltpu

EPS = 1e-10


def _round_up(n, m):
    return ((n + m - 1) // m) * m


def _make_nalu_stack_kernel(num_layers):
    """Kernel over one batch tile; loops over all layers with VMEM-resident weights."""

    def kernel(x_ref, *refs):
        # refs = (W_0, G_0, W_1, G_1, ..., W_{L-1}, G_{L-1}, o_ref)
        o_ref = refs[2 * num_layers]
        h = x_ref[...]                                      # [TB, d_in_0] f32
        for l in range(num_layers):
            w = refs[2 * l][...]                            # [d_in_l, d_out_l(_padded)]
            gw = refs[2 * l + 1][...]
            a = jnp.dot(h, w, preferred_element_type=jnp.float32,
                        precision=lax.Precision.HIGHEST)
            g = jax.nn.sigmoid(
                jnp.dot(h, gw, preferred_element_type=jnp.float32,
                        precision=lax.Precision.HIGHEST))
            m = jnp.exp(
                jnp.dot(jnp.log(jnp.abs(h) + EPS), w,
                        preferred_element_type=jnp.float32,
                        precision=lax.Precision.HIGHEST))
            h = m + g * (a - m)                             # == g*a + (1-g)*m
        o_ref[...] = h

    return kernel


def nalu_forward(x, params, *, block_b=512):
    """Full NALU stack, fused into a single batch-tiled pallas_call.

    x: [B, in_dim] float32
    params[l] = {"W_hat", "M_hat", "G"}, each [out_dim_l, in_dim_l] (PyTorch layout).
    """
    B, in_dim = x.shape
    num_layers = len(params)
    assert num_layers >= 1

    # ---- hoisted weight preprocessing (once per call, not per tile) ----------
    # W = tanh(W_hat) * sigmoid(M_hat); stored transposed [d_in, d_out] so the
    # kernel does plain row-major matmuls. The LAST layer's W/G columns are
    # zero-padded up to a multiple of 128 so the output store is lane-dense;
    # padded output columns evaluate to 0.5 and are sliced off below.
    weights = []
    out_dim = out_p = None
    for l, p in enumerate(params):
        d_out, _ = p["W_hat"].shape
        W_t = (jnp.tanh(p["W_hat"]) * jax.nn.sigmoid(p["M_hat"])).T.astype(jnp.float32)
        G_t = p["G"].T.astype(jnp.float32)
        if l == num_layers - 1:
            out_dim = d_out
            out_p = _round_up(d_out, 128)
            if out_p != d_out:
                W_t = jnp.pad(W_t, ((0, 0), (0, out_p - d_out)))
                G_t = jnp.pad(G_t, ((0, 0), (0, out_p - d_out)))
        weights.append((W_t, G_t))

    # ---- batch tiling ---------------------------------------------------------
    TB = _round_up(min(block_b, max(B, 8)), 8)
    Bp = _round_up(B, TB)
    if Bp // TB < 2 and B > 8:
        # Guarantee a >=2-step batch grid so "parallel" sharding can use both
        # v7x TensorCores (harmless on single-TC v5e/v6e).
        TB = _round_up((B + 1) // 2, 8)
        Bp = _round_up(B, TB)

    x_p = x.astype(jnp.float32)
    if Bp != B:
        # Pad batch rows with 1.0: keeps the multiplicative path exp(log|h|@W)
        # bounded in padded rows (they're sliced off below either way).
        x_p = jnp.pad(x_p, ((0, Bp - B), (0, 0)), constant_values=1.0)

    # ---- explicit VMEM budget -------------------------------------------------
    widths = [in_dim] + [w.shape[1] for (w, _) in weights]
    max_w = max(widths)
    vmem = 2 * TB * in_dim * 4                       # double-buffered x tile
    vmem += 2 * TB * out_p * 4                       # double-buffered out tile
    for (W_t, G_t) in weights:                       # weights (x2 headroom in case
        vmem += 2 * 4 * (W_t.size + G_t.size)        # of double-buffer fallback)
    vmem += 8 * TB * max_w * 4                       # in-body temporaries
    vmem_limit = int(min(max(vmem * 3 // 2, 16 * 1024 * 1024), 128 * 1024 * 1024))

    flat_w = [w for pair in weights for w in pair]
    kernel = _make_nalu_stack_kernel(num_layers)

    def build_call(single_buffer_weights):
        def wspec(shape):
            kwargs = {}
            if single_buffer_weights:
                # Constant index_map -> a second pipeline buffer is pure waste.
                kwargs["pipeline_mode"] = pl.Buffered(1)
            return pl.BlockSpec(shape, lambda i: (0, 0), **kwargs)

        in_specs = [pl.BlockSpec((TB, in_dim), lambda i: (i, 0))]
        in_specs += [wspec(tuple(w.shape)) for w in flat_w]

        return pl.pallas_call(
            kernel,
            out_shape=jax.ShapeDtypeStruct((Bp, out_p), jnp.float32),
            grid=(Bp // TB,),
            in_specs=in_specs,
            out_specs=pl.BlockSpec((TB, out_p), lambda i: (i, 0)),
            compiler_params=pltpu.CompilerParams(
                dimension_semantics=("parallel",),
                vmem_limit_bytes=vmem_limit),
        )

    try:
        out = build_call(True)(x_p, *flat_w)
    except Exception:
        # Fallback for jax versions without BlockSpec(pipeline_mode=...):
        # default double-buffered weight blocks (correct, slightly more VMEM).
        out = build_call(False)(x_p, *flat_w)

    return out[:B, :out_dim]


# ----------------------------- pure-JAX reference -----------------------------

def nalu_cell_reference(x, W_hat, M_hat, G):
    W = jnp.tanh(W_hat) * jax.nn.sigmoid(M_hat)
    a = jnp.dot(x, W.T, precision=lax.Precision.HIGHEST)
    g = jax.nn.sigmoid(jnp.dot(x, G.T, precision=lax.Precision.HIGHEST))
    m = jnp.exp(jnp.dot(jnp.log(jnp.abs(x) + EPS), W.T,
                        precision=lax.Precision.HIGHEST))
    return g * a + (1.0 - g) * m


def nalu_reference(x, params):
    h = x
    for p in params:
        h = nalu_cell_reference(h, p["W_hat"], p["M_hat"], p["G"])
    return h


# --------------------------------- init / demo --------------------------------

def kaiming_uniform(key, out_dim, in_dim):
    # nn.init.kaiming_uniform_ defaults: a=0, fan_in, leaky_relu -> gain=sqrt(2)
    bound = math.sqrt(2.0) * math.sqrt(3.0 / in_dim)
    return jax.random.uniform(key, (out_dim, in_dim), jnp.float32, -bound, bound)


def init_nalu_params(key, num_layers, in_dim, hidden_dim, out_dim):
    params = []
    for i in range(num_layers):
        d_in = hidden_dim if i > 0 else in_dim
        d_out = hidden_dim if i < num_layers - 1 else out_dim
        key, kw, km, kg = jax.random.split(key, 4)
        params.append({
            "W_hat": kaiming_uniform(kw, d_out, d_in),
            "M_hat": kaiming_uniform(km, d_out, d_in),
            "G": kaiming_uniform(kg, d_out, d_in),
        })
    return params


if __name__ == "__main__":
    num_layers, in_dim, hidden_dim, out_dim = 2, 32, 32, 16
    B = 64

    key = jax.random.PRNGKey(0)
    kx, kp = jax.random.split(key)
    x = jax.random.normal(kx, (B, in_dim), jnp.float32)
    params = init_nalu_params(kp, num_layers, in_dim, hidden_dim, out_dim)

    # Default block_b=512 -> TB is clamped to 32 here, giving a real 2-step grid.
    out = nalu_forward(x, params)
    out = jax.block_until_ready(out)

    ref = nalu_reference(x, params)
    assert out.shape == (B, out_dim)
    assert jnp.allclose(out, ref, atol=1e-3, rtol=1e-3), "mismatch vs reference"

    print("KERNEL_OK")
</pallas_src>

<mosaic_0001>
module attributes {stable_mosaic.version = 11 : i64} {
  func.func @kernel(%arg0: i32, %arg1: memref<32x32xf32, #tpu.memory_space<vmem>>, %arg2: memref<32x32xf32, #tpu.memory_space<vmem>>, %arg3: memref<32x32xf32, #tpu.memory_space<vmem>>, %arg4: memref<32x128xf32, #tpu.memory_space<vmem>>, %arg5: memref<32x128xf32, #tpu.memory_space<vmem>>, %arg6: memref<32x128xf32, #tpu.memory_space<vmem>>) attributes {dimension_semantics = [#tpu.dimension_semantics<parallel>], iteration_bounds = array<i64: 2>, scalar_prefetch = 0 : i64, scratch_operands = 0 : i64, tpu.core_type = #tpu.core_type<tc>, window_params = [{transform_indices = @transform_0, window_bounds = array<i64: 32, 32>}, {pipeline_mode = #tpu.pipeline_mode<synchronous>, transform_indices = @transform_1, window_bounds = array<i64: 32, 32>}, {pipeline_mode = #tpu.pipeline_mode<synchronous>, transform_indices = @transform_2, window_bounds = array<i64: 32, 32>}, {pipeline_mode = #tpu.pipeline_mode<synchronous>, transform_indices = @transform_3, window_bounds = array<i64: 32, 128>}, {pipeline_mode = #tpu.pipeline_mode<synchronous>, transform_indices = @transform_4, window_bounds = array<i64: 32, 128>}, {transform_indices = @transform_5, window_bounds = array<i64: 32, 128>}]} {
    %c0 = arith.constant 0 : index
    %c0_0 = arith.constant 0 : index
    %0 = vector.load %arg1[%c0, %c0_0] : memref<32x32xf32, #tpu.memory_space<vmem>>, vector<32x32xf32>
    %c0_1 = arith.constant 0 : index
    %c0_2 = arith.constant 0 : index
    %1 = vector.load %arg2[%c0_1, %c0_2] : memref<32x32xf32, #tpu.memory_space<vmem>>, vector<32x32xf32>
    %c0_3 = arith.constant 0 : index
    %c0_4 = arith.constant 0 : index
    %2 = vector.load %arg3[%c0_3, %c0_4] : memref<32x32xf32, #tpu.memory_space<vmem>>, vector<32x32xf32>
    %cst = arith.constant dense<0.000000e+00> : vector<32x32xf32>
    %3 = tpu.matmul %0, %1, %cst {dimension_numbers = #tpu.dot_dimension_numbers<[1], [0], [0], [1], [0, 0, 1, 1], [], []>, precision = #tpu.contract_precision<fp32>} : vector<32x32xf32>, vector<32x32xf32>, vector<32x32xf32> -> vector<32x32xf32>
    %cst_5 = arith.constant dense<0.000000e+00> : vector<32x32xf32>
    %4 = tpu.matmul %0, %2, %cst_5 {dimension_numbers = #tpu.dot_dimension_numbers<[1], [0], [0], [1], [0, 0, 1, 1], [], []>, precision = #tpu.contract_precision<fp32>} : vector<32x32xf32>, vector<32x32xf32>, vector<32x32xf32> -> vector<32x32xf32>
    %5 = arith.negf %4 : vector<32x32xf32>
    %6 = math.exp %5 : vector<32x32xf32>
    %cst_6 = arith.constant 1.000000e+00 : f32
    %7 = vector.broadcast %cst_6 : f32 to vector<32x32xf32>
    %8 = arith.addf %7, %6 : vector<32x32xf32>
    %9 = arith.divf %7, %8 : vector<32x32xf32>
    %10 = math.absf %0 : vector<32x32xf32>
    %cst_7 = arith.constant 1.000000e-10 : f32
    %11 = vector.broadcast %cst_7 : f32 to vector<32x32xf32>
    %12 = arith.addf %10, %11 : vector<32x32xf32>
    %13 = math.log %12 : vector<32x32xf32>
    %cst_8 = arith.constant dense<0.000000e+00> : vector<32x32xf32>
    %14 = tpu.matmul %13, %1, %cst_8 {dimension_numbers = #tpu.dot_dimension_numbers<[1], [0], [0], [1], [0, 0, 1, 1], [], []>, precision = #tpu.contract_precision<fp32>} : vector<32x32xf32>, vector<32x32xf32>, vector<32x32xf32> -> vector<32x32xf32>
    %15 = math.exp %14 : vector<32x32xf32>
    %16 = arith.subf %3, %15 : vector<32x32xf32>
    %17 = arith.mulf %9, %16 : vector<32x32xf32>
    %18 = arith.addf %15, %17 : vector<32x32xf32>
    %c0_9 = arith.constant 0 : index
    %c0_10 = arith.constant 0 : index
    %19 = vector.load %arg4[%c0_9, %c0_10] : memref<32x128xf32, #tpu.memory_space<vmem>>, vector<32x128xf32>
    %c0_11 = arith.constant 0 : index
    %c0_12 = arith.constant 0 : index
    %20 = vector.load %arg5[%c0_11, %c0_12] : memref<32x128xf32, #tpu.memory_space<vmem>>, vector<32x128xf32>
    %cst_13 = arith.constant dense<0.000000e+00> : vector<32x128xf32>
    %21 = tpu.matmul %18, %19, %cst_13 {dimension_numbers = #tpu.dot_dimension_numbers<[1], [0], [0], [1], [0, 0, 1, 1], [], []>, precision = #tpu.contract_precision<fp32>} : vector<32x32xf32>, vector<32x128xf32>, vector<32x128xf32> -> vector<32x128xf32>
    %cst_14 = arith.constant dense<0.000000e+00> : vector<32x128xf32>
    %22 = tpu.matmul %18, %20, %cst_14 {dimension_numbers = #tpu.dot_dimension_numbers<[1], [0], [0], [1], [0, 0, 1, 1], [], []>, precision = #tpu.contract_precision<fp32>} : vector<32x32xf32>, vector<32x128xf32>, vector<32x128xf32> -> vector<32x128xf32>
    %23 = arith.negf %22 : vector<32x128xf32>
    %24 = math.exp %23 : vector<32x128xf32>
    %cst_15 = arith.constant 1.000000e+00 : f32
    %25 = vector.broadcast %cst_15 : f32 to vector<32x128xf32>
    %26 = arith.addf %25, %24 : vector<32x128xf32>
    %27 = arith.divf %25, %26 : vector<32x128xf32>
    %28 = math.absf %18 : vector<32x32xf32>
    %cst_16 = arith.constant 1.000000e-10 : f32
    %29 = vector.broadcast %cst_16 : f32 to vector<32x32xf32>
    %30 = arith.addf %28, %29 : vector<32x32xf32>
    %31 = math.log %30 : vector<32x32xf32>
    %cst_17 = arith.constant dense<0.000000e+00> : vector<32x128xf32>
    %32 = tpu.matmul %31, %19, %cst_17 {dimension_numbers = #tpu.dot_dimension_numbers<[1], [0], [0], [1], [0, 0, 1, 1], [], []>, precision = #tpu.contract_precision<fp32>} : vector<32x32xf32>, vector<32x128xf32>, vector<32x128xf32> -> vector<32x128xf32>
    %33 = math.exp %32 : vector<32x128xf32>
    %34 = arith.subf %21, %33 : vector<32x128xf32>
    %35 = arith.mulf %27, %34 : vector<32x128xf32>
    %36 = arith.addf %33, %35 : vector<32x128xf32>
    %c0_18 = arith.constant 0 : index
    %c0_19 = arith.constant 0 : index
    %37 = vector.load %arg6[%c0_18, %c0_19] : memref<32x128xf32, #tpu.memory_space<vmem>>, vector<32x128xf32>
    tpu.vector_store %arg6[%c0_18, %c0_19], %36 {strides = array<i32>} : memref<32x128xf32, #tpu.memory_space<vmem>>, vector<32x128xf32>,
    return
  }
  func.func @transform_0(%arg0: i32) -> (i32, i32) {
    %c0_i32 = arith.constant 0 : i32
    %c0_i32_0 = arith.constant 0 : i32
    return %arg0, %c0_i32 : i32, i32
  }
  func.func @transform_1(%arg0: i32) -> (i32, i32) {
    %c0_i32 = arith.constant 0 : i32
    %c0_i32_0 = arith.constant 0 : i32
    %c0_i32_1 = arith.constant 0 : i32
    return %c0_i32, %c0_i32_0 : i32, i32
  }
  func.func @transform_2(%arg0: i32) -> (i32, i32) {
    %c0_i32 = arith.constant 0 : i32
    %c0_i32_0 = arith.constant 0 : i32
    %c0_i32_1 = arith.constant 0 : i32
    return %c0_i32, %c0_i32_0 : i32, i32
  }
  func.func @transform_3(%arg0: i32) -> (i32, i32) {
    %c0_i32 = arith.constant 0 : i32
    %c0_i32_0 = arith.constant 0 : i32
    %c0_i32_1 = arith.constant 0 : i32
    return %c0_i32, %c0_i32_0 : i32, i32
  }
  func.func @transform_4(%arg0: i32) -> (i32, i32) {
    %c0_i32 = arith.constant 0 : i32
    %c0_i32_0 = arith.constant 0 : i32
    %c0_i32_1 = arith.constant 0 : i32
    return %c0_i32, %c0_i32_0 : i32, i32
  }
  func.func @transform_5(%arg0: i32) -> (i32, i32) {
    %c0_i32 = arith.constant 0 : i32
    %c0_i32_0 = arith.constant 0 : i32
    return %arg0, %c0_i32 : i32, i32
  }
}

module attributes {stable_mosaic.version = 11 : i64} {
  func.func @kernel(%arg0: i32, %arg1: memref<32x32xf32, #tpu.memory_space<vmem>>, %arg2: memref<32x32xf32, #tpu.memory_space<vmem>>, %arg3: memref<32x32xf32, #tpu.memory_space<vmem>>, %arg4: memref<32x128xf32, #tpu.memory_space<vmem>>, %arg5: memref<32x128xf32, #tpu.memory_space<vmem>>, %arg6: memref<32x128xf32, #tpu.memory_space<vmem>>) attributes {dimension_semantics = [#tpu.dimension_semantics<parallel>], iteration_bounds = array<i64: 2>, scalar_prefetch = 0 : i64, scratch_operands = 0 : i64, tpu.core_type = #tpu.core_type<tc>, window_params = [{transform_indices = @transform_0, window_bounds = array<i64: 32, 32>}, {pipeline_mode = #tpu.pipeline_mode<synchronous>, transform_indices = @transform_1, window_bounds = array<i64: 32, 32>}, {pipeline_mode = #tpu.pipeline_mode<synchronous>, transform_indices = @transform_2, window_bounds = array<i64: 32, 32>}, {pipeline_mode = #tpu.pipeline_mode<synchronous>, transform_indices = @transform_3, window_bounds = array<i64: 32, 128>}, {pipeline_mode = #tpu.pipeline_mode<synchronous>, transform_indices = @transform_4, window_bounds = array<i64: 32, 128>}, {transform_indices = @transform_5, window_bounds = array<i64: 32, 128>}]} {
    %c0 = arith.constant 0 : index
    %c0_0 = arith.constant 0 : index
    %0 = vector.load %arg1[%c0, %c0_0] : memref<32x32xf32, #tpu.memory_space<vmem>>, vector<32x32xf32>
    %c0_1 = arith.constant 0 : index
    %c0_2 = arith.constant 0 : index
    %1 = vector.load %arg2[%c0_1, %c0_2] : memref<32x32xf32, #tpu.memory_space<vmem>>, vector<32x32xf32>
    %c0_3 = arith.constant 0 : index
    %c0_4 = arith.constant 0 : index
    %2 = vector.load %arg3[%c0_3, %c0_4] : memref<32x32xf32, #tpu.memory_space<vmem>>, vector<32x32xf32>
    %cst = arith.constant dense<0.000000e+00> : vector<32x32xf32>
    %3 = tpu.matmul %0, %1, %cst {dimension_numbers = #tpu.dot_dimension_numbers<[1], [0], [0], [1], [0, 0, 1, 1], [], []>, precision = #tpu.contract_precision<fp32>} : vector<32x32xf32>, vector<32x32xf32>, vector<32x32xf32> -> vector<32x32xf32>
    %cst_5 = arith.constant dense<0.000000e+00> : vector<32x32xf32>
    %4 = tpu.matmul %0, %2, %cst_5 {dimension_numbers = #tpu.dot_dimension_numbers<[1], [0], [0], [1], [0, 0, 1, 1], [], []>, precision = #tpu.contract_precision<fp32>} : vector<32x32xf32>, vector<32x32xf32>, vector<32x32xf32> -> vector<32x32xf32>
    %5 = arith.negf %4 : vector<32x32xf32>
    %6 = math.exp %5 : vector<32x32xf32>
    %cst_6 = arith.constant 1.000000e+00 : f32
    %7 = vector.broadcast %cst_6 : f32 to vector<32x32xf32>
    %8 = arith.addf %7, %6 : vector<32x32xf32>
    %9 = arith.divf %7, %8 : vector<32x32xf32>
    %10 = math.absf %0 : vector<32x32xf32>
    %cst_7 = arith.constant 1.000000e-10 : f32
    %11 = vector.broadcast %cst_7 : f32 to vector<32x32xf32>
    %12 = arith.addf %10, %11 : vector<32x32xf32>
    %13 = math.log %12 : vector<32x32xf32>
    %cst_8 = arith.constant dense<0.000000e+00> : vector<32x32xf32>
    %14 = tpu.matmul %13, %1, %cst_8 {dimension_numbers = #tpu.dot_dimension_numbers<[1], [0], [0], [1], [0, 0, 1, 1], [], []>, precision = #tpu.contract_precision<fp32>} : vector<32x32xf32>, vector<32x32xf32>, vector<32x32xf32> -> vector<32x32xf32>
    %15 = math.exp %14 : vector<32x32xf32>
    %16 = arith.subf %3, %15 : vector<32x32xf32>
    %17 = arith.mulf %9, %16 : vector<32x32xf32>
    %18 = arith.addf %15, %17 : vector<32x32xf32>
    %c0_9 = arith.constant 0 : index
    %c0_10 = arith.constant 0 : index
    %19 = vector.load %arg4[%c0_9, %c0_10] : memref<32x128xf32, #tpu.memory_space<vmem>>, vector<32x128xf32>
    %c0_11 = arith.constant 0 : index
    %c0_12 = arith.constant 0 : index
    %20 = vector.load %arg5[%c0_11, %c0_12] : memref<32x128xf32, #tpu.memory_space<vmem>>, vector<32x128xf32>
    %cst_13 = arith.constant dense<0.000000e+00> : vector<32x128xf32>
    %21 = tpu.matmul %18, %19, %cst_13 {dimension_numbers = #tpu.dot_dimension_numbers<[1], [0], [0], [1], [0, 0, 1, 1], [], []>, precision = #tpu.contract_precision<fp32>} : vector<32x32xf32>, vector<32x128xf32>, vector<32x128xf32> -> vector<32x128xf32>
    %cst_14 = arith.constant dense<0.000000e+00> : vector<32x128xf32>
    %22 = tpu.matmul %18, %20, %cst_14 {dimension_numbers = #tpu.dot_dimension_numbers<[1], [0], [0], [1], [0, 0, 1, 1], [], []>, precision = #tpu.contract_precision<fp32>} : vector<32x32xf32>, vector<32x128xf32>, vector<32x128xf32> -> vector<32x128xf32>
    %23 = arith.negf %22 : vector<32x128xf32>
    %24 = math.exp %23 : vector<32x128xf32>
    %cst_15 = arith.constant 1.000000e+00 : f32
    %25 = vector.broadcast %cst_15 : f32 to vector<32x128xf32>
    %26 = arith.addf %25, %24 : vector<32x128xf32>
    %27 = arith.divf %25, %26 : vector<32x128xf32>
    %28 = math.absf %18 : vector<32x32xf32>
    %cst_16 = arith.constant 1.000000e-10 : f32
    %29 = vector.broadcast %cst_16 : f32 to vector<32x32xf32>
    %30 = arith.addf %28, %29 : vector<32x32xf32>
    %31 = math.log %30 : vector<32x32xf32>
    %cst_17 = arith.constant dense<0.000000e+00> : vector<32x128xf32>
    %32 = tpu.matmul %31, %19, %cst_17 {dimension_numbers = #tpu.dot_dimension_numbers<[1], [0], [0], [1], [0, 0, 1, 1], [], []>, precision = #tpu.contract_precision<fp32>} : vector<32x32xf32>, vector<32x128xf32>, vector<32x128xf32> -> vector<32x128xf32>
    %33 = math.exp %32 : vector<32x128xf32>
    %34 = arith.subf %21, %33 : vector<32x128xf32>
    %35 = arith.mulf %27, %34 : vector<32x128xf32>
    %36 = arith.addf %33, %35 : vector<32x128xf32>
    %c0_18 = arith.constant 0 : index
    %c0_19 = arith.constant 0 : index
    %37 = vector.load %arg6[%c0_18, %c0_19] : memref<32x128xf32, #tpu.memory_space<vmem>>, vector<32x128xf32>
    tpu.vector_store %arg6[%c0_18, %c0_19], %36 {strides = array<i32>} : memref<32x128xf32, #tpu.memory_space<vmem>>, vector<32x128xf32>,
    return
  }
  func.func @transform_0(%arg0: i32) -> (i32, i32) {
    %c0_i32 = arith.constant 0 : i32
    %c0_i32_0 = arith.constant 0 : i32
    return %arg0, %c0_i32 : i32, i32
  }
  func.func @transform_1(%arg0: i32) -> (i32, i32) {
    %c0_i32 = arith.constant 0 : i32
    %c0_i32_0 = arith.constant 0 : i32
    %c0_i32_1 = arith.constant 0 : i32
    return %c0_i32, %c0_i32_0 : i32, i32
  }
  func.func @transform_2(%arg0: i32) -> (i32, i32) {
    %c0_i32 = arith.constant 0 : i32
    %c0_i32_0 = arith.constant 0 : i32
    %c0_i32_1 = arith.constant 0 : i32
    return %c0_i32, %c0_i32_0 : i32, i32
  }
  func.func @transform_3(%arg0: i32) -> (i32, i32) {
    %c0_i32 = arith.constant 0 : i32
    %c0_i32_0 = arith.constant 0 : i32
    %c0_i32_1 = arith.constant 0 : i32
    return %c0_i32, %c0_i32_0 : i32, i32
  }
  func.func @transform_4(%arg0: i32) -> (i32, i32) {
    %c0_i32 = arith.constant 0 : i32
    %c0_i32_0 = arith.constant 0 : i32
    %c0_i32_1 = arith.constant 0 : i32
    return %c0_i32, %c0_i32_0 : i32, i32
  }
  func.func @transform_5(%arg0: i32) -> (i32, i32) {
    %c0_i32 = arith.constant 0 : i32
    %c0_i32_0 = arith.constant 0 : i32
    return %arg0, %c0_i32 : i32, i32
  }
}

</mosaic_0001>

<bundles_post_ra>
// kernel: tpu_custom_call.1
= control target key start
LH: loop header
LB: loop body
LE: loop exit
PB: predicated region body
PF: predicated region fallthrough
CT: control target
= control target key end

     0   :  { %10 = vsyncpa [#allocation3], 0  ;;  %s3476_s0 = inlined_call_operand.vmem [shape: f32[64,32], index: 0, kind: input, shape index: {}]   ;;  %s3477_s1 = inlined_call_operand.vmem [shape: f32[32,32], index: 1, kind: input, shape index: {}]   ;;  %s3478_s2 = inlined_call_operand.vmem [shape: f32[32,32], index: 2, kind: input, shape index: {}]   ;;  %s3479_s3 = inlined_call_operand.vmem [shape: f32[32,128], index: 3, kind: input, shape index: {}]   ;;  %s3480_s4 = inlined_call_operand.hbm [shape: f32[32,128], index: 4, kind: input, shape index: {}]   ;;  %s3481_s5 = inlined_call_operand.hbm [shape: f32[64,128], index: 5, kind: output, shape index: {}]  }
   0x1   :  { %11 = vsyncpa [#allocation4], 0 }
   0x2   :  { %13 = vsyncpa [#allocation4 + $0x1], 0  ;;  %s2572_s18 = smov 0   ;;  %s2574_s19 = smov 0  }
   0x3   :  { %s2576_s20 = smov 0   ;;  %s2578_s21 = smov 0  }
   0x4 LB: > { %s2593_s22 = sadd.s32 4294967295, %s2535_s21   ;;  %s2298_s23 = sadd.s32 4294967294, %s2535_s21   ;;  %s2535_s21 = sphi %s2578_s21, %s3500_s21   ;;  %s2531_s20 = sphi %s2576_s20, %s3499_s20   ;;  %s2527_s19 = sphi %s2574_s19, %s3498_s19   ;;  %s2523_s18 = sphi %s2572_s18, %s3497_s18  }
   0x5   : > { %s2597_s24 = sadd.s32 1, %s2535_s21   ;;  %s136_s25 = sadd.s32 1, %s2531_s20 }
   0x6   : > { %s133_s26 = ssub.s32 %s2535_s21, %s2597_s24  ;;  %p146_p0 = scmp.ne.s32.totalorder %s2531_s20, %s2527_s19 }
   0x7   : > { %p134_p1 = scmp.eq.s32.totalorder %s133_s26, 0  ;;  %p147_p2 = scmp.eq.s32.totalorder %s2593_s22, 1 }
   0x8   : > { %p152_p3 = scmp.ne.s32.totalorder %s2527_s19, %s2523_s18  ;;  %p153_p4 = scmp.eq.s32.totalorder %s2298_s23, 1 }
   0x9   : > { %s2608_s27 = scalar_select %p134_p1, %s2531_s20, %s136_s25  }
   0xa   : > { %p2610_p5 = por %p147_p2, %p146_p0  ;;  %p2614_p6 = por %p153_p4, %p152_p3 }
   0xb   : > { %p2299_p7 = scmp.ge.s32.totalorder %s2535_s21, 1  ;;  %p160_p8 = scmp.lt.s32.totalorder %s2535_s21, 3 }
   0xc   : > { %p2335_p9 = scmp.eq.s32.totalorder %s2593_s22, 0  ;;  %s180_s7 = sshll.u32 %s3480_s4, 4  ;;  %s181_s7 = int_to_ptr.hbm [resolvable:$true] %s180_s7 }
   0xd   : > { %p161_p10 = pnand %p2299_p7, %p160_p8  ;;  %s2537_s8 = smov [#allocation2]  }
   0xe   : > { %s182_s9 = sshll.u32 %s2537_s8, 4  ;;  %s2538_s10 = smov 128   ;;  %s183_s9 = int_to_ptr.vmem [resolvable:$true] %s182_s9 }
   0xf   : > { %p2327_p11 = pneg %p161_p10  ;;  %s2539_s11 = smov 8  }
  0x10   : > { %207 = sbr.rel (%p161_p10) target bundleno = 631 (0x277), region = 40 }
  0x11   : > { %p2328_p12 = pnand %p2335_p9, %p2327_p11 }
  0x13   : > { %2330 = dma.hbm_to_vmem [thread:$0]  (!%p2328_p12), %s181_s7, 512, %s183_s9, [#allocation3], %s2538_s10, %s2538_s10, %s2539_s11  }
  0x15   : > { %2514 = dma.done.wait (%p2335_p9), [#allocation3], 512  }
  0x16   : > { %2516 = vsyncadd (%p2335_p9), [#allocation3], 4294966784  ;;  %s2305_s12 = sshll.u32 %s2593_s22, 2  ;;  %vm255_vm0 = vcmask 261120   ;;  %v250_v0 = vld [vmem:[%s3477_s1 + $0x18] sm:$0xff]  ;;  %v249_v1 = vld [vmem:[%s3477_s1 + $0x10] sm:$0xff] }
  0x17   : > { %p237_p13 = scmp.lt.s32.totalorder %s2305_s12, 7  ;;  %v248_v2 = vld [vmem:[%s3477_s1 + $0x8] sm:$0xff]  ;;  %v2645_v3 = vand.u32 4294901760, %v250_v0  ;;  %v2647_v4 = vand.u32 4294901760, %v249_v1  ;;  %v247_v6 = vld [vmem:[%s3477_s1] sm:$0xff]  ;;  %v254_v32 = vld [vmem:[%s3478_s2 + $0x18] sm:$0xff] }
  0x18   : > { %v2649_v5 = vand.u32 4294901760, %v248_v2  ;;  %v2660_v9 = vand.u32 4294901760, %v247_v6  ;;  %v253_v33 = vld [vmem:[%s3478_s2 + $0x10] sm:$0xff]  ;;  %v252_v34 = vld [vmem:[%s3478_s2 + $0x8] sm:$0xff]  ;;  %v251_v40 = vld [vmem:[%s3478_s2] sm:$0xff]  ;;  %v2760_v43 = vand.u32 4294901760, %v254_v32 }
  0x19   : > { %s3502_s12 = smov (!%p237_p13, %s2305_s12), 7  ;;  %281 = vmatpush.msra.mxu0 %v2645_v3  ;;  %v2671_v13 = vsub.f32 %v250_v0, %v2645_v3  ;;  %v2674_v14 = vsub.f32 %v249_v1, %v2647_v4  ;;  %432 = vmatpush.msra.mxu3 %v2645_v3  ;;  %v2762_v44 = vand.u32 4294901760, %v253_v33  ;;  %v2764_v45 = vand.u32 4294901760, %v252_v34  ;;  %s233_s9 = sand.u32 1, %s2527_s19  }
  0x1a   : > { %s2306_s13 = sshll.u32 %s3502_s12, 3  ;;  %v2678_v15 = vsub.f32 %v248_v2, %v2649_v5  ;;  %v2683_v17 = vsub.f32 %v247_v6, %v2660_v9  ;;  %v2775_v49 = vand.u32 4294901760, %v251_v40  ;;  %v612_v51 = vsub.f32 %v254_v32, %v2760_v43  ;;  %s2304_s10 = sshll.u32 %s233_s9, 5 }
  0x1b   : > { %s2634_s16 = scalar_lea.vmem %s3476_s0, %s2306_s13  ;;  %283 = vmatpush.msra.mxu0 %v2647_v4  ;;  %388 = vmatpush.msra.mxu2 %v2671_v13  ;;  %v2692_v20 = vand.u32 4294901760, %v2671_v13  ;;  %v2698_v22 = vand.u32 4294901760, %v2674_v14  ;;  %v618_v52 = vsub.f32 %v253_v33, %v2762_v44  ;;  %v624_v53 = vsub.f32 %v252_v34, %v2764_v45  ;;  %s3418_s11 = scalar_lea.vmem [#allocation5], %s2304_s10 }
  0x1c   : > { %v2655_v7 = vld [vmem:[%s2634_s16] sm:$0xff]  ;;  %v2658_v8 = vld [vmem:[%s2634_s16 + $0x8] sm:$0xff]  ;;  %v2667_v12 = vld [vmem:[%s2634_s16 + $0x10] sm:$0xff]  ;;  %v2701_v23 = vand.u32 4294901760, %v2678_v15  ;;  %434 = vmatpush.msra.mxu3 %v2647_v4  ;;  %v2705_v24 = vand.u32 4294901760, %v2683_v17  ;;  %v630_v54 = vsub.f32 %v251_v40, %v2775_v49  ;;  %v613_v55 = vand.u32 4294901760, %v612_v51 }
  0x1d   : > { %v257_v10 = vsel %vm255_vm0, %v2655_v7, 0  ;;  %v260_v11 = vsel %vm255_vm0, %v2658_v8, 0  ;;  %v263_v19 = vsel %vm255_vm0, %v2667_v12, 0  ;;  %285 = vmatpush.msra.mxu0 %v2649_v5  ;;  %391 = vmatpush.msra.mxu2 %v2674_v14  ;;  %v336_v26 = vsub.f32 %v2671_v13, %v2692_v20  ;;  %v2747_v39 = vld [vmem:[%s2634_s16 + $0x18] sm:$0xff]  ;;  %s2320_s12 = sshll.u32 %s2593_s22, 5  ;;  %s2221_s22 = sshll.u32 %s3418_s11, 4  ;;  %s2222_s22 = int_to_ptr.vmem [resolvable:$true] %s2221_s22 }
  0x1e   : > { %v2680_v16 = vand.u32 4294901760, %v257_v10  ;;  %v2685_v18 = vand.u32 4294901760, %v260_v11  ;;  %v342_v28 = vsub.f32 %v2674_v14, %v2698_v22  ;;  %v348_v29 = vsub.f32 %v2678_v15, %v2701_v23  ;;  %436 = vmatpush.msra.mxu3 %v2649_v5  ;;  %s2220_s15 = scalar_lea.hbm %s3481_s5, %s2320_s12  ;;  %s2209_s16 = scalar_lea.sflag [#allocation4], %s233_s9 }
  0x1f   : > { %v2725_v31 = vand.u32 4294901760, %v263_v19  ;;  %287 = vmatpush.msra.mxu0 %v2660_v9  ;;  %v2737_v35 = vand.u32 4294901760, %v336_v26  ;;  %394 = vmatpush.msra.mxu2 %v2678_v15  ;;  %v354_v38 = vsub.f32 %v2683_v17, %v2705_v24  ;;  %v266_v48 = vsel %vm255_vm0, %v2747_v39, 0  ;;  %s2223_s17 = sshll.u32 %s2220_s15, 4  ;;  %s2489_s6 = scalar_lea.hbm %s3481_s5, 64  ;;  %s2224_s17 = int_to_ptr.hbm [resolvable:$true] %s2223_s17 }
  0x20   : > { %v2695_v21 = vsub.f32 %v257_v10, %v2680_v16  ;;  %v2708_v25 = vsub.f32 %v260_v11, %v2685_v18  ;;  %v2742_v37 = vand.u32 4294901760, %v342_v28  ;;  %v2752_v41 = vand.u32 4294901760, %v348_v29  ;;  %438 = vmatpush.msra.mxu3 %v2660_v9  ;;  %s2483_s23 = sshra.s32 %s2224_s17, 4  ;;  %s2484_s23 = int_to_ptr.hbm [resolvable:$true] %s2483_s23 }
  0x21   : > { %479 = vmatpush.msrb.mxu0 %v2692_v20  ;;  %338 = vmatpush.msra.mxu1 %v2737_v35  ;;  %v2771_v47 = vsub.f32 %v263_v19, %v2725_v31  ;;  %v2779_v50 = vand.u32 4294901760, %v354_v38  ;;  %v619_v56 = vand.u32 4294901760, %v618_v52  ;;  %v625_v57 = vand.u32 4294901760, %v624_v53  ;;  %s2485_s25 = scalar_lea.hbm %s2484_s23, 32  ;;  %p2490_p3 = scmp.lt.s32.totalorder %s2484_s23, %s3481_s5 }
  0x22   : > { %v2715_v27 = vand.u32 4294901760, %v2695_v21  ;;  %v2723_v30 = vand.u32 4294901760, %v2708_v25  ;;  %397 = vmatpush.msra.mxu2 %v2683_v17  ;;  %v2792_v59 = vand.u32 4294901760, %v266_v48  ;;  %v614_v61 = vsub.f32 %v612_v51, %v613_v55  ;;  %p2486_p0 = scmp.ne.s32.totalorder %s2484_s23, %s2485_s25  ;;  %p2491_p4 = scmp.lt.s32.totalorder %s2489_s6, %s2485_s25 }
  0x23   : > { %400 = vmatmul.f32.vlgmr.msra.gmra.mxu2 %v2695_v21  ;;  %344 = vmatpush.msra.mxu1 %v2742_v37  ;;  %v2789_v58 = vand.u32 4294901760, %v2771_v47  ;;  %v620_v62 = vsub.f32 %v618_v52, %v619_v56  ;;  %v631_v63 = vand.u32 4294901760, %v630_v54  ;;  %v626_v0 = vsub.f32 %v624_v53, %v625_v57 }
  0x24   : > { %v291_v36 = vsub.f32 %v2695_v21, %v2715_v27  ;;  %442 = vmatmul.f32.vlgmr.msra.gmra.mxu3 %v2715_v27  ;;  %v299_v46 = vsub.f32 %v2708_v25, %v2723_v30  ;;  %483 = vmatpush.msrb.mxu0 %v2698_v22  ;;  %v615_v1 = vand.u32 4294901760, %v614_v61  ;;  %v2809_v10 = vsub.f32 %v266_v48, %v2792_v59  ;;  %p2487_p1 = pnand %p2486_p0, %p2610_p5  ;;  %p2492_p7 = por %p2491_p4, %p2490_p3 }
  0x25   : > { %559 = vmatpush.msrb.mxu2 %v2760_v43  ;;  %350 = vmatpush.msra.mxu1 %v2752_v41  ;;  %v621_v2 = vand.u32 4294901760, %v620_v62  ;;  %v307_v6 = vsub.f32 %v2771_v47, %v2789_v58  ;;  %v632_v11 = vsub.f32 %v630_v54, %v631_v63  ;;  %v627_v19 = vand.u32 4294901760, %v626_v0 }
  0x26   : > { %v2757_v42 = vand.u32 4294901760, %v291_v36  ;;  %487 = vmatpush.msrb.mxu0 %v2701_v23  ;;  %v2796_v60 = vand.u32 4294901760, %v299_v46  ;;  %616 = vmatpush.msrb.mxu3 %v615_v1  ;;  %v2814_v28 = vand.u32 4294901760, %v2809_v10  ;;  %v902_v34 = vand.u32 2147483647, %v2667_v12  ;;  %p2488_p2 = pneg %p2487_p1 }
  0x27   : > { %561 = vmatpush.msrb.mxu2 %v2762_v44  ;;  %356 = vmatpush.msra.mxu1 %v2779_v50  ;;  %v308_v26 = vand.u32 4294901760, %v307_v6  ;;  %v633_v29 = vand.u32 4294901760, %v632_v11 }
  0x28   : > { %293 = vmatmul.f32.vlgmr.msra.gmra.mxu0 %v2757_v42  ;;  %358 = vmatmul.f32.vlgmr.msra.gmra.mxu1 %v2680_v16  ;;  %v315_v32 = vsub.f32 %v2809_v10, %v2814_v28  ;;  %p2493_p8 = pnand %p2492_p7, %p2488_p2 }
  0x29   : > { %491 = vmatpush.msrb.mxu0 %v2705_v24  ;;  %522 = vmatpush.msrb.mxu1 %v2645_v3 }
  0x2a   : > { %563 = vmatpush.msrb.mxu2 %v2764_v45  ;;  %622 = vmatpush.msrb.mxu3 %v621_v2  ;;  %v316_v33 = vand.u32 4294901760, %v315_v32 }
  0x2b   : > { %405 = vmatmul.f32.gmra.mxu2 %v2708_v25  ;;  %524 = vmatpush.msrb.mxu1 %v2647_v4 }
  0x2c   : > { %448 = vmatmul.f32.gmra.mxu3 %v2723_v30  ;;  %565 = vmatpush.msrb.mxu2 %v2775_v49 }
  0x2d   : > { %526 = vmatpush.msrb.mxu1 %v2649_v5  ;;  %666 = vmatpush.msra.mxu0 %v612_v51 }
  0x2e   : > { %757 = vmatpush.msra.mxu2 %v613_v55  ;;  %628 = vmatpush.msrb.mxu3 %v627_v19 }
  0x2f   : > { %528 = vmatpush.msrb.mxu1 %v2660_v9  ;;  %669 = vmatpush.msra.mxu0 %v618_v52 }
  0x30   : > { %301 = vmatmul.f32.gmra.mxu0 %v2796_v60  ;;  %362 = vmatmul.f32.gmra.mxu1 %v2685_v18 }
  0x31   : > { %710 = vmatpush.msra.mxu1 %v2760_v43  ;;  %672 = vmatpush.msra.mxu0 %v624_v53 }
  0x32   : > { %634 = vmatpush.msrb.mxu3 %v633_v29  ;;  %761 = vmatpush.msra.mxu2 %v619_v56 }
  0x33   : > { %410 = vmatmul.f32.gmra.mxu2 %v2771_v47  ;;  %712 = vmatpush.msra.mxu1 %v2762_v44 }
  0x34   : > { %454 = vmatmul.f32.gmra.mxu3 %v2789_v58  ;;  %675 = vmatpush.msra.mxu0 %v630_v54 }
  0x35   : > { %800 = vmatpush.msra.mxu3 %v2760_v43  ;;  %714 = vmatpush.msra.mxu1 %v2764_v45 }
  0x36   : > { %765 = vmatpush.msra.mxu2 %v625_v57 }
  0x37   : > { %802 = vmatpush.msra.mxu3 %v2762_v44  ;;  %716 = vmatpush.msra.mxu1 %v2775_v49 }
  0x38   : > { %309 = vmatmul.f32.gmra.mxu0 %v308_v26  ;;  %366 = vmatmul.f32.gmra.mxu1 %v2725_v31 }
  0x39   : > { %769 = vmatpush.msra.mxu2 %v631_v63  ;;  %804 = vmatpush.msra.mxu3 %v2764_v45 }
  0x3b   : > { %415 = vmatmul.f32.gmra.mxu2 %v2809_v10  ;;  %806 = vmatpush.msra.mxu3 %v2775_v49 }
  0x3c   : > { %460 = vmatmul.f32.gmra.mxu3 %v2814_v28 }
  0x40   : > { %317 = vmatmul.f32.gmra.mxu0 %v316_v33  ;;  %370 = vmatmul.f32.gmra.mxu1 %v2792_v59 }
  0x43   : > { %571 = vmatmul.f32.vlgmr.msrb.gmra.mxu2 %v2757_v42 }
  0x44   : > { %636 = vmatmul.f32.vlgmr.msrb.gmra.mxu3 %v2680_v16  ;;  %1048 = vmatpush.msrb.mxu2 %v2671_v13  ;;  %v900_v13 = vand.u32 2147483647, %v2655_v7 }
  0x45   : > { %1092 = vmatpush.msrb.mxu3 %v2645_v3 }
  0x46   : > { %1051 = vmatpush.msrb.mxu2 %v2674_v14  ;;  %v904_v14 = vadd.f32 1e-10, %v900_v13 }
  0x47   : > { %1094 = vmatpush.msrb.mxu3 %v2647_v4 }
  0x48   : > { %493 = vmatmul.f32.vlgmr.msrb.gmra.mxu0 %v2680_v16  ;;  %1054 = vmatpush.msrb.mxu2 %v2678_v15  ;;  %2375 = vlog2.f32 %v904_v14  ;;  %v901_v15 = vand.u32 2147483647, %v2658_v8 }
  0x49   : > { %941 = vmatpush.msrb.mxu0 %v2645_v3  ;;  %530 = vmatmul.f32.vlgmr.msrb.gmra.mxu1 %v2680_v16 }
  0x4a   : > { %998 = vmatpush.msrb.mxu1 %v2737_v35  ;;  %1057 = vmatpush.msrb.mxu2 %v2683_v17  ;;  %v905_v7 = vadd.f32 1e-10, %v901_v15 }
  0x4b   : > { %943 = vmatpush.msrb.mxu0 %v2647_v4  ;;  %579 = vmatmul.f32.gmra.mxu2 %v2796_v60 }
  0x4c   : > { %640 = vmatmul.f32.gmra.mxu3 %v2685_v18  ;;  %1004 = vmatpush.msrb.mxu1 %v2742_v37  ;;  %2377 = vlog2.f32 %v905_v7 }
  0x4d   : > { %945 = vmatpush.msrb.mxu0 %v2649_v5  ;;  %1096 = vmatpush.msrb.mxu3 %v2649_v5 }
  0x4e   : > { %1010 = vmatpush.msrb.mxu1 %v2752_v41  ;;  %v2376_v17 = vpop.eup %2375 }
  0x4f   : > { %947 = vmatpush.msrb.mxu0 %v2660_v9  ;;  %1098 = vmatpush.msrb.mxu3 %v2660_v9  ;;  %v909_v8 = vmul.f32 0.6931472, %v2376_v17 }
  0x50   : > { %497 = vmatmul.f32.gmra.mxu0 %v2685_v18  ;;  %1016 = vmatpush.msrb.mxu1 %v2779_v50 }
  0x51   : > { %534 = vmatmul.f32.gmra.mxu1 %v2685_v18 }
  0x52   : > { %v2378_v12 = vpop.eup %2377 }
  0x53   : > { %587 = vmatmul.f32.gmra.mxu2 %v308_v26 }
  0x54   : > { %644 = vmatmul.f32.gmra.mxu3 %v2725_v31 }
  0x58   : > { %501 = vmatmul.f32.gmra.mxu0 %v2725_v31 }
  0x59   : > { %538 = vmatmul.f32.gmra.mxu1 %v2725_v31 }
  0x5b   : > { %595 = vmatmul.f32.gmra.mxu2 %v316_v33 }
  0x5c   : > { %648 = vmatmul.f32.gmra.mxu3 %v2792_v59 }
  0x60   : > { %505 = vmatmul.f32.gmra.mxu0 %v2792_v59 }
  0x61   : > { %542 = vmatmul.f32.gmra.mxu1 %v2792_v59 }
  0x63   : > { %771 = vmatmul.f32.vlgmr.msra.gmra.mxu2 %v2680_v16 }
  0x64   : > { %808 = vmatmul.f32.vlgmr.msra.gmra.mxu3 %v2680_v16  ;;  %v906_v16 = vadd.f32 1e-10, %v902_v34 }
  0x66   : > { %2379 = vlog2.f32 %v906_v16 }
  0x68   : > { %678 = vmatmul.f32.vlgmr.msra.gmra.mxu0 %v2695_v21 }
  0x69   : > { %1139 = vmatpush.msra.mxu0 %v2692_v20  ;;  %720 = vmatmul.f32.vlgmr.msra.gmra.mxu1 %v2715_v27  ;;  %v917_v20 = vsel %vm255_vm0, %v909_v8, 0 }
  0x6a   : > { %1182 = vmatpush.msra.mxu1 %v2645_v3  ;;  %v2882_v21 = vand.u32 4294901760, %v917_v20  ;;  %v903_v3 = vand.u32 2147483647, %v2747_v39 }
  0x6b   : > { %1143 = vmatpush.msra.mxu0 %v2698_v22  ;;  %775 = vmatmul.f32.gmra.mxu2 %v2685_v18 }
  0x6c   : > { %812 = vmatmul.f32.gmra.mxu3 %v2685_v18  ;;  %1184 = vmatpush.msra.mxu1 %v2647_v4  ;;  %v911_v18 = vmul.f32 0.6931472, %v2378_v12  ;;  %v949_v4 = vsub.f32 %v917_v20, %v2882_v21  ;;  %v907_v22 = vadd.f32 1e-10, %v903_v3 }
  0x6d   : > { %1147 = vmatpush.msra.mxu0 %v2701_v23  ;;  %v2380_v23 = vpop.eup %2379 }
  0x6e   : > { %1186 = vmatpush.msra.mxu1 %v2649_v5  ;;  %v920_v5 = vsel %vm255_vm0, %v911_v18, 0  ;;  %2381 = vlog2.f32 %v907_v22 }
  0x6f   : > { %1151 = vmatpush.msra.mxu0 %v2705_v24  ;;  %v950_v24 = vand.u32 4294901760, %v949_v4 }
  0x70   : > { %683 = vmatmul.f32.gmra.mxu0 %v2708_v25  ;;  %1188 = vmatpush.msra.mxu1 %v2660_v9  ;;  %v956_v25 = vand.u32 4294901760, %v920_v5  ;;  %v913_v9 = vmul.f32 0.6931472, %v2380_v23 }
  0x71   : > { %726 = vmatmul.f32.gmra.mxu1 %v2723_v30  ;;  %v951_v27 = vsub.f32 %v949_v4, %v950_v24 }
  0x72   : > { %v957_v30 = vsub.f32 %v920_v5, %v956_v25 }
  0x73   : > { %779 = vmatmul.f32.gmra.mxu2 %v2725_v31  ;;  %v952_v36 = vand.u32 4294901760, %v951_v27 }
  0x74   : > { %816 = vmatmul.f32.gmra.mxu3 %v2725_v31  ;;  %v923_v31 = vsel %vm255_vm0, %v913_v9, 0  ;;  %v2382_v35 = vpop.eup %2381  ;;  %v958_v37 = vand.u32 4294901760, %v957_v30 }
  0x75   : > { %v964_v38 = vand.u32 4294901760, %v923_v31  ;;  %v915_v39 = vmul.f32 0.6931472, %v2382_v35 }
  0x76   : > { %v959_v40 = vsub.f32 %v957_v30, %v958_v37 }
  0x77   : > { %v965_v41 = vsub.f32 %v923_v31, %v964_v38  ;;  %v926_v42 = vsel %vm255_vm0, %v915_v39, 0 }
  0x78   : > { %688 = vmatmul.f32.gmra.mxu0 %v2771_v47  ;;  %v960_v43 = vand.u32 4294901760, %v959_v40  ;;  %v972_v45 = vand.u32 4294901760, %v926_v42 }
  0x79   : > { %732 = vmatmul.f32.gmra.mxu1 %v2789_v58  ;;  %v966_v44 = vand.u32 4294901760, %v965_v41 }
  0x7a   : > { %v973_v47 = vsub.f32 %v926_v42, %v972_v45 }
  0x7b   : > { %783 = vmatmul.f32.gmra.mxu2 %v2792_v59  ;;  %v967_v46 = vsub.f32 %v965_v41, %v966_v44 }
  0x7c   : > { %820 = vmatmul.f32.gmra.mxu3 %v2792_v59  ;;  %v974_v49 = vand.u32 4294901760, %v973_v47 }
  0x7d   : > { %v968_v48 = vand.u32 4294901760, %v967_v46 }
  0x7e   : > { %v975_v50 = vsub.f32 %v973_v47, %v974_v49 }
  0x80   : > { %693 = vmatmul.f32.gmra.mxu0 %v2809_v10  ;;  %v976_v51 = vand.u32 4294901760, %v975_v50 }
  0x81   : > { %738 = vmatmul.f32.gmra.mxu1 %v2814_v28 }
  0x83   : > { %1060 = vmatmul.f32.vlgmr.msrb.gmra.mxu2 %v949_v4 }
  0x84   : > { %1102 = vmatmul.f32.vlgmr.msrb.gmra.mxu3 %v950_v24 }
  0x88   : > { %953 = vmatmul.f32.vlgmr.msrb.gmra.mxu0 %v952_v36 }
  0x89   : > { %1018 = vmatmul.f32.vlgmr.msrb.gmra.mxu1 %v2882_v21 }
  0x8b   : > { %1065 = vmatmul.f32.gmra.mxu2 %v957_v30 }
  0x8c   : > { %1108 = vmatmul.f32.gmra.mxu3 %v958_v37 }
  0x90   : > { %961 = vmatmul.f32.gmra.mxu0 %v960_v43  ;;  %v1229_v43 = vld [vmem:[%s3479_s3 + $0x18] sm:$0xff] }
  0x91   : > { %1022 = vmatmul.f32.gmra.mxu1 %v956_v25  ;;  %v2955_v46 = vand.u32 4294901760, %v1229_v43 }
  0x93   : > { %1070 = vmatmul.f32.gmra.mxu2 %v965_v41  ;;  %1410 = vmatpush.msrb.mxu1 %v2955_v46 }
  0x94   : > { %1114 = vmatmul.f32.gmra.mxu3 %v966_v44  ;;  %1259 = vmatpush.msra.mxu2 %v2955_v46 }
  0x98   : > { %969 = vmatmul.f32.gmra.mxu0 %v968_v48 }
  0x99   : > { %1026 = vmatmul.f32.gmra.mxu1 %v964_v38 }
  0x9b   : > { %1075 = vmatmul.f32.gmra.mxu2 %v973_v47 }
  0x9c   : > { %1120 = vmatmul.f32.gmra.mxu3 %v974_v49  ;;  %v2961_v49 = vsub.f32 %v1229_v43, %v2955_v46 }
  0x9e   : > { %1366 = vmatpush.msrb.mxu0 %v2961_v49 }
  0xa0   : > { %977 = vmatmul.f32.gmra.mxu0 %v976_v51 }
  0xa1   : > { %1030 = vmatmul.f32.gmra.mxu1 %v972_v45 }
  0xa5   : > { %v2900_v52 = vpop.f32.mrf.mxu0  ;;  %v2903_v53 = vpop.f32.mrf.mxu1 }
  0xa6   : > { %v2905_v54 = vpop.f32.mrf.mxu2 }
  0xa7   : > { %v2907_v55 = vpop.f32.mrf.mxu3 }
  0xa8   : > { %1153 = vmatmul.f32.vlgmr.msra.gmra.mxu0 %v2882_v21 }
  0xa9   : > { %1190 = vmatmul.f32.vlgmr.msra.gmra.mxu1 %v2882_v21 }
  0xad   : > { %v2909_v56 = vpop.f32.mrf.mxu0  ;;  %v2912_v57 = vpop.f32.mrf.mxu1 }
  0xae   : > { %v2914_v58 = vpop.f32.mrf.mxu2 }
  0xaf   : > { %v2916_v59 = vpop.f32.mrf.mxu3 }
  0xb0   : > { %1157 = vmatmul.f32.gmra.mxu0 %v956_v25 }
  0xb1   : > { %1194 = vmatmul.f32.gmra.mxu1 %v956_v25 }
  0xb5   : > { %v2918_v60 = vpop.f32.mrf.mxu0  ;;  %v2920_v61 = vpop.f32.mrf.mxu1 }
  0xb6   : > { %v2922_v62 = vpop.f32.mrf.mxu2 }
  0xb7   : > { %v2924_v63 = vpop.f32.mrf.mxu3 }
  0xb8   : > { %1161 = vmatmul.f32.gmra.mxu0 %v964_v38 }
  0xb9   : > { %1198 = vmatmul.f32.gmra.mxu1 %v964_v38 }
  0xbd   : > { %v2926_v0 = vpop.f32.mrf.mxu0  ;;  %v2928_v1 = vpop.f32.mrf.mxu1 }
  0xbe   : > { %v2930_v2 = vpop.f32.mrf.mxu2 }
  0xbf   : > { %v2932_v6 = vpop.f32.mrf.mxu3 }
  0xc0   : > { %1165 = vmatmul.f32.gmra.mxu0 %v972_v45 }
  0xc1   : > { %1202 = vmatmul.f32.gmra.mxu1 %v972_v45 }
  0xc5   : > { %v2934_v10 = vpop.f32.mrf.mxu0 }
  0xc6   : > { %v2936_v11 = vpop.f32.mrf.mxu1  ;;  %v572_v19 = vpop.f32.mrf.mxu2 }
  0xc7   : > { %v637_v28 = vpop.f32.mrf.mxu3 }
  0xc8   : > { %v638_v5 = vadd.f32 %v637_v28, %v572_v19  ;;  %v2965_v19 = vand.u32 4294901760, %v2961_v49 }
  0xcd   : > { %v2938_v26 = vpop.f32.mrf.mxu0 }
  0xce   : > { %v2940_v29 = vpop.f32.mrf.mxu1  ;;  %v580_v32 = vpop.f32.mrf.mxu2 }
  0xcf   : > { %v641_v13 = vpop.f32.mrf.mxu3 }
  0xd0   : > { %v642_v30 = vadd.f32 %v641_v13, %v580_v32 }
  0xd5   : > { %v2942_v33 = vpop.f32.mrf.mxu0 }
  0xd6   : > { %v2944_v14 = vpop.f32.mrf.mxu1  ;;  %v588_v15 = vpop.f32.mrf.mxu2 }
  0xd7   : > { %v645_v17 = vpop.f32.mrf.mxu3 }
  0xd8   : > { %v646_v42 = vadd.f32 %v645_v17, %v588_v15  ;;  %v1314_v15 = vsub.f32 %v2961_v49, %v2965_v19 }
  0xdd   : > { %v2946_v7 = vpop.f32.mrf.mxu0 }
  0xde   : > { %v2948_v34 = vpop.f32.mrf.mxu1  ;;  %v596_v16 = vpop.f32.mrf.mxu2 }
  0xdf   : > { %v649_v12 = vpop.f32.mrf.mxu3 }
  0xe0   : > { %v650_v17 = vadd.f32 %v649_v12, %v596_v16 }
  0xe5   : > { %v679_v8 = vpop.f32.mrf.mxu0 }
  0xe6   : > { %v721_v20 = vpop.f32.mrf.mxu1  ;;  %v772_v3 = vpop.f32.mrf.mxu2  ;;  %v680_v23 = vadd.f32 %v679_v8, %v638_v5  ;;  %v1227_v5 = vld [vmem:[%s3479_s3 + $0x8] sm:$0xff] }
  0xe7   : > { %v809_v4 = vpop.f32.mrf.mxu3 }
  0xe8   : > { %v722_v9 = vadd.f32 %v721_v20, %v680_v23  ;;  %v2972_v20 = vand.u32 4294901760, %v1314_v15 }
  0xea   : > { %v773_v35 = vadd.f32 %v772_v3, %v722_v9  ;;  %1316 = vmatpush.msra.mxu3 %v2972_v20 }
  0xec   : > { %v810_v38 = vadd.f32 %v809_v4, %v773_v35  ;;  %v1226_v35 = vld [vmem:[%s3479_s3] sm:$0xff] }
  0xed   : > { %v684_v21 = vpop.f32.mrf.mxu0 }
  0xee   : > { %v727_v18 = vpop.f32.mrf.mxu1  ;;  %v776_v24 = vpop.f32.mrf.mxu2  ;;  %v685_v36 = vadd.f32 %v684_v21, %v642_v30  ;;  %v2307_v44 = vmul.f32 -1.442695, %v810_v38  ;;  %v1228_v21 = vld [vmem:[%s3479_s3 + $0x10] sm:$0xff]  ;;  %v3007_v38 = vand.u32 4294901760, %v1226_v35 }
  0xef   : > { %v813_v31 = vpop.f32.mrf.mxu3 }
  0xf0   : > { %v728_v39 = vadd.f32 %v727_v18, %v685_v36  ;;  %2383 = vpow2.f32 %v2307_v44  ;;  %v2977_v18 = vand.u32 4294901760, %v1228_v21  ;;  %v3016_v43 = vsub.f32 %v1226_v35, %v3007_v38 }
  0xf2   : > { %v777_v45 = vadd.f32 %v776_v24, %v728_v39  ;;  %1261 = vmatpush.msra.mxu2 %v2977_v18  ;;  %v2987_v12 = vsub.f32 %v1228_v21, %v2977_v18  ;;  %v2989_v24 = vand.u32 4294901760, %v1227_v5  ;;  %1412 = vmatpush.msrb.mxu1 %v2977_v18 }
  0xf4   : > { %v814_v51 = vadd.f32 %v813_v31, %v777_v45  ;;  %v2997_v31 = vand.u32 4294901760, %v2987_v12  ;;  %1369 = vmatpush.msrb.mxu0 %v2987_v12  ;;  %1263 = vmatpush.msra.mxu2 %v2989_v24 }
  0xf5   : > { %v689_v22 = vpop.f32.mrf.mxu0  ;;  %1414 = vmatpush.msrb.mxu1 %v2989_v24 }
  0xf6   : > { %v733_v25 = vpop.f32.mrf.mxu1  ;;  %v780_v40 = vpop.f32.mrf.mxu2  ;;  %v690_v50 = vadd.f32 %v689_v22, %v646_v42  ;;  %v2308_v8 = vmul.f32 -1.442695, %v814_v51  ;;  %v1320_v39 = vsub.f32 %v2987_v12, %v2997_v31  ;;  %1265 = vmatpush.msra.mxu2 %v3007_v38 }
  0xf7   : > { %v817_v47 = vpop.f32.mrf.mxu3  ;;  %v2384_v4 = vpop.eup %2383  ;;  %1416 = vmatpush.msrb.mxu1 %v3007_v38 }
  0xf8   : > { %v734_v28 = vadd.f32 %v733_v25, %v690_v50  ;;  %2385 = vpow2.f32 %v2308_v8  ;;  %v2992_v25 = vadd.f32 1.0, %v2384_v4  ;;  %v3021_v44 = vand.u32 4294901760, %v1320_v39  ;;  %1457 = vmatpush.msrb.mxu2 %v2965_v19 }
  0xfa   : > { %v781_v3 = vadd.f32 %v780_v40, %v734_v28  ;;  %2387 = vrcp.f32 %v2992_v25  ;;  %v3030_v28 = vand.u32 4294901760, %v3016_v43  ;;  %1322 = vmatpush.msra.mxu3 %v3021_v44  ;;  %1461 = vmatpush.msrb.mxu2 %v2997_v31  ;;  %vm845_vm2 = vweird.f32 %v2992_v25 }
  0xfc   : > { %v818_v9 = vadd.f32 %v817_v47, %v781_v3  ;;  %3485 = vst [vmem:[#allocation8_spill] sm:$0xff] %v3030_v28 }
  0xfd   : > { %v694_v27 = vpop.f32.mrf.mxu0 }
  0xfe   : > { %v739_v37 = vpop.f32.mrf.mxu1  ;;  %v784_v13 = vpop.f32.mrf.mxu2  ;;  %v695_v23 = vadd.f32 %v694_v27, %v650_v17  ;;  %v3005_v27 = vsub.f32 %v1227_v5, %v2989_v24  ;;  %v1332_v17 = vsub.f32 %v3016_v43, %v3030_v28 }
  0xff   : > { %v821_v16 = vpop.f32.mrf.mxu3  ;;  %v2386_v45 = vpop.eup %2385 }
 0x100   : > { %v740_v36 = vadd.f32 %v739_v37, %v695_v23  ;;  %v3013_v42 = vand.u32 4294901760, %v3005_v27  ;;  %1372 = vmatpush.msrb.mxu0 %v3005_v27  ;;  %v2309_v37 = vmul.f32 -1.442695, %v818_v9  ;;  %v3045_v4 = vand.u32 4294901760, %v1332_v17  ;;  %v3047_v5 = vpop.eup %2387 }
 0x101   : > { %vm846_vm1 = vweird.f32 %v3047_v5 }
 0x102   : > { %v785_v47 = vadd.f32 %v784_v13, %v740_v36  ;;  %v1326_v51 = vsub.f32 %v3005_v27, %v3013_v42  ;;  %1375 = vmatpush.msrb.mxu0 %v3016_v43  ;;  %v3039_v13 = vadd.f32 1.0, %v2386_v45  ;;  %2389 = vpow2.f32 %v2309_v37  ;;  %1465 = vmatpush.msrb.mxu2 %v3013_v42  ;;  %vm3104_vm3 = vmor %vm845_vm2, %vm846_vm1 }
 0x103   : > { %v360_v37 = vadd.f32 %v2903_v53, %v2900_v52 }
 0x104   : > { %v3035_v15 = vand.u32 4294901760, %v1326_v51  ;;  %v822_v3 = vadd.f32 %v821_v16, %v785_v47  ;;  %1469 = vmatpush.msrb.mxu2 %v3030_v28  ;;  %2391 = vrcp.f32 %v3039_v13  ;;  %v841_v16 = vmul.f32 %v3047_v5, %v2992_v25 }
 0x105   : > { %v2950_v41 = vpop.f32.mrf.mxu0  ;;  %vm860_vm5 = vweird.f32 %v3039_v13 }
 0x106   : > { %v2957_v48 = vpop.f32.mrf.mxu1  ;;  %v1061_v40 = vpop.f32.mrf.mxu2  ;;  %1328 = vmatpush.msra.mxu3 %v3035_v15  ;;  %v2310_v9 = vmul.f32 -1.442695, %v822_v3  ;;  %v842_v47 = vsub.f32 1.0, %v841_v16  ;;  %v402_v3 = vadd.f32 %v2905_v54, %v360_v37 }
 0x107   : > { %v1103_v8 = vpop.f32.mrf.mxu3  ;;  %v1020_v23 = vadd.f32 %v2957_v48, %v2950_v41  ;;  %v364_v48 = vadd.f32 %v2912_v57, %v2909_v56  ;;  %v368_v56 = vadd.f32 %v2920_v61, %v2918_v60 }
 0x108   : > { %1334 = vmatpush.msra.mxu3 %v3045_v4  ;;  %v2390_v39 = vpop.eup %2389  ;;  %2393 = vpow2.f32 %v2310_v9 }
 0x109   : > { %v1062_v41 = vadd.f32 %v1061_v40, %v1020_v23  ;;  %v3065_v51 = vadd.f32 1.0, %v2390_v39  ;;  %v407_v57 = vadd.f32 %v2914_v58, %v364_v48  ;;  %v843_v23 = vmul.f32 %v3047_v5, %v842_v47 }
 0x10a   : > { %1500 = vmatpush.msrb.mxu3 %v2955_v46  ;;  %v3067_v17 = vpop.eup %2391  ;;  %v412_v39 = vadd.f32 %v2922_v62, %v368_v56 }
 0x10b   : > { %v1104_v28 = vadd.f32 %v1103_v8, %v1062_v41  ;;  %v856_v16 = vmul.f32 %v3067_v17, %v3039_v13  ;;  %2395 = vrcp.f32 %v3065_v51  ;;  %v444_v8 = vadd.f32 %v2907_v55, %v402_v3 }
 0x10c   : > { %1502 = vmatpush.msrb.mxu3 %v2977_v18  ;;  %v450_v60 = vadd.f32 %v2916_v59, %v407_v57  ;;  %v844_v48 = vadd.f32 %v3047_v5, %v843_v23  ;;  %v3094_v59 = vadd.f32 %v2924_v63, %v412_v39  ;;  %v849_v3 = vand.u32 2147483647, %v2992_v25 }
 0x10d   : > { %v2968_v32 = vpop.f32.mrf.mxu0  ;;  %v495_v58 = vadd.f32 %v2934_v10, %v444_v8  ;;  %v857_v41 = vsub.f32 1.0, %v856_v16  ;;  %v864_v63 = vand.u32 2147483647, %v3039_v13  ;;  %v1233_v16 = vld [vmem:[#allocation2 + $0x18] sm:$0xff]  ;;  %vm861_vm7 = vweird.f32 %v3067_v17 }
 0x10e   : > { %v2979_v22 = vpop.f32.mrf.mxu1  ;;  %v1066_v35 = vpop.f32.mrf.mxu2  ;;  %1504 = vmatpush.msrb.mxu3 %v2989_v24  ;;  %v499_v10 = vadd.f32 %v2938_v26, %v450_v60  ;;  %vm850_vm4 = vcmp.eq.f32.partialorder %v849_v3, 8.507059e+37  ;;  %vm3153_vm8 = vmor %vm860_vm5, %vm861_vm7  ;;  %vm875_vm10 = vweird.f32 %v3065_v51 }
 0x10f   : > { %v1024_v52 = vadd.f32 %v2979_v22, %v2968_v32  ;;  %v1109_v53 = vpop.f32.mrf.mxu3  ;;  %v2394_v9 = vpop.eup %2393  ;;  %v858_v57 = vmul.f32 %v3067_v17, %v857_v41  ;;  %vm3125_vm6 = vcmp.eq.f32.partialorder %v864_v63, 8.507059e+37  ;;  %v1230_v63 = vld [vmem:[#allocation2] sm:$0xff] }
 0x110   : > { %1506 = vmatpush.msrb.mxu3 %v3007_v38  ;;  %v3087_v55 = vadd.f32 1.0, %v2394_v9  ;;  %v3110_v26 = vadd.f32 %v2940_v29, %v499_v10  ;;  %v866_v29 = vand.u32 2147483648, %v3039_v13 }
 0x111   : > { %v1067_v32 = vadd.f32 %v1066_v35, %v1024_v52  ;;  %v3091_v47 = vpop.eup %2395  ;;  %v3101_v52 = vadd.f32 %v2928_v1, %v2926_v0  ;;  %v848_v0 = vsel %vm3104_vm3, %v3047_v5, %v844_v48  ;;  %v859_v41 = vadd.f32 %v3067_v17, %v858_v57  ;;  %v1231_v48 = vld [vmem:[#allocation2 + $0x8] sm:$0xff] }
 0x112   : > { %vm876_vm9 = vweird.f32 %v3091_v47  ;;  %vm890_vm14 = vweird.f32 %v3087_v55 }
 0x113   : > { %v1110_v35 = vadd.f32 %v1109_v53, %v1067_v32  ;;  %v532_v53 = vadd.f32 %v2936_v11, %v495_v58  ;;  %v871_v11 = vmul.f32 %v3091_v47, %v3065_v51  ;;  %v863_v13 = vsel %vm3153_vm8, %v3067_v17, %v859_v41  ;;  %vm3213_vm11 = vmor %vm875_vm10, %vm876_vm9 }
 0x115   : > { %v2994_v30 = vpop.f32.mrf.mxu0 }
 0x116   : > { %v3025_v50 = vpop.f32.mrf.mxu1  ;;  %v1071_v37 = vpop.f32.mrf.mxu2 }
 0x117   : > { %v1028_v62 = vadd.f32 %v3025_v50, %v2994_v30  ;;  %v1115_v56 = vpop.f32.mrf.mxu3  ;;  %v867_v30 = vor.u32 1.1754944e-38, %v866_v29 }
 0x119   : > { %v868_v41 = vsel %vm3125_vm6, %v867_v30, %v863_v13 }
 0x11d   : > { %v3041_v21 = vpop.f32.mrf.mxu0 }
 0x11e   : > { %v3057_v36 = vpop.f32.mrf.mxu1  ;;  %v1076_v60 = vpop.f32.mrf.mxu2 }
 0x11f   : > { %v1032_v5 = vadd.f32 %v3057_v36, %v3041_v21  ;;  %v872_v21 = vsub.f32 1.0, %v871_v11 }
 0x125   : > { %v1154_v45 = vpop.f32.mrf.mxu0 }
 0x126   : > { %v1155_v40 = vadd.f32 %v1154_v45, %v1104_v28  ;;  %v1191_v54 = vpop.f32.mrf.mxu1  ;;  %v851_v45 = vand.u32 2147483648, %v2992_v25 }
 0x128   : > { %v1192_v22 = vadd.f32 %v1191_v54, %v1155_v40  ;;  %v852_v1 = vor.u32 1.1754944e-38, %v851_v45  ;;  %v1072_v40 = vadd.f32 %v1071_v37, %v1028_v62  ;;  %v3121_v54 = vand.u32 4294901760, %v1233_v16  ;;  %v1232_v37 = vld [vmem:[#allocation2 + $0x10] sm:$0xff] }
 0x129   : > { %v3139_v62 = vand.u32 4294901760, %v1231_v48 }
 0x12a   : > { %v1206_v61 = vmul.f32 1.442695, %v1192_v22  ;;  %v853_v32 = vsel %vm850_vm4, %v852_v1, %v848_v0  ;;  %1537 = vmatpush.msra.mxu0 %v3121_v54  ;;  %v1116_v36 = vadd.f32 %v1115_v56, %v1072_v40  ;;  %v881_v56 = vand.u32 2147483648, %v3065_v51 }
 0x12b   : > { %v3160_v40 = vand.u32 4294901760, %v1230_v63 }
 0x12c   : > { %2397 = vpow2.f32 %v1206_v61  ;;  %v3132_v61 = vsub.f32 %v1233_v16, %v3121_v54  ;;  %v1121_v16 = vpop.f32.mrf.mxu3 }
 0x12d   : > { %v1158_v28 = vpop.f32.mrf.mxu0  ;;  %2399 = vrcp.f32 %v3087_v55 }
 0x12e   : > { %v1159_v50 = vadd.f32 %v1158_v28, %v1110_v35  ;;  %v1195_v25 = vpop.f32.mrf.mxu1  ;;  %v3134_v28 = vand.u32 4294901760, %v1232_v37  ;;  %v1591_v35 = vand.u32 4294901760, %v3132_v61 }
 0x130   : > { %v1196_v23 = vadd.f32 %v1195_v25, %v1159_v50  ;;  %1539 = vmatpush.msra.mxu0 %v3134_v28  ;;  %v3142_v10 = vsub.f32 %v1232_v37, %v3134_v28  ;;  %v1592_v25 = vsub.f32 %v3132_v61, %v1591_v35 }
 0x132   : > { %v2398_v8 = vpop.eup %2397  ;;  %v1208_v9 = vmul.f32 1.442695, %v1196_v23  ;;  %1541 = vmatpush.msra.mxu0 %v3139_v62  ;;  %v1597_v11 = vand.u32 4294901760, %v3142_v10  ;;  %v873_v23 = vmul.f32 %v3091_v47, %v872_v21  ;;  %v3179_v21 = vsub.f32 %v1230_v63, %v3160_v40 }
 0x133   : > { %v1214_v58 = vsub.f32 %v532_v53, %v2398_v8  ;;  %v3144_v3 = vpop.eup %2399  ;;  %v1077_v53 = vadd.f32 %v1076_v60, %v1032_v5 }
 0x134   : > { %2401 = vpow2.f32 %v1208_v9  ;;  %v886_v5 = vmul.f32 %v3144_v3, %v3087_v55  ;;  %v1593_v9 = vand.u32 4294901760, %v1592_v25  ;;  %1543 = vmatpush.msra.mxu0 %v3160_v40  ;;  %v874_v30 = vadd.f32 %v3091_v47, %v873_v23 }
 0x135   : > { %v1162_v39 = vpop.f32.mrf.mxu0  ;;  %v1218_v45 = vmul.f32 %v1214_v58, %v853_v32  ;;  %vm891_vm13 = vweird.f32 %v3144_v3 }
 0x136   : > { %v1163_v50 = vadd.f32 %v1162_v39, %v1116_v36  ;;  %v1199_v1 = vpop.f32.mrf.mxu1  ;;  %v1598_v39 = vsub.f32 %v3142_v10, %v1597_v11  ;;  %v1122_v36 = vadd.f32 %v1121_v16, %v1077_v53  ;;  %1594 = vmatpush.msra.mxu1 %v1593_v9  ;;  %v1609_v53 = vand.u32 4294901760, %v3179_v21  ;;  %vm3258_vm15 = vmor %vm890_vm14, %vm891_vm13 }
 0x137   : > { %v3147_v57 = vadd.f32 %v2398_v8, %v1218_v45  ;;  %v3167_v8 = vsub.f32 %v1231_v48, %v3139_v62  ;;  %v417_v9 = vadd.f32 %v2930_v2, %v3101_v52  ;;  %v878_v52 = vsel %vm3213_vm11, %v3091_v47, %v874_v30 }
 0x138   : > { %v1200_v29 = vadd.f32 %v1199_v1, %v1163_v50  ;;  %v1599_v50 = vand.u32 4294901760, %v1598_v39  ;;  %v887_v1 = vsub.f32 1.0, %v886_v5  ;;  %v1610_v13 = vsub.f32 %v3179_v21, %v1609_v53 }
 0x139   : > { %v1235_v32 = vsel %vm255_vm0, %v3147_v57, 0  ;;  %v1603_v17 = vand.u32 4294901760, %v3167_v8  ;;  %v879_v5 = vand.u32 2147483647, %v3065_v51  ;;  %v462_v51 = vadd.f32 %v2932_v6, %v417_v9 }
 0x13a   : > { %v2402_v37 = vpop.eup %2401  ;;  %v3175_v60 = vand.u32 4294901760, %v1235_v32  ;;  %v1210_v58 = vmul.f32 1.442695, %v1200_v29  ;;  %1600 = vmatpush.msra.mxu1 %v1599_v50  ;;  %v503_v29 = vadd.f32 %v2942_v33, %v3094_v59  ;;  %v894_v6 = vand.u32 2147483647, %v3087_v55 }
 0x13b   : > { %v1215_v48 = vsub.f32 %v3110_v26, %v2402_v37  ;;  %v1604_v63 = vsub.f32 %v3167_v8, %v1603_v17  ;;  %vm880_vm12 = vcmp.eq.f32.partialorder %v879_v5, 8.507059e+37  ;;  %v507_v30 = vadd.f32 %v2946_v7, %v462_v51 }
 0x13c   : > { %2403 = vpow2.f32 %v1210_v58  ;;  %1336 = vmatmul.f32.vlgmr.msra.gmra.mxu3 %v3175_v60  ;;  %v3186_v0 = vsub.f32 %v1235_v32, %v3175_v60  ;;  %v540_v58 = vadd.f32 %v2944_v14, %v503_v29  ;;  %vm895_vm1 = vcmp.eq.f32.partialorder %v894_v6, 8.507059e+37 }
 0x13d   : > { %v1166_v45 = vpop.f32.mrf.mxu0  ;;  %v1219_v22 = vmul.f32 %v1215_v48, %v868_v41  ;;  %1688 = vmatpush.msra.mxu3 %v3121_v54  ;;  %v1605_v16 = vand.u32 4294901760, %v1604_v63  ;;  %v882_v48 = vor.u32 1.1754944e-38, %v881_v56 }
 0x13e   : > { %v1167_v26 = vadd.f32 %v1166_v45, %v1122_v36  ;;  %1378 = vmatmul.f32.vlgmr.msrb.gmra.mxu0 %v3186_v0  ;;  %v3197_v25 = vand.u32 4294901760, %v3186_v0  ;;  %v1203_v32 = vpop.f32.mrf.mxu1 }
 0x13f   : > { %v3204_v23 = vadd.f32 %v2402_v37, %v1219_v22  ;;  %1690 = vmatpush.msra.mxu3 %v3134_v28  ;;  %1735 = vmatpush.msrb.mxu0 %v1591_v35  ;;  %v1611_v37 = vand.u32 4294901760, %v1610_v13  ;;  %v888_v35 = vmul.f32 %v3144_v3, %v887_v1  ;;  %v883_v63 = vsel %vm880_vm12, %v882_v48, %v878_v52 }
 0x140   : > { %v1204_v33 = vadd.f32 %v1203_v32, %v1167_v26  ;;  %1420 = vmatmul.f32.vlgmr.msrb.gmra.mxu1 %v3197_v25  ;;  %v1269_v59 = vsub.f32 %v3186_v0, %v3197_v25 }
 0x141   : > { %v1238_v2 = vsel %vm255_vm0, %v3204_v23, 0  ;;  %1606 = vmatpush.msra.mxu1 %v1605_v16  ;;  %1692 = vmatpush.msra.mxu3 %v3139_v62  ;;  %v889_v1 = vadd.f32 %v3144_v3, %v888_v35 }
 0x142   : > { %v2404_v36 = vpop.eup %2403  ;;  %v3228_v41 = vand.u32 4294901760, %v1238_v2  ;;  %v1212_v45 = vmul.f32 1.442695, %v1204_v33  ;;  %v3232_v14 = vand.u32 4294901760, %v1269_v59  ;;  %1739 = vmatpush.msrb.mxu0 %v1597_v11  ;;  %v896_v11 = vand.u32 2147483648, %v3087_v55 }
 0x143   : > { %v1216_v50 = vsub.f32 %v540_v58, %v2404_v36  ;;  %1612 = vmatpush.msra.mxu1 %v1611_v37  ;;  %1694 = vmatpush.msra.mxu3 %v3160_v40  ;;  %v893_v55 = vsel %vm3258_vm15, %v3144_v3, %v889_v1 }
 0x144   : > { %2405 = vpow2.f32 %v1212_v45  ;;  %1271 = vmatmul.f32.vlgmr.msra.gmra.mxu2 %v3232_v14  ;;  %1340 = vmatmul.f32.gmra.mxu3 %v3228_v41  ;;  %v3238_v47 = vsub.f32 %v1238_v2, %v3228_v41  ;;  %v897_v13 = vor.u32 1.1754944e-38, %v896_v11 }
 0x145   : > { %v1220_v56 = vmul.f32 %v1216_v50, %v883_v63  ;;  %1644 = vmatpush.msra.mxu2 %v3132_v61  ;;  %1778 = vmatpush.msrb.mxu1 %v3121_v54  ;;  %v544_v61 = vadd.f32 %v2948_v34, %v507_v30 }
 0x146   : > { %1383 = vmatmul.f32.gmra.mxu0 %v3238_v47  ;;  %v3248_v22 = vand.u32 4294901760, %v3238_v47  ;;  %v898_v5 = vsel %vm895_vm1, %v897_v13, %v893_v55 }
 0x147   : > { %v3251_v26 = vadd.f32 %v2404_v36, %v1220_v56  ;;  %1647 = vmatpush.msra.mxu2 %v3142_v10  ;;  %1743 = vmatpush.msrb.mxu0 %v1603_v17 }
 0x148   : > { %1426 = vmatmul.f32.gmra.mxu1 %v3248_v22  ;;  %v1277_v7 = vsub.f32 %v3238_v47, %v3248_v22 }
 0x149   : > { %v1241_v16 = vsel %vm255_vm0, %v3251_v26, 0  ;;  %1650 = vmatpush.msra.mxu2 %v3167_v8  ;;  %1780 = vmatpush.msrb.mxu1 %v3134_v28 }
 0x14a   : > { %v2406_v10 = vpop.eup %2405  ;;  %v3273_v17 = vand.u32 4294901760, %v1241_v16  ;;  %v1278_v29 = vand.u32 4294901760, %v1277_v7  ;;  %1747 = vmatpush.msrb.mxu0 %v1609_v53 }
 0x14b   : > { %v1217_v34 = vsub.f32 %v544_v61, %v2406_v10  ;;  %1653 = vmatpush.msra.mxu2 %v3179_v21  ;;  %1782 = vmatpush.msrb.mxu1 %v3139_v62 }
 0x14c   : > { %1279 = vmatmul.f32.gmra.mxu2 %v1278_v29  ;;  %1344 = vmatmul.f32.gmra.mxu3 %v3273_v17  ;;  %v3281_v28 = vsub.f32 %v1241_v16, %v3273_v17 }
 0x14d   : > { %v1221_v3 = vmul.f32 %v1217_v34, %v898_v5  ;;  %1784 = vmatpush.msrb.mxu1 %v3160_v40 }
 0x14e   : > { %1388 = vmatmul.f32.gmra.mxu0 %v3281_v28  ;;  %v3286_v8 = vand.u32 4294901760, %v3281_v28 }
 0x14f   : > { %v3288_v53 = vadd.f32 %v2406_v10, %v1221_v3 }
 0x150   : > { %1432 = vmatmul.f32.gmra.mxu1 %v3286_v8  ;;  %v1285_v62 = vsub.f32 %v3281_v28, %v3286_v8 }
 0x151   : > { %v1244_v21 = vsel %vm255_vm0, %v3288_v53, 0 }
 0x152   : > { %v3295_v32 = vand.u32 4294901760, %v1244_v21  ;;  %v1286_v9 = vand.u32 4294901760, %v1285_v62 }
 0x154   : > { %1287 = vmatmul.f32.gmra.mxu2 %v1286_v9  ;;  %1348 = vmatmul.f32.gmra.mxu3 %v3295_v32  ;;  %v3299_v40 = vsub.f32 %v1244_v21, %v3295_v32 }
 0x156   : > { %1393 = vmatmul.f32.gmra.mxu0 %v3299_v40  ;;  %v3303_v39 = vand.u32 4294901760, %v3299_v40 }
 0x158   : > { %1438 = vmatmul.f32.gmra.mxu1 %v3303_v39  ;;  %v1293_v33 = vsub.f32 %v3299_v40, %v3303_v39 }
 0x15a   : > { %v1294_v59 = vand.u32 4294901760, %v1293_v33 }
 0x15c   : > { %1295 = vmatmul.f32.gmra.mxu2 %v1294_v59  ;;  %1508 = vmatmul.f32.vlgmr.msrb.gmra.mxu3 %v3175_v60 }
 0x15d   : > { %1976 = vmatpush.msrb.mxu3 %v2972_v20 }
 0x15e   : > { %1549 = vmatmul.f32.vlgmr.msra.gmra.mxu0 %v3232_v14 }
 0x15f   : > { %1982 = vmatpush.msrb.mxu3 %v3021_v44  ;;  %2026 = vmatpush.msra.mxu0 %v2961_v49  ;;  %v1878_v49 = vand.u32 2147483647, %v3147_v57 }
 0x160   : > { %1614 = vmatmul.f32.vlgmr.msra.gmra.mxu1 %v3175_v60 }
 0x161   : > { %1988 = vmatpush.msrb.mxu3 %v3035_v15  ;;  %2029 = vmatpush.msra.mxu0 %v2987_v12  ;;  %v1882_v20 = vadd.f32 1e-10, %v1878_v49  ;;  %v1879_v12 = vand.u32 2147483647, %v3204_v23 }
 0x162   : > { %2070 = vmatpush.msra.mxu1 %v2955_v46 }
 0x163   : > { %1994 = vmatpush.msrb.mxu3 %v3045_v4  ;;  %2032 = vmatpush.msra.mxu0 %v3005_v27  ;;  %2407 = vlog2.f32 %v1882_v20 }
 0x164   : > { %1471 = vmatmul.f32.vlgmr.msrb.gmra.mxu2 %v3175_v60  ;;  %1512 = vmatmul.f32.gmra.mxu3 %v3228_v41 }
 0x165   : > { %1919 = vmatpush.msrb.mxu2 %v2955_v46  ;;  %2072 = vmatpush.msra.mxu1 %v2977_v18 }
 0x166   : > { %1557 = vmatmul.f32.gmra.mxu0 %v1278_v29 }
 0x167   : > { %1921 = vmatpush.msrb.mxu2 %v2977_v18  ;;  %2035 = vmatpush.msra.mxu0 %v3016_v43 }
 0x168   : > { %1618 = vmatmul.f32.gmra.mxu1 %v3228_v41 }
 0x169   : > { %1923 = vmatpush.msrb.mxu2 %v2989_v24  ;;  %2074 = vmatpush.msra.mxu1 %v2989_v24 }
 0x16b   : > { %1925 = vmatpush.msrb.mxu2 %v3007_v38  ;;  %2076 = vmatpush.msra.mxu1 %v3007_v38 }
 0x16c   : > { %1475 = vmatmul.f32.gmra.mxu2 %v3228_v41  ;;  %1516 = vmatmul.f32.gmra.mxu3 %v3273_v17 }
 0x16e   : > { %1565 = vmatmul.f32.gmra.mxu0 %v1286_v9 }
 0x170   : > { %1622 = vmatmul.f32.gmra.mxu1 %v3273_v17 }
 0x174   : > { %1479 = vmatmul.f32.gmra.mxu2 %v3273_v17  ;;  %1520 = vmatmul.f32.gmra.mxu3 %v3295_v32 }
 0x176   : > { %1573 = vmatmul.f32.gmra.mxu0 %v1294_v59 }
 0x178   : > { %1626 = vmatmul.f32.gmra.mxu1 %v3295_v32 }
 0x17c   : > { %1483 = vmatmul.f32.gmra.mxu2 %v3295_v32  ;;  %1698 = vmatmul.f32.vlgmr.msra.gmra.mxu3 %v3197_v25 }
 0x17d   : > { %2160 = vmatpush.msra.mxu3 %v2955_v46  ;;  %v1883_v46 = vadd.f32 1e-10, %v1879_v12 }
 0x17e   : > { %1749 = vmatmul.f32.vlgmr.msrb.gmra.mxu0 %v3175_v60 }
 0x17f   : > { %2162 = vmatpush.msra.mxu3 %v2977_v18  ;;  %v2408_v18 = vpop.eup %2407  ;;  %2409 = vlog2.f32 %v1883_v46 }
 0x180   : > { %1786 = vmatmul.f32.vlgmr.msrb.gmra.mxu1 %v3175_v60  ;;  %v1887_v27 = vmul.f32 0.6931472, %v2408_v18 }
 0x181   : > { %2164 = vmatpush.msra.mxu3 %v2989_v24  ;;  %v1880_v24 = vand.u32 2147483647, %v3251_v26 }
 0x183   : > { %2166 = vmatpush.msra.mxu3 %v3007_v38  ;;  %v3496_v38 = vld [vmem:[#allocation8_spill] sm:$0xff] }
 0x184   : > { %1656 = vmatmul.f32.vlgmr.msra.gmra.mxu2 %v3186_v0  ;;  %1704 = vmatmul.f32.gmra.mxu3 %v3248_v22 }
 0x185   : > { %2117 = vmatpush.msra.mxu2 %v2965_v19  ;;  %v1884_v19 = vadd.f32 1e-10, %v1880_v24  ;;  %v2410_v43 = vpop.eup %2409 }
 0x186   : > { %1753 = vmatmul.f32.gmra.mxu0 %v3228_v41  ;;  %v1889_v15 = vmul.f32 0.6931472, %v2410_v43 }
 0x187   : > { %2121 = vmatpush.msra.mxu2 %v2997_v31  ;;  %v1895_v31 = vsel %vm255_vm0, %v1887_v27, 0  ;;  %2411 = vlog2.f32 %v1884_v19 }
 0x188   : > { %1790 = vmatmul.f32.gmra.mxu1 %v3228_v41  ;;  %v1926_v44 = vand.u32 4294901760, %v1895_v31  ;;  %v1898_v60 = vsel %vm255_vm0, %v1889_v15, 0 }
 0x189   : > { %2125 = vmatpush.msra.mxu2 %v3013_v42  ;;  %v1881_v42 = vand.u32 2147483647, %v3288_v53  ;;  %v1934_v23 = vand.u32 4294901760, %v1898_v60 }
 0x18a   : > { %v1927_v57 = vsub.f32 %v1895_v31, %v1926_v44 }
 0x18b   : > { %2129 = vmatpush.msra.mxu2 %v3496_v38  ;;  %v1885_v4 = vadd.f32 1e-10, %v1881_v42  ;;  %v1935_v35 = vsub.f32 %v1898_v60, %v1934_v23 }
 0x18c   : > { %1661 = vmatmul.f32.gmra.mxu2 %v3238_v47  ;;  %1710 = vmatmul.f32.gmra.mxu3 %v3286_v8  ;;  %v1928_v25 = vand.u32 4294901760, %v1927_v57 }
 0x18d   : > { %v2412_v0 = vpop.eup %2411  ;;  %2413 = vlog2.f32 %v1885_v4  ;;  %v1936_v41 = vand.u32 4294901760, %v1935_v35 }
 0x18e   : > { %1757 = vmatmul.f32.gmra.mxu0 %v3273_v17  ;;  %v1891_v37 = vmul.f32 0.6931472, %v2412_v0  ;;  %v1929_v58 = vsub.f32 %v1927_v57, %v1928_v25 }
 0x18f   : > { %v1937_v14 = vsub.f32 %v1935_v35, %v1936_v41 }
 0x190   : > { %1794 = vmatmul.f32.gmra.mxu1 %v3273_v17  ;;  %v1901_v2 = vsel %vm255_vm0, %v1891_v37, 0  ;;  %v1930_v36 = vand.u32 4294901760, %v1929_v58 }
 0x191   : > { %v1942_v48 = vand.u32 4294901760, %v1901_v2  ;;  %v1938_v47 = vand.u32 4294901760, %v1937_v14 }
 0x193   : > { %v2414_v52 = vpop.eup %2413  ;;  %v1943_v50 = vsub.f32 %v1901_v2, %v1942_v48 }
 0x194   : > { %1666 = vmatmul.f32.gmra.mxu2 %v3281_v28  ;;  %1716 = vmatmul.f32.gmra.mxu3 %v3303_v39  ;;  %v1893_v45 = vmul.f32 0.6931472, %v2414_v52 }
 0x195   : > { %v1944_v51 = vand.u32 4294901760, %v1943_v50 }
 0x196   : > { %1761 = vmatmul.f32.gmra.mxu0 %v3295_v32  ;;  %v1904_v63 = vsel %vm255_vm0, %v1893_v45, 0 }
 0x197   : > { %v1950_v56 = vand.u32 4294901760, %v1904_v63  ;;  %v1945_v1 = vsub.f32 %v1943_v50, %v1944_v51 }
 0x198   : > { %1798 = vmatmul.f32.gmra.mxu1 %v3295_v32 }
 0x199   : > { %v1951_v11 = vsub.f32 %v1904_v63, %v1950_v56  ;;  %v1946_v22 = vand.u32 4294901760, %v1945_v1 }
 0x19b   : > { %v1952_v30 = vand.u32 4294901760, %v1951_v11 }
 0x19c   : > { %1671 = vmatmul.f32.gmra.mxu2 %v3299_v40  ;;  %1996 = vmatmul.f32.vlgmr.msrb.gmra.mxu3 %v1926_v44 }
 0x19d   : > { %v1953_v26 = vsub.f32 %v1951_v11, %v1952_v30 }
 0x19e   : > { %2038 = vmatmul.f32.vlgmr.msra.gmra.mxu0 %v1927_v57 }
 0x19f   : > { %v1954_v6 = vand.u32 4294901760, %v1953_v26 }
 0x1a0   : > { %2080 = vmatmul.f32.vlgmr.msra.gmra.mxu1 %v1928_v25 }
 0x1a4   : > { %1931 = vmatmul.f32.vlgmr.msrb.gmra.mxu2 %v1930_v36  ;;  %2000 = vmatmul.f32.gmra.mxu3 %v1934_v23 }
 0x1a6   : > { %2043 = vmatmul.f32.gmra.mxu0 %v1935_v35 }
 0x1a8   : > { %2086 = vmatmul.f32.gmra.mxu1 %v1936_v41 }
 0x1ac   : > { %1939 = vmatmul.f32.gmra.mxu2 %v1938_v47  ;;  %2004 = vmatmul.f32.gmra.mxu3 %v1942_v48 }
 0x1ae   : > { %2048 = vmatmul.f32.gmra.mxu0 %v1943_v50 }
 0x1b0   : > { %2092 = vmatmul.f32.gmra.mxu1 %v1944_v51 }
 0x1b4   : > { %1947 = vmatmul.f32.gmra.mxu2 %v1946_v22  ;;  %2008 = vmatmul.f32.gmra.mxu3 %v1950_v56 }
 0x1b6   : > { %2053 = vmatmul.f32.gmra.mxu0 %v1951_v11 }
 0x1b8   : > { %2098 = vmatmul.f32.gmra.mxu1 %v1952_v30 }
 0x1bb   : > { %v1379_v7 = vpop.f32.mrf.mxu0 }
 0x1bc   : > { %1955 = vmatmul.f32.gmra.mxu2 %v1954_v6  ;;  %2168 = vmatmul.f32.vlgmr.msra.gmra.mxu3 %v1926_v44 }
 0x1bd   : > { %v1421_v61 = vpop.f32.mrf.mxu1 }
 0x1bf   : > { %v1337_v54 = vpop.f32.mrf.mxu3 }
 0x1c3   : > { %v1384_v13 = vpop.f32.mrf.mxu0 }
 0x1c4   : > { %2131 = vmatmul.f32.vlgmr.msra.gmra.mxu2 %v1926_v44  ;;  %2172 = vmatmul.f32.gmra.mxu3 %v1934_v23 }
 0x1c5   : > { %v1427_v34 = vpop.f32.mrf.mxu1 }
 0x1c7   : > { %v1272_v16 = vpop.f32.mrf.mxu2  ;;  %v1341_v55 = vpop.f32.mrf.mxu3 }
 0x1c8   : > { %v1338_v10 = vadd.f32 %v1337_v54, %v1272_v16 }
 0x1ca   : > { %v1380_v17 = vadd.f32 %v1379_v7, %v1338_v10 }
 0x1cb   : > { %v1389_v62 = vpop.f32.mrf.mxu0 }
 0x1cc   : > { %2135 = vmatmul.f32.gmra.mxu2 %v1934_v23  ;;  %2176 = vmatmul.f32.gmra.mxu3 %v1942_v48  ;;  %v1422_v29 = vadd.f32 %v1421_v61, %v1380_v17 }
 0x1cd   : > { %v1433_v40 = vpop.f32.mrf.mxu1 }
 0x1cf   : > { %v1280_v5 = vpop.f32.mrf.mxu2  ;;  %v1345_v28 = vpop.f32.mrf.mxu3 }
 0x1d0   : > { %v1342_v3 = vadd.f32 %v1341_v55, %v1280_v5 }
 0x1d2   : > { %v1385_v8 = vadd.f32 %v1384_v13, %v1342_v3 }
 0x1d3   : > { %v1394_v20 = vpop.f32.mrf.mxu0 }
 0x1d4   : > { %2139 = vmatmul.f32.gmra.mxu2 %v1942_v48  ;;  %2180 = vmatmul.f32.gmra.mxu3 %v1950_v56  ;;  %v1428_v53 = vadd.f32 %v1427_v34, %v1385_v8 }
 0x1d5   : > { %v1439_v18 = vpop.f32.mrf.mxu1 }
 0x1d7   : > { %v1288_v21 = vpop.f32.mrf.mxu2  ;;  %v1349_v32 = vpop.f32.mrf.mxu3 }
 0x1d8   : > { %v1346_v9 = vadd.f32 %v1345_v28, %v1288_v21 }
 0x1da   : > { %v1390_v39 = vadd.f32 %v1389_v62, %v1346_v9 }
 0x1db   : > { %v1550_v31 = vpop.f32.mrf.mxu0 }
 0x1dc   : > { %2143 = vmatmul.f32.gmra.mxu2 %v1950_v56  ;;  %v1434_v33 = vadd.f32 %v1433_v40, %v1390_v39 }
 0x1dd   : > { %v1615_v42 = vpop.f32.mrf.mxu1 }
 0x1de   : > { %v1616_v11 = vadd.f32 %v1615_v42, %v1550_v31 }
 0x1df   : > { %v1296_v59 = vpop.f32.mrf.mxu2  ;;  %v1509_v49 = vpop.f32.mrf.mxu3 }
 0x1e0   : > { %v1350_v12 = vadd.f32 %v1349_v32, %v1296_v59 }
 0x1e2   : > { %v1395_v46 = vadd.f32 %v1394_v20, %v1350_v12 }
 0x1e3   : > { %v1558_v60 = vpop.f32.mrf.mxu0 }
 0x1e4   : > { %v1440_v24 = vadd.f32 %v1439_v18, %v1395_v46 }
 0x1e5   : > { %v1619_v23 = vpop.f32.mrf.mxu1 }
 0x1e6   : > { %v1620_v7 = vadd.f32 %v1619_v23, %v1558_v60 }
 0x1e7   : > { %v1472_v27 = vpop.f32.mrf.mxu2  ;;  %v1513_v38 = vpop.f32.mrf.mxu3 }
 0x1e8   : > { %v1473_v19 = vadd.f32 %v1472_v27, %v1422_v29 }
 0x1ea   : > { %v3369_v43 = vadd.f32 %v1509_v49, %v1473_v19 }
 0x1eb   : > { %v1566_v35 = vpop.f32.mrf.mxu0 }
 0x1ed   : > { %v1623_v41 = vpop.f32.mrf.mxu1 }
 0x1ee   : > { %v1624_v5 = vadd.f32 %v1623_v41, %v1566_v35 }
 0x1ef   : > { %v1476_v44 = vpop.f32.mrf.mxu2  ;;  %v1517_v15 = vpop.f32.mrf.mxu3 }
 0x1f0   : > { %v1477_v4 = vadd.f32 %v1476_v44, %v1428_v53 }
 0x1f2   : > { %v3371_v57 = vadd.f32 %v1513_v38, %v1477_v4 }
 0x1f3   : > { %v1574_v50 = vpop.f32.mrf.mxu0 }
 0x1f5   : > { %v1627_v63 = vpop.f32.mrf.mxu1 }
 0x1f6   : > { %v1628_v40 = vadd.f32 %v1627_v63, %v1574_v50 }
 0x1f7   : > { %v1480_v0 = vpop.f32.mrf.mxu2  ;;  %v1521_v25 = vpop.f32.mrf.mxu3 }
 0x1f8   : > { %v1481_v37 = vadd.f32 %v1480_v0, %v1434_v33 }
 0x1fa   : > { %v3373_v58 = vadd.f32 %v1517_v15, %v1481_v37 }
 0x1fb   : > { %v1750_v56 = vpop.f32.mrf.mxu0 }
 0x1fd   : > { %v1787_v1 = vpop.f32.mrf.mxu1 }
 0x1ff   : > { %v1484_v2 = vpop.f32.mrf.mxu2  ;;  %v1699_v52 = vpop.f32.mrf.mxu3 }
 0x200   : > { %v1485_v36 = vadd.f32 %v1484_v2, %v1440_v24 }
 0x202   : > { %v3375_v48 = vadd.f32 %v1521_v25, %v1485_v36 }
 0x203   : > { %v1754_v6 = vpop.f32.mrf.mxu0 }
 0x205   : > { %v1791_v55 = vpop.f32.mrf.mxu1 }
 0x207   : > { %v1657_v45 = vpop.f32.mrf.mxu2  ;;  %v1705_v14 = vpop.f32.mrf.mxu3 }
 0x208   : > { %v1658_v26 = vadd.f32 %v1657_v45, %v1616_v11 }
 0x20a   : > { %v1700_v54 = vadd.f32 %v1699_v52, %v1658_v26 }
 0x20b   : > { %v1758_v34 = vpop.f32.mrf.mxu0 }
 0x20c   : > { %v1751_v10 = vadd.f32 %v1750_v56, %v1700_v54 }
 0x20d   : > { %v1795_v21 = vpop.f32.mrf.mxu1 }
 0x20e   : > { %v1788_v13 = vadd.f32 %v1787_v1, %v1751_v10 }
 0x20f   : > { %v1662_v47 = vpop.f32.mrf.mxu2  ;;  %v1711_v51 = vpop.f32.mrf.mxu3 }
 0x210   : > { %v1663_v17 = vadd.f32 %v1662_v47, %v1620_v7  ;;  %v2311_v8 = vmul.f32 -1.442695, %v1788_v13 }
 0x212   : > { %v1706_v29 = vadd.f32 %v1705_v14, %v1663_v17  ;;  %2415 = vpow2.f32 %v2311_v8 }
 0x213   : > { %v1762_v49 = vpop.f32.mrf.mxu0 }
 0x214   : > { %v1755_v53 = vadd.f32 %v1754_v6, %v1706_v29 }
 0x215   : > { %v1799_v18 = vpop.f32.mrf.mxu1 }
 0x216   : > { %v1792_v32 = vadd.f32 %v1791_v55, %v1755_v53 }
 0x217   : > { %v1667_v22 = vpop.f32.mrf.mxu2  ;;  %v1717_v30 = vpop.f32.mrf.mxu3 }
 0x218   : > { %v1668_v62 = vadd.f32 %v1667_v22, %v1624_v5  ;;  %v2312_v59 = vmul.f32 -1.442695, %v1792_v32  ;;  %v2416_v46 = vpop.eup %2415 }
 0x219   : > { %v3377_v38 = vadd.f32 1.0, %v2416_v46 }
 0x21a   : > { %v1712_v9 = vadd.f32 %v1711_v51, %v1668_v62  ;;  %2417 = vpow2.f32 %v2312_v59 }
 0x21b   : > { %2419 = vrcp.f32 %v3377_v38  ;;  %v2039_v4 = vpop.f32.mrf.mxu0  ;;  %vm1823_vm2 = vweird.f32 %v3377_v38  ;;  %v1827_v53 = vand.u32 2147483647, %v3377_v38 }
 0x21c   : > { %v1759_v20 = vadd.f32 %v1758_v34, %v1712_v9 }
 0x21d   : > { %v2081_v23 = vpop.f32.mrf.mxu1  ;;  %vm1828_vm4 = vcmp.eq.f32.partialorder %v1827_v53, 8.507059e+37 }
 0x21e   : > { %v1796_v24 = vadd.f32 %v1795_v21, %v1759_v20 }
 0x21f   : > { %v1672_v61 = vpop.f32.mrf.mxu2  ;;  %v1997_v16 = vpop.f32.mrf.mxu3 }
 0x220   : > { %v1673_v12 = vadd.f32 %v1672_v61, %v1628_v40  ;;  %v2313_v31 = vmul.f32 -1.442695, %v1796_v24  ;;  %v2418_v15 = vpop.eup %2417 }
 0x221   : > { %v3382_v0 = vadd.f32 1.0, %v2418_v15  ;;  %v2420_v35 = vpop.eup %2419 }
 0x222   : > { %v1718_v27 = vadd.f32 %v1717_v30, %v1673_v12  ;;  %2421 = vpow2.f32 %v2313_v31  ;;  %v1819_v41 = vmul.f32 %v2420_v35, %v3377_v38  ;;  %vm1824_vm0 = vweird.f32 %v2420_v35 }
 0x223   : > { %2423 = vrcp.f32 %v3382_v0  ;;  %v2044_v14 = vpop.f32.mrf.mxu0  ;;  %vm1825_vm3 = vmor %vm1823_vm2, %vm1824_vm0  ;;  %v1844_v15 = vand.u32 2147483648, %v3382_v0  ;;  %vm1838_vm6 = vweird.f32 %v3382_v0 }
 0x224   : > { %v1763_v42 = vadd.f32 %v1762_v49, %v1718_v27  ;;  %v1820_v51 = vsub.f32 1.0, %v1819_v41 }
 0x225   : > { %v2087_v22 = vpop.f32.mrf.mxu1 }
 0x226   : > { %v1800_v60 = vadd.f32 %v1799_v18, %v1763_v42  ;;  %v1821_v7 = vmul.f32 %v2420_v35, %v1820_v51 }
 0x227   : > { %v1932_v28 = vpop.f32.mrf.mxu2  ;;  %v2001_v3 = vpop.f32.mrf.mxu3 }
 0x228   : > { %v1998_v25 = vadd.f32 %v1997_v16, %v1932_v28  ;;  %v2314_v2 = vmul.f32 -1.442695, %v1800_v60  ;;  %v2422_v36 = vpop.eup %2421  ;;  %v1822_v34 = vadd.f32 %v2420_v35, %v1821_v7 }
 0x229   : > { %v3386_v50 = vadd.f32 1.0, %v2422_v36  ;;  %v3388_v1 = vpop.eup %2423  ;;  %v1845_v36 = vor.u32 1.1754944e-38, %v1844_v15 }
 0x22a   : > { %v2040_v52 = vadd.f32 %v2039_v4, %v1998_v25  ;;  %2425 = vpow2.f32 %v2314_v2  ;;  %v1834_v54 = vmul.f32 %v3388_v1, %v3382_v0  ;;  %v1826_v40 = vsel %vm1825_vm3, %v2420_v35, %v1822_v34 }
 0x22b   : > { %2427 = vrcp.f32 %v3386_v50  ;;  %v2049_v29 = vpop.f32.mrf.mxu0  ;;  %vm1839_vm5 = vweird.f32 %v3388_v1  ;;  %vm1853_vm10 = vweird.f32 %v3386_v50 }
 0x22c   : > { %v2082_v47 = vadd.f32 %v2081_v23, %v2040_v52  ;;  %v1835_v13 = vsub.f32 1.0, %v1834_v54  ;;  %vm1840_vm7 = vmor %vm1838_vm6, %vm1839_vm5 }
 0x22d   : > { %v2093_v9 = vpop.f32.mrf.mxu1 }
 0x22f   : > { %v1940_v39 = vpop.f32.mrf.mxu2  ;;  %v2005_v33 = vpop.f32.mrf.mxu3 }
 0x230   : > { %v2002_v63 = vadd.f32 %v2001_v3, %v1940_v39  ;;  %v2426_v6 = vpop.eup %2425  ;;  %v1829_v3 = vand.u32 2147483648, %v3377_v38  ;;  %v1836_v39 = vmul.f32 %v3388_v1, %v1835_v13 }
 0x231   : > { %v3393_v55 = vadd.f32 1.0, %v2426_v6  ;;  %v3395_v28 = vpop.eup %2427 }
 0x232   : > { %v2045_v30 = vadd.f32 %v2044_v14, %v2002_v63  ;;  %v1849_v32 = vmul.f32 %v3395_v28, %v3386_v50  ;;  %v1830_v59 = vor.u32 1.1754944e-38, %v1829_v3  ;;  %v1837_v38 = vadd.f32 %v3388_v1, %v1836_v39 }
 0x233   : > { %v2054_v60 = vpop.f32.mrf.mxu0  ;;  %vm1854_vm9 = vweird.f32 %v3395_v28  ;;  %v1874_v34 = vand.u32 2147483648, %v3393_v55  ;;  %vm1868_vm14 = vweird.f32 %v3393_v55 }
 0x234   : > { %v2088_v17 = vadd.f32 %v2087_v22, %v2045_v30  ;;  %v1831_v46 = vsel %vm1828_vm4, %v1830_v59, %v1826_v40  ;;  %v1850_v24 = vsub.f32 1.0, %v1849_v32  ;;  %v1841_v35 = vsel %vm1840_vm7, %v3388_v1, %v1837_v38  ;;  %vm1855_vm11 = vmor %vm1853_vm10, %vm1854_vm9 }
 0x236   : > { %v1851_v2 = vmul.f32 %v3395_v28, %v1850_v24 }
 0x237   : > { %v1948_v19 = vpop.f32.mrf.mxu2  ;;  %v3379_v44 = vpop.f32.mrf.mxu3 }
 0x238   : > { %v2006_v10 = vadd.f32 %v2005_v33, %v1948_v19 }
 0x23a   : > { %v2050_v62 = vadd.f32 %v2049_v29, %v2006_v10 }
 0x23c   : > { %v2094_v18 = vadd.f32 %v2093_v9, %v2050_v62 }
 0x23f   : > { %v1956_v37 = vpop.f32.mrf.mxu2  ;;  %v2169_v45 = vpop.f32.mrf.mxu3 }
 0x240   : > { %v2010_v12 = vadd.f32 %v3379_v44, %v1956_v37  ;;  %v1842_v44 = vand.u32 2147483647, %v3382_v0 }
 0x242   : > { %v2055_v25 = vadd.f32 %v2054_v60, %v2010_v12  ;;  %vm1843_vm8 = vcmp.eq.f32.partialorder %v1842_v44, 8.507059e+37 }
 0x243   : > { %v1846_v14 = vsel %vm1843_vm8, %v1845_v36, %v1841_v35 }
 0x247   : > { %v2132_v56 = vpop.f32.mrf.mxu2  ;;  %v2173_v16 = vpop.f32.mrf.mxu3 }
 0x248   : > { %v2133_v11 = vadd.f32 %v2132_v56, %v2082_v47  ;;  %v1852_v56 = vadd.f32 %v3395_v28, %v1851_v2 }
 0x24a   : > { %v2170_v26 = vadd.f32 %v2169_v45, %v2133_v11  ;;  %v2099_v45 = vpop.f32.mrf.mxu1  ;;  %v1859_v11 = vand.u32 2147483648, %v3386_v50  ;;  %v1856_v54 = vsel %vm1855_vm11, %v3395_v28, %v1852_v56  ;;  %v1872_v28 = vand.u32 2147483647, %v3393_v55 }
 0x24b   : > { %v2100_v63 = vadd.f32 %v2099_v45, %v2055_v25 }
 0x24c   : > { %v2184_v61 = vmul.f32 1.442695, %v2170_v26  ;;  %v1857_v26 = vand.u32 2147483647, %v3386_v50  ;;  %vm1873_vm1 = vcmp.eq.f32.partialorder %v1872_v28, 8.507059e+37 }
 0x24e   : > { %2429 = vpow2.f32 %v2184_v61  ;;  %vm1858_vm12 = vcmp.eq.f32.partialorder %v1857_v26, 8.507059e+37 }
 0x24f   : > { %v2136_v5 = vpop.f32.mrf.mxu2  ;;  %2431 = vrcp.f32 %v3393_v55  ;;  %v2177_v19 = vpop.f32.mrf.mxu3 }
 0x250   : > { %v2137_v8 = vadd.f32 %v2136_v5, %v2088_v17 }
 0x252   : > { %v2174_v21 = vadd.f32 %v2173_v16, %v2137_v8  ;;  %v1860_v16 = vor.u32 1.1754944e-38, %v1859_v11  ;;  %v1875_v8 = vor.u32 1.1754944e-38, %v1874_v34 }
 0x254   : > { %v2430_v33 = vpop.eup %2429  ;;  %v2186_v49 = vmul.f32 1.442695, %v2174_v21  ;;  %v1861_v13 = vsel %vm1858_vm12, %v1860_v16, %v1856_v54 }
 0x255   : > { %v2192_v20 = vsub.f32 %v3369_v43, %v2430_v33  ;;  %v3411_v42 = vpop.eup %2431 }
 0x256   : > { %2433 = vpow2.f32 %v2186_v49  ;;  %v1864_v37 = vmul.f32 %v3411_v42, %v3393_v55  ;;  %vm1869_vm13 = vweird.f32 %v3411_v42 }
 0x257   : > { %v2196_v27 = vmul.f32 %v2192_v20, %v1831_v46  ;;  %v2140_v31 = vpop.f32.mrf.mxu2  ;;  %vm1870_vm15 = vmor %vm1868_vm14, %vm1869_vm13 }
 0x258   : > { %v2141_v4 = vadd.f32 %v2140_v31, %v2094_v18  ;;  %v1865_v47 = vsub.f32 1.0, %v1864_v37 }
 0x259   : > { %v2200_v43 = vadd.f32 %v2430_v33, %v2196_v27 }
 0x25a   : > { %v2178_v23 = vadd.f32 %v2177_v19, %v2141_v4  ;;  %v1866_v7 = vmul.f32 %v3411_v42, %v1865_v47 }
 0x25b   : > { %2204 = vst [vmem:[%s3418_s11] sm:$0xff] %v2200_v43 }
 0x25c   : > { %v2434_v52 = vpop.eup %2433  ;;  %v2188_v41 = vmul.f32 1.442695, %v2178_v23  ;;  %v1867_v50 = vadd.f32 %v3411_v42, %v1866_v7 }
 0x25d   : > { %v2193_v0 = vsub.f32 %v3371_v57, %v2434_v52  ;;  %v2181_v57 = vpop.f32.mrf.mxu3 }
 0x25e   : > { %2435 = vpow2.f32 %v2188_v41 }
 0x25f   : > { %v2197_v51 = vmul.f32 %v2193_v0, %v1846_v14  ;;  %v2144_v1 = vpop.f32.mrf.mxu2 }
 0x260   : > { %v2145_v22 = vadd.f32 %v2144_v1, %v2100_v63 }
 0x261   : > { %v2201_v30 = vadd.f32 %v2434_v52, %v2197_v51 }
 0x262   : > { %v2182_v6 = vadd.f32 %v2181_v57, %v2145_v22 }
 0x263   : > { %2205 = vst [vmem:[%s3418_s11 + $0x8] sm:$0xff] %v2201_v30 }
 0x264   : > { %v2436_v61 = vpop.eup %2435  ;;  %v2190_v10 = vmul.f32 1.442695, %v2182_v6 }
 0x265   : > { %v2194_v17 = vsub.f32 %v3373_v58, %v2436_v61  ;;  %v1871_v58 = vsel %vm1870_vm15, %v3411_v42, %v1867_v50 }
 0x266   : > { %2437 = vpow2.f32 %v2190_v10  ;;  %v1876_v62 = vsel %vm1873_vm1, %v1875_v8, %v1871_v58 }
 0x267   : > { %v2198_v29 = vmul.f32 %v2194_v17, %v1861_v13 }
 0x269   : > { %v2202_v5 = vadd.f32 %v2436_v61, %v2198_v29 }
 0x26b   : > { %2206 = vst [vmem:[%s3418_s11 + $0x10] sm:$0xff] %v2202_v5 }
 0x26c   : > { %v2438_v3 = vpop.eup %2437 }
 0x26d   : > { %v2195_v53 = vsub.f32 %v3375_v48, %v2438_v3 }
 0x26f   : > { %v2199_v55 = vmul.f32 %v2195_v53, %v1876_v62 }
 0x271   : > { %v2203_v21 = vadd.f32 %v2438_v3, %v2199_v55 }
 0x273   : > { %2207 = vst [vmem:[%s3418_s11 + $0x18] sm:$0xff] %v2203_v21 }
 0x274   : > { %2496 = shalt.err (!%p2493_p8)
}
 0x275   : > { %s2540_s9 = smov 128   ;;  %s2541_s10 = smov 8  }
 0x276   : > { %2325 = dma.vmem_to_hbm [thread:$0]  (%p2610_p5), %s2222_s22, 512, %s2224_s17, %s2209_s16, %s2540_s9, %s2540_s9, %s2541_s10  }
 0x277 PF: > { %p2337_p9 = scmp.ge.s32.totalorder %s2535_s21, 2  ;;  %s2238_s11 = sand.u32 1, %s2523_s18  }
 0x278   : > { %s2239_s12 = scalar_lea.sflag [#allocation4], %s2238_s11 }
 0x279   : > { %p2332_p10 = pnand %p2337_p9, %p2614_p6 }
 0x27b   : > { %p2333_p11 = pneg %p2332_p10 }
 0x27d   : > { %2518 = dma.done.wait (%p2333_p11), %s2239_s12, 512  }
 0x27e   : > { %2520 = vsyncadd (%p2333_p11), %s2239_s12, 4294966784  ;;  %p16_p12 = scmp.ge.s32.totalorder %s2597_s24, 4   ;;  %s3497_s18 = smov %s2527_s19 }
 0x27f   : > { %s3498_s19 = smov %s2531_s20  ;;  %s3499_s20 = smov %s2608_s27 }
 0x280   : > { %s3500_s21 = smov %s2597_s24  ;;  %18 = sbr.rel (!%p16_p12) target bundleno = 4 (0x4), region = 80 }
 0x285   :  { %2245 = vsyncpa [#allocation3], 1 }
 0x286   :  { %2247 = vsyncpa [#allocation3 + $0x1], 1 }
 0x287   :  { %2248 = vsyncpa [#allocation4], 1 }
 0x288   :  { %2250 = vsyncpa [#allocation4 + $0x1], 1 }

// kernel: tpu_custom_call.1
= control target key start
LH: loop header
LB: loop body
LE: loop exit
PB: predicated region body
PF: predicated region fallthrough
CT: control target
= control target key end

     0   :  { %10 = vsyncpa [#allocation3], 0  ;;  %s3476_s0 = inlined_call_operand.vmem [shape: f32[64,32], index: 0, kind: input, shape index: {}]   ;;  %s3477_s1 = inlined_call_operand.vmem [shape: f32[32,32], index: 1, kind: input, shape index: {}]   ;;  %s3478_s2 = inlined_call_operand.vmem [shape: f32[32,32], index: 2, kind: input, shape index: {}]   ;;  %s3479_s3 = inlined_call_operand.vmem [shape: f32[32,128], index: 3, kind: input, shape index: {}]   ;;  %s3480_s4 = inlined_call_operand.hbm [shape: f32[32,128], index: 4, kind: input, shape index: {}]   ;;  %s3481_s5 = inlined_call_operand.hbm [shape: f32[64,128], index: 5, kind: output, shape index: {}]  }
   0x1   :  { %11 = vsyncpa [#allocation4], 0 }
   0x2   :  { %13 = vsyncpa [#allocation4 + $0x1], 0  ;;  %s2572_s18 = smov 0   ;;  %s2574_s19 = smov 0  }
   0x3   :  { %s2576_s20 = smov 0   ;;  %s2578_s21 = smov 0  }
   0x4 LB: > { %s2593_s22 = sadd.s32 4294967295, %s2535_s21   ;;  %s2298_s23 = sadd.s32 4294967294, %s2535_s21   ;;  %s2535_s21 = sphi %s2578_s21, %s3500_s21   ;;  %s2531_s20 = sphi %s2576_s20, %s3499_s20   ;;  %s2527_s19 = sphi %s2574_s19, %s3498_s19   ;;  %s2523_s18 = sphi %s2572_s18, %s3497_s18  }
   0x5   : > { %s2597_s24 = sadd.s32 1, %s2535_s21   ;;  %s136_s25 = sadd.s32 1, %s2531_s20 }
   0x6   : > { %s133_s26 = ssub.s32 %s2535_s21, %s2597_s24  ;;  %p146_p0 = scmp.ne.s32.totalorder %s2531_s20, %s2527_s19 }
   0x7   : > { %p134_p1 = scmp.eq.s32.totalorder %s133_s26, 0  ;;  %p147_p2 = scmp.eq.s32.totalorder %s2593_s22, 1 }
   0x8   : > { %p152_p3 = scmp.ne.s32.totalorder %s2527_s19, %s2523_s18  ;;  %p153_p4 = scmp.eq.s32.totalorder %s2298_s23, 1 }
   0x9   : > { %s2608_s27 = scalar_select %p134_p1, %s2531_s20, %s136_s25  }
   0xa   : > { %p2610_p5 = por %p147_p2, %p146_p0  ;;  %p2614_p6 = por %p153_p4, %p152_p3 }
   0xb   : > { %p2299_p7 = scmp.ge.s32.totalorder %s2535_s21, 1  ;;  %p160_p8 = scmp.lt.s32.totalorder %s2535_s21, 3 }
   0xc   : > { %p2335_p9 = scmp.eq.s32.totalorder %s2593_s22, 0  ;;  %s180_s7 = sshll.u32 %s3480_s4, 4  ;;  %s181_s7 = int_to_ptr.hbm [resolvable:$true] %s180_s7 }
   0xd   : > { %p161_p10 = pnand %p2299_p7, %p160_p8  ;;  %s2537_s8 = smov [#allocation2]  }
   0xe   : > { %s182_s9 = sshll.u32 %s2537_s8, 4  ;;  %s2538_s10 = smov 128   ;;  %s183_s9 = int_to_ptr.vmem [resolvable:$true] %s182_s9 }
   0xf   : > { %p2327_p11 = pneg %p161_p10  ;;  %s2539_s11 = smov 8  }
  0x10   : > { %207 = sbr.rel (%p161_p10) target bundleno = 631 (0x277), region = 40 }
  0x11   : > { %p2328_p12 = pnand %p2335_p9, %p2327_p11 }
  0x13   : > { %2330 = dma.hbm_to_vmem [thread:$0]  (!%p2328_p12), %s181_s7, 512, %s183_s9, [#allocation3], %s2538_s10, %s2538_s10, %s2539_s11  }
  0x15   : > { %2514 = dma.done.wait (%p2335_p9), [#allocation3], 512  }
  0x16   : > { %2516 = vsyncadd (%p2335_p9), [#allocation3], 4294966784  ;;  %s2305_s12 = sshll.u32 %s2593_s22, 2  ;;  %vm255_vm0 = vcmask 261120   ;;  %v250_v0 = vld [vmem:[%s3477_s1 + $0x18] sm:$0xff]  ;;  %v249_v1 = vld [vmem:[%s3477_s1 + $0x10] sm:$0xff] }
  0x17   : > { %p237_p13 = scmp.lt.s32.totalorder %s2305_s12, 7  ;;  %v248_v2 = vld [vmem:[%s3477_s1 + $0x8] sm:$0xff]  ;;  %v2645_v3 = vand.u32 4294901760, %v250_v0  ;;  %v2647_v4 = vand.u32 4294901760, %v249_v1  ;;  %v247_v6 = vld [vmem:[%s3477_s1] sm:$0xff]  ;;  %v254_v32 = vld [vmem:[%s3478_s2 + $0x18] sm:$0xff] }
  0x18   : > { %v2649_v5 = vand.u32 4294901760, %v248_v2  ;;  %v2660_v9 = vand.u32 4294901760, %v247_v6  ;;  %v253_v33 = vld [vmem:[%s3478_s2 + $0x10] sm:$0xff]  ;;  %v252_v34 = vld [vmem:[%s3478_s2 + $0x8] sm:$0xff]  ;;  %v251_v40 = vld [vmem:[%s3478_s2] sm:$0xff]  ;;  %v2760_v43 = vand.u32 4294901760, %v254_v32 }
  0x19   : > { %s3502_s12 = smov (!%p237_p13, %s2305_s12), 7  ;;  %281 = vmatpush.msra.mxu0 %v2645_v3  ;;  %v2671_v13 = vsub.f32 %v250_v0, %v2645_v3  ;;  %v2674_v14 = vsub.f32 %v249_v1, %v2647_v4  ;;  %432 = vmatpush.msra.mxu3 %v2645_v3  ;;  %v2762_v44 = vand.u32 4294901760, %v253_v33  ;;  %v2764_v45 = vand.u32 4294901760, %v252_v34  ;;  %s233_s9 = sand.u32 1, %s2527_s19  }
  0x1a   : > { %s2306_s13 = sshll.u32 %s3502_s12, 3  ;;  %v2678_v15 = vsub.f32 %v248_v2, %v2649_v5  ;;  %v2683_v17 = vsub.f32 %v247_v6, %v2660_v9  ;;  %v2775_v49 = vand.u32 4294901760, %v251_v40  ;;  %v612_v51 = vsub.f32 %v254_v32, %v2760_v43  ;;  %s2304_s10 = sshll.u32 %s233_s9, 5 }
  0x1b   : > { %s2634_s16 = scalar_lea.vmem %s3476_s0, %s2306_s13  ;;  %283 = vmatpush.msra.mxu0 %v2647_v4  ;;  %388 = vmatpush.msra.mxu2 %v2671_v13  ;;  %v2692_v20 = vand.u32 4294901760, %v2671_v13  ;;  %v2698_v22 = vand.u32 4294901760, %v2674_v14  ;;  %v618_v52 = vsub.f32 %v253_v33, %v2762_v44  ;;  %v624_v53 = vsub.f32 %v252_v34, %v2764_v45  ;;  %s3418_s11 = scalar_lea.vmem [#allocation5], %s2304_s10 }
  0x1c   : > { %v2655_v7 = vld [vmem:[%s2634_s16] sm:$0xff]  ;;  %v2658_v8 = vld [vmem:[%s2634_s16 + $0x8] sm:$0xff]  ;;  %v2667_v12 = vld [vmem:[%s2634_s16 + $0x10] sm:$0xff]  ;;  %v2701_v23 = vand.u32 4294901760, %v2678_v15  ;;  %434 = vmatpush.msra.mxu3 %v2647_v4  ;;  %v2705_v24 = vand.u32 4294901760, %v2683_v17  ;;  %v630_v54 = vsub.f32 %v251_v40, %v2775_v49  ;;  %v613_v55 = vand.u32 4294901760, %v612_v51 }
  0x1d   : > { %v257_v10 = vsel %vm255_vm0, %v2655_v7, 0  ;;  %v260_v11 = vsel %vm255_vm0, %v2658_v8, 0  ;;  %v263_v19 = vsel %vm255_vm0, %v2667_v12, 0  ;;  %285 = vmatpush.msra.mxu0 %v2649_v5  ;;  %391 = vmatpush.msra.mxu2 %v2674_v14  ;;  %v336_v26 = vsub.f32 %v2671_v13, %v2692_v20  ;;  %v2747_v39 = vld [vmem:[%s2634_s16 + $0x18] sm:$0xff]  ;;  %s2320_s12 = sshll.u32 %s2593_s22, 5  ;;  %s2221_s22 = sshll.u32 %s3418_s11, 4  ;;  %s2222_s22 = int_to_ptr.vmem [resolvable:$true] %s2221_s22 }
  0x1e   : > { %v2680_v16 = vand.u32 4294901760, %v257_v10  ;;  %v2685_v18 = vand.u32 4294901760, %v260_v11  ;;  %v342_v28 = vsub.f32 %v2674_v14, %v2698_v22  ;;  %v348_v29 = vsub.f32 %v2678_v15, %v2701_v23  ;;  %436 = vmatpush.msra.mxu3 %v2649_v5  ;;  %s2220_s15 = scalar_lea.hbm %s3481_s5, %s2320_s12  ;;  %s2209_s16 = scalar_lea.sflag [#allocation4], %s233_s9 }
  0x1f   : > { %v2725_v31 = vand.u32 4294901760, %v263_v19  ;;  %287 = vmatpush.msra.mxu0 %v2660_v9  ;;  %v2737_v35 = vand.u32 4294901760, %v336_v26  ;;  %394 = vmatpush.msra.mxu2 %v2678_v15  ;;  %v354_v38 = vsub.f32 %v2683_v17, %v2705_v24  ;;  %v266_v48 = vsel %vm255_vm0, %v2747_v39, 0  ;;  %s2223_s17 = sshll.u32 %s2220_s15, 4  ;;  %s2489_s6 = scalar_lea.hbm %s3481_s5, 64  ;;  %s2224_s17 = int_to_ptr.hbm [resolvable:$true] %s2223_s17 }
  0x20   : > { %v2695_v21 = vsub.f32 %v257_v10, %v2680_v16  ;;  %v2708_v25 = vsub.f32 %v260_v11, %v2685_v18  ;;  %v2742_v37 = vand.u32 4294901760, %v342_v28  ;;  %v2752_v41 = vand.u32 4294901760, %v348_v29  ;;  %438 = vmatpush.msra.mxu3 %v2660_v9  ;;  %s2483_s23 = sshra.s32 %s2224_s17, 4  ;;  %s2484_s23 = int_to_ptr.hbm [resolvable:$true] %s2483_s23 }
  0x21   : > { %479 = vmatpush.msrb.mxu0 %v2692_v20  ;;  %338 = vmatpush.msra.mxu1 %v2737_v35  ;;  %v2771_v47 = vsub.f32 %v263_v19, %v2725_v31  ;;  %v2779_v50 = vand.u32 4294901760, %v354_v38  ;;  %v619_v56 = vand.u32 4294901760, %v618_v52  ;;  %v625_v57 = vand.u32 4294901760, %v624_v53  ;;  %s2485_s25 = scalar_lea.hbm %s2484_s23, 32  ;;  %p2490_p3 = scmp.lt.s32.totalorder %s2484_s23, %s3481_s5 }
  0x22   : > { %v2715_v27 = vand.u32 4294901760, %v2695_v21  ;;  %v2723_v30 = vand.u32 4294901760, %v2708_v25  ;;  %397 = vmatpush.msra.mxu2 %v2683_v17  ;;  %v2792_v59 = vand.u32 4294901760, %v266_v48  ;;  %v614_v61 = vsub.f32 %v612_v51, %v613_v55  ;;  %p2486_p0 = scmp.ne.s32.totalorder %s2484_s23, %s2485_s25  ;;  %p2491_p4 = scmp.lt.s32.totalorder %s2489_s6, %s2485_s25 }
  0x23   : > { %400 = vmatmul.f32.vlgmr.msra.gmra.mxu2 %v2695_v21  ;;  %344 = vmatpush.msra.mxu1 %v2742_v37  ;;  %v2789_v58 = vand.u32 4294901760, %v2771_v47  ;;  %v620_v62 = vsub.f32 %v618_v52, %v619_v56  ;;  %v631_v63 = vand.u32 4294901760, %v630_v54  ;;  %v626_v0 = vsub.f32 %v624_v53, %v625_v57 }
  0x24   : > { %v291_v36 = vsub.f32 %v2695_v21, %v2715_v27  ;;  %442 = vmatmul.f32.vlgmr.msra.gmra.mxu3 %v2715_v27  ;;  %v299_v46 = vsub.f32 %v2708_v25, %v2723_v30  ;;  %483 = vmatpush.msrb.mxu0 %v2698_v22  ;;  %v615_v1 = vand.u32 4294901760, %v614_v61  ;;  %v2809_v10 = vsub.f32 %v266_v48, %v2792_v59  ;;  %p2487_p1 = pnand %p2486_p0, %p2610_p5  ;;  %p2492_p7 = por %p2491_p4, %p2490_p3 }
  0x25   : > { %559 = vmatpush.msrb.mxu2 %v2760_v43  ;;  %350 = vmatpush.msra.mxu1 %v2752_v41  ;;  %v621_v2 = vand.u32 4294901760, %v620_v62  ;;  %v307_v6 = vsub.f32 %v2771_v47, %v2789_v58  ;;  %v632_v11 = vsub.f32 %v630_v54, %v631_v63  ;;  %v627_v19 = vand.u32 4294901760, %v626_v0 }
  0x26   : > { %v2757_v42 = vand.u32 4294901760, %v291_v36  ;;  %487 = vmatpush.msrb.mxu0 %v2701_v23  ;;  %v2796_v60 = vand.u32 4294901760, %v299_v46  ;;  %616 = vmatpush.msrb.mxu3 %v615_v1  ;;  %v2814_v28 = vand.u32 4294901760, %v2809_v10  ;;  %v902_v34 = vand.u32 2147483647, %v2667_v12  ;;  %p2488_p2 = pneg %p2487_p1 }
  0x27   : > { %561 = vmatpush.msrb.mxu2 %v2762_v44  ;;  %356 = vmatpush.msra.mxu1 %v2779_v50  ;;  %v308_v26 = vand.u32 4294901760, %v307_v6  ;;  %v633_v29 = vand.u32 4294901760, %v632_v11 }
  0x28   : > { %293 = vmatmul.f32.vlgmr.msra.gmra.mxu0 %v2757_v42  ;;  %358 = vmatmul.f32.vlgmr.msra.gmra.mxu1 %v2680_v16  ;;  %v315_v32 = vsub.f32 %v2809_v10, %v2814_v28  ;;  %p2493_p8 = pnand %p2492_p7, %p2488_p2 }
  0x29   : > { %491 = vmatpush.msrb.mxu0 %v2705_v24  ;;  %522 = vmatpush.msrb.mxu1 %v2645_v3 }
  0x2a   : > { %563 = vmatpush.msrb.mxu2 %v2764_v45  ;;  %622 = vmatpush.msrb.mxu3 %v621_v2  ;;  %v316_v33 = vand.u32 4294901760, %v315_v32 }
  0x2b   : > { %405 = vmatmul.f32.gmra.mxu2 %v2708_v25  ;;  %524 = vmatpush.msrb.mxu1 %v2647_v4 }
  0x2c   : > { %448 = vmatmul.f32.gmra.mxu3 %v2723_v30  ;;  %565 = vmatpush.msrb.mxu2 %v2775_v49 }
  0x2d   : > { %526 = vmatpush.msrb.mxu1 %v2649_v5  ;;  %666 = vmatpush.msra.mxu0 %v612_v51 }
  0x2e   : > { %757 = vmatpush.msra.mxu2 %v613_v55  ;;  %628 = vmatpush.msrb.mxu3 %v627_v19 }
  0x2f   : > { %528 = vmatpush.msrb.mxu1 %v2660_v9  ;;  %669 = vmatpush.msra.mxu0 %v618_v52 }
  0x30   : > { %301 = vmatmul.f32.gmra.mxu0 %v2796_v60  ;;  %362 = vmatmul.f32.gmra.mxu1 %v2685_v18 }
  0x31   : > { %710 = vmatpush.msra.mxu1 %v2760_v43  ;;  %672 = vmatpush.msra.mxu0 %v624_v53 }
  0x32   : > { %634 = vmatpush.msrb.mxu3 %v633_v29  ;;  %761 = vmatpush.msra.mxu2 %v619_v56 }
  0x33   : > { %410 = vmatmul.f32.gmra.mxu2 %v2771_v47  ;;  %712 = vmatpush.msra.mxu1 %v2762_v44 }
  0x34   : > { %454 = vmatmul.f32.gmra.mxu3 %v2789_v58  ;;  %675 = vmatpush.msra.mxu0 %v630_v54 }
  0x35   : > { %800 = vmatpush.msra.mxu3 %v2760_v43  ;;  %714 = vmatpush.msra.mxu1 %v2764_v45 }
  0x36   : > { %765 = vmatpush.msra.mxu2 %v625_v57 }
  0x37   : > { %802 = vmatpush.msra.mxu3 %v2762_v44  ;;  %716 = vmatpush.msra.mxu1 %v2775_v49 }
  0x38   : > { %309 = vmatmul.f32.gmra.mxu0 %v308_v26  ;;  %366 = vmatmul.f32.gmra.mxu1 %v2725_v31 }
  0x39   : > { %769 = vmatpush.msra.mxu2 %v631_v63  ;;  %804 = vmatpush.msra.mxu3 %v2764_v45 }
  0x3b   : > { %415 = vmatmul.f32.gmra.mxu2 %v2809_v10  ;;  %806 = vmatpush.msra.mxu3 %v2775_v49 }
  0x3c   : > { %460 = vmatmul.f32.gmra.mxu3 %v2814_v28 }
  0x40   : > { %317 = vmatmul.f32.gmra.mxu0 %v316_v33  ;;  %370 = vmatmul.f32.gmra.mxu1 %v2792_v59 }
  0x43   : > { %571 = vmatmul.f32.vlgmr.msrb.gmra.mxu2 %v2757_v42 }
  0x44   : > { %636 = vmatmul.f32.vlgmr.msrb.gmra.mxu3 %v2680_v16  ;;  %1048 = vmatpush.msrb.mxu2 %v2671_v13  ;;  %v900_v13 = vand.u32 2147483647, %v2655_v7 }
  0x45   : > { %1092 = vmatpush.msrb.mxu3 %v2645_v3 }
  0x46   : > { %1051 = vmatpush.msrb.mxu2 %v2674_v14  ;;  %v904_v14 = vadd.f32 1e-10, %v900_v13 }
  0x47   : > { %1094 = vmatpush.msrb.mxu3 %v2647_v4 }
  0x48   : > { %493 = vmatmul.f32.vlgmr.msrb.gmra.mxu0 %v2680_v16  ;;  %1054 = vmatpush.msrb.mxu2 %v2678_v15  ;;  %2375 = vlog2.f32 %v904_v14  ;;  %v901_v15 = vand.u32 2147483647, %v2658_v8 }
  0x49   : > { %941 = vmatpush.msrb.mxu0 %v2645_v3  ;;  %530 = vmatmul.f32.vlgmr.msrb.gmra.mxu1 %v2680_v16 }
  0x4a   : > { %998 = vmatpush.msrb.mxu1 %v2737_v35  ;;  %1057 = vmatpush.msrb.mxu2 %v2683_v17  ;;  %v905_v7 = vadd.f32 1e-10, %v901_v15 }
  0x4b   : > { %943 = vmatpush.msrb.mxu0 %v2647_v4  ;;  %579 = vmatmul.f32.gmra.mxu2 %v2796_v60 }
  0x4c   : > { %640 = vmatmul.f32.gmra.mxu3 %v2685_v18  ;;  %1004 = vmatpush.msrb.mxu1 %v2742_v37  ;;  %2377 = vlog2.f32 %v905_v7 }
  0x4d   : > { %945 = vmatpush.msrb.mxu0 %v2649_v5  ;;  %1096 = vmatpush.msrb.mxu3 %v2649_v5 }
  0x4e   : > { %1010 = vmatpush.msrb.mxu1 %v2752_v41  ;;  %v2376_v17 = vpop.eup %2375 }
  0x4f   : > { %947 = vmatpush.msrb.mxu0 %v2660_v9  ;;  %1098 = vmatpush.msrb.mxu3 %v2660_v9  ;;  %v909_v8 = vmul.f32 0.6931472, %v2376_v17 }
  0x50   : > { %497 = vmatmul.f32.gmra.mxu0 %v2685_v18  ;;  %1016 = vmatpush.msrb.mxu1 %v2779_v50 }
  0x51   : > { %534 = vmatmul.f32.gmra.mxu1 %v2685_v18 }
  0x52   : > { %v2378_v12 = vpop.eup %2377 }
  0x53   : > { %587 = vmatmul.f32.gmra.mxu2 %v308_v26 }
  0x54   : > { %644 = vmatmul.f32.gmra.mxu3 %v2725_v31 }
  0x58   : > { %501 = vmatmul.f32.gmra.mxu0 %v2725_v31 }
  0x59   : > { %538 = vmatmul.f32.gmra.mxu1 %v2725_v31 }
  0x5b   : > { %595 = vmatmul.f32.gmra.mxu2 %v316_v33 }
  0x5c   : > { %648 = vmatmul.f32.gmra.mxu3 %v2792_v59 }
  0x60   : > { %505 = vmatmul.f32.gmra.mxu0 %v2792_v59 }
  0x61   : > { %542 = vmatmul.f32.gmra.mxu1 %v2792_v59 }
  0x63   : > { %771 = vmatmul.f32.vlgmr.msra.gmra.mxu2 %v2680_v16 }
  0x64   : > { %808 = vmatmul.f32.vlgmr.msra.gmra.mxu3 %v2680_v16  ;;  %v906_v16 = vadd.f32 1e-10, %v902_v34 }
  0x66   : > { %2379 = vlog2.f32 %v906_v16 }
  0x68   : > { %678 = vmatmul.f32.vlgmr.msra.gmra.mxu0 %v2695_v21 }
  0x69   : > { %1139 = vmatpush.msra.mxu0 %v2692_v20  ;;  %720 = vmatmul.f32.vlgmr.msra.gmra.mxu1 %v2715_v27  ;;  %v917_v20 = vsel %vm255_vm0, %v909_v8, 0 }
  0x6a   : > { %1182 = vmatpush.msra.mxu1 %v2645_v3  ;;  %v2882_v21 = vand.u32 4294901760, %v917_v20  ;;  %v903_v3 = vand.u32 2147483647, %v2747_v39 }
  0x6b   : > { %1143 = vmatpush.msra.mxu0 %v2698_v22  ;;  %775 = vmatmul.f32.gmra.mxu2 %v2685_v18 }
  0x6c   : > { %812 = vmatmul.f32.gmra.mxu3 %v2685_v18  ;;  %1184 = vmatpush.msra.mxu1 %v2647_v4  ;;  %v911_v18 = vmul.f32 0.6931472, %v2378_v12  ;;  %v949_v4 = vsub.f32 %v917_v20, %v2882_v21  ;;  %v907_v22 = vadd.f32 1e-10, %v903_v3 }
  0x6d   : > { %1147 = vmatpush.msra.mxu0 %v2701_v23  ;;  %v2380_v23 = vpop.eup %2379 }
  0x6e   : > { %1186 = vmatpush.msra.mxu1 %v2649_v5  ;;  %v920_v5 = vsel %vm255_vm0, %v911_v18, 0  ;;  %2381 = vlog2.f32 %v907_v22 }
  0x6f   : > { %1151 = vmatpush.msra.mxu0 %v2705_v24  ;;  %v950_v24 = vand.u32 4294901760, %v949_v4 }
  0x70   : > { %683 = vmatmul.f32.gmra.mxu0 %v2708_v25  ;;  %1188 = vmatpush.msra.mxu1 %v2660_v9  ;;  %v956_v25 = vand.u32 4294901760, %v920_v5  ;;  %v913_v9 = vmul.f32 0.6931472, %v2380_v23 }
  0x71   : > { %726 = vmatmul.f32.gmra.mxu1 %v2723_v30  ;;  %v951_v27 = vsub.f32 %v949_v4, %v950_v24 }
  0x72   : > { %v957_v30 = vsub.f32 %v920_v5, %v956_v25 }
  0x73   : > { %779 = vmatmul.f32.gmra.mxu2 %v2725_v31  ;;  %v952_v36 = vand.u32 4294901760, %v951_v27 }
  0x74   : > { %816 = vmatmul.f32.gmra.mxu3 %v2725_v31  ;;  %v923_v31 = vsel %vm255_vm0, %v913_v9, 0  ;;  %v2382_v35 = vpop.eup %2381  ;;  %v958_v37 = vand.u32 4294901760, %v957_v30 }
  0x75   : > { %v964_v38 = vand.u32 4294901760, %v923_v31  ;;  %v915_v39 = vmul.f32 0.6931472, %v2382_v35 }
  0x76   : > { %v959_v40 = vsub.f32 %v957_v30, %v958_v37 }
  0x77   : > { %v965_v41 = vsub.f32 %v923_v31, %v964_v38  ;;  %v926_v42 = vsel %vm255_vm0, %v915_v39, 0 }
  0x78   : > { %688 = vmatmul.f32.gmra.mxu0 %v2771_v47  ;;  %v960_v43 = vand.u32 4294901760, %v959_v40  ;;  %v972_v45 = vand.u32 4294901760, %v926_v42 }
  0x79   : > { %732 = vmatmul.f32.gmra.mxu1 %v2789_v58  ;;  %v966_v44 = vand.u32 4294901760, %v965_v41 }
  0x7a   : > { %v973_v47 = vsub.f32 %v926_v42, %v972_v45 }
  0x7b   : > { %783 = vmatmul.f32.gmra.mxu2 %v2792_v59  ;;  %v967_v46 = vsub.f32 %v965_v41, %v966_v44 }
  0x7c   : > { %820 = vmatmul.f32.gmra.mxu3 %v2792_v59  ;;  %v974_v49 = vand.u32 4294901760, %v973_v47 }
  0x7d   : > { %v968_v48 = vand.u32 4294901760, %v967_v46 }
  0x7e   : > { %v975_v50 = vsub.f32 %v973_v47, %v974_v49 }
  0x80   : > { %693 = vmatmul.f32.gmra.mxu0 %v2809_v10  ;;  %v976_v51 = vand.u32 4294901760, %v975_v50 }
  0x81   : > { %738 = vmatmul.f32.gmra.mxu1 %v2814_v28 }
  0x83   : > { %1060 = vmatmul.f32.vlgmr.msrb.gmra.mxu2 %v949_v4 }
  0x84   : > { %1102 = vmatmul.f32.vlgmr.msrb.gmra.mxu3 %v950_v24 }
  0x88   : > { %953 = vmatmul.f32.vlgmr.msrb.gmra.mxu0 %v952_v36 }
  0x89   : > { %1018 = vmatmul.f32.vlgmr.msrb.gmra.mxu1 %v2882_v21 }
  0x8b   : > { %1065 = vmatmul.f32.gmra.mxu2 %v957_v30 }
  0x8c   : > { %1108 = vmatmul.f32.gmra.mxu3 %v958_v37 }
  0x90   : > { %961 = vmatmul.f32.gmra.mxu0 %v960_v43  ;;  %v1229_v43 = vld [vmem:[%s3479_s3 + $0x18] sm:$0xff] }
  0x91   : > { %1022 = vmatmul.f32.gmra.mxu1 %v956_v25  ;;  %v2955_v46 = vand.u32 4294901760, %v1229_v43 }
  0x93   : > { %1070 = vmatmul.f32.gmra.mxu2 %v965_v41  ;;  %1410 = vmatpush.msrb.mxu1 %v2955_v46 }
  0x94   : > { %1114 = vmatmul.f32.gmra.mxu3 %v966_v44  ;;  %1259 = vmatpush.msra.mxu2 %v2955_v46 }
  0x98   : > { %969 = vmatmul.f32.gmra.mxu0 %v968_v48 }
  0x99   : > { %1026 = vmatmul.f32.gmra.mxu1 %v964_v38 }
  0x9b   : > { %1075 = vmatmul.f32.gmra.mxu2 %v973_v47 }
  0x9c   : > { %1120 = vmatmul.f32.gmra.mxu3 %v974_v49  ;;  %v2961_v49 = vsub.f32 %v1229_v43, %v2955_v46 }
  0x9e   : > { %1366 = vmatpush.msrb.mxu0 %v2961_v49 }
  0xa0   : > { %977 = vmatmul.f32.gmra.mxu0 %v976_v51 }
  0xa1   : > { %1030 = vmatmul.f32.gmra.mxu1 %v972_v45 }
  0xa5   : > { %v2900_v52 = vpop.f32.mrf.mxu0  ;;  %v2903_v53 = vpop.f32.mrf.mxu1 }
  0xa6   : > { %v2905_v54 = vpop.f32.mrf.mxu2 }
  0xa7   : > { %v2907_v55 = vpop.f32.mrf.mxu3 }
  0xa8   : > { %1153 = vmatmul.f32.vlgmr.msra.gmra.mxu0 %v2882_v21 }
  0xa9   : > { %1190 = vmatmul.f32.vlgmr.msra.gmra.mxu1 %v2882_v21 }
  0xad   : > { %v2909_v56 = vpop.f32.mrf.mxu0  ;;  %v2912_v57 = vpop.f32.mrf.mxu1 }
  0xae   : > { %v2914_v58 = vpop.f32.mrf.mxu2 }
  0xaf   : > { %v2916_v59 = vpop.f32.mrf.mxu3 }
  0xb0   : > { %1157 = vmatmul.f32.gmra.mxu0 %v956_v25 }
  0xb1   : > { %1194 = vmatmul.f32.gmra.mxu1 %v956_v25 }
  0xb5   : > { %v2918_v60 = vpop.f32.mrf.mxu0  ;;  %v2920_v61 = vpop.f32.mrf.mxu1 }
  0xb6   : > { %v2922_v62 = vpop.f32.mrf.mxu2 }
  0xb7   : > { %v2924_v63 = vpop.f32.mrf.mxu3 }
  0xb8   : > { %1161 = vmatmul.f32.gmra.mxu0 %v964_v38 }
  0xb9   : > { %1198 = vmatmul.f32.gmra.mxu1 %v964_v38 }
  0xbd   : > { %v2926_v0 = vpop.f32.mrf.mxu0  ;;  %v2928_v1 = vpop.f32.mrf.mxu1 }
  0xbe   : > { %v2930_v2 = vpop.f32.mrf.mxu2 }
  0xbf   : > { %v2932_v6 = vpop.f32.mrf.mxu3 }
  0xc0   : > { %1165 = vmatmul.f32.gmra.mxu0 %v972_v45 }
  0xc1   : > { %1202 = vmatmul.f32.gmra.mxu1 %v972_v45 }
  0xc5   : > { %v2934_v10 = vpop.f32.mrf.mxu0 }
  0xc6   : > { %v2936_v11 = vpop.f32.mrf.mxu1  ;;  %v572_v19 = vpop.f32.mrf.mxu2 }
  0xc7   : > { %v637_v28 = vpop.f32.mrf.mxu3 }
  0xc8   : > { %v638_v5 = vadd.f32 %v637_v28, %v572_v19  ;;  %v2965_v19 = vand.u32 4294901760, %v2961_v49 }
  0xcd   : > { %v2938_v26 = vpop.f32.mrf.mxu0 }
  0xce   : > { %v2940_v29 = vpop.f32.mrf.mxu1  ;;  %v580_v32 = vpop.f32.mrf.mxu2 }
  0xcf   : > { %v641_v13 = vpop.f32.mrf.mxu3 }
  0xd0   : > { %v642_v30 = vadd.f32 %v641_v13, %v580_v32 }
  0xd5   : > { %v2942_v33 = vpop.f32.mrf.mxu0 }
  0xd6   : > { %v2944_v14 = vpop.f32.mrf.mxu1  ;;  %v588_v15 = vpop.f32.mrf.mxu2 }
  0xd7   : > { %v645_v17 = vpop.f32.mrf.mxu3 }
  0xd8   : > { %v646_v42 = vadd.f32 %v645_v17, %v588_v15  ;;  %v1314_v15 = vsub.f32 %v2961_v49, %v2965_v19 }
  0xdd   : > { %v2946_v7 = vpop.f32.mrf.mxu0 }
  0xde   : > { %v2948_v34 = vpop.f32.mrf.mxu1  ;;  %v596_v16 = vpop.f32.mrf.mxu2 }
  0xdf   : > { %v649_v12 = vpop.f32.mrf.mxu3 }
  0xe0   : > { %v650_v17 = vadd.f32 %v649_v12, %v596_v16 }
  0xe5   : > { %v679_v8 = vpop.f32.mrf.mxu0 }
  0xe6   : > { %v721_v20 = vpop.f32.mrf.mxu1  ;;  %v772_v3 = vpop.f32.mrf.mxu2  ;;  %v680_v23 = vadd.f32 %v679_v8, %v638_v5  ;;  %v1227_v5 = vld [vmem:[%s3479_s3 + $0x8] sm:$0xff] }
  0xe7   : > { %v809_v4 = vpop.f32.mrf.mxu3 }
  0xe8   : > { %v722_v9 = vadd.f32 %v721_v20, %v680_v23  ;;  %v2972_v20 = vand.u32 4294901760, %v1314_v15 }
  0xea   : > { %v773_v35 = vadd.f32 %v772_v3, %v722_v9  ;;  %1316 = vmatpush.msra.mxu3 %v2972_v20 }
  0xec   : > { %v810_v38 = vadd.f32 %v809_v4, %v773_v35  ;;  %v1226_v35 = vld [vmem:[%s3479_s3] sm:$0xff] }
  0xed   : > { %v684_v21 = vpop.f32.mrf.mxu0 }
  0xee   : > { %v727_v18 = vpop.f32.mrf.mxu1  ;;  %v776_v24 = vpop.f32.mrf.mxu2  ;;  %v685_v36 = vadd.f32 %v684_v21, %v642_v30  ;;  %v2307_v44 = vmul.f32 -1.442695, %v810_v38  ;;  %v1228_v21 = vld [vmem:[%s3479_s3 + $0x10] sm:$0xff]  ;;  %v3007_v38 = vand.u32 4294901760, %v1226_v35 }
  0xef   : > { %v813_v31 = vpop.f32.mrf.mxu3 }
  0xf0   : > { %v728_v39 = vadd.f32 %v727_v18, %v685_v36  ;;  %2383 = vpow2.f32 %v2307_v44  ;;  %v2977_v18 = vand.u32 4294901760, %v1228_v21  ;;  %v3016_v43 = vsub.f32 %v1226_v35, %v3007_v38 }
  0xf2   : > { %v777_v45 = vadd.f32 %v776_v24, %v728_v39  ;;  %1261 = vmatpush.msra.mxu2 %v2977_v18  ;;  %v2987_v12 = vsub.f32 %v1228_v21, %v2977_v18  ;;  %v2989_v24 = vand.u32 4294901760, %v1227_v5  ;;  %1412 = vmatpush.msrb.mxu1 %v2977_v18 }
  0xf4   : > { %v814_v51 = vadd.f32 %v813_v31, %v777_v45  ;;  %v2997_v31 = vand.u32 4294901760, %v2987_v12  ;;  %1369 = vmatpush.msrb.mxu0 %v2987_v12  ;;  %1263 = vmatpush.msra.mxu2 %v2989_v24 }
  0xf5   : > { %v689_v22 = vpop.f32.mrf.mxu0  ;;  %1414 = vmatpush.msrb.mxu1 %v2989_v24 }
  0xf6   : > { %v733_v25 = vpop.f32.mrf.mxu1  ;;  %v780_v40 = vpop.f32.mrf.mxu2  ;;  %v690_v50 = vadd.f32 %v689_v22, %v646_v42  ;;  %v2308_v8 = vmul.f32 -1.442695, %v814_v51  ;;  %v1320_v39 = vsub.f32 %v2987_v12, %v2997_v31  ;;  %1265 = vmatpush.msra.mxu2 %v3007_v38 }
  0xf7   : > { %v817_v47 = vpop.f32.mrf.mxu3  ;;  %v2384_v4 = vpop.eup %2383  ;;  %1416 = vmatpush.msrb.mxu1 %v3007_v38 }
  0xf8   : > { %v734_v28 = vadd.f32 %v733_v25, %v690_v50  ;;  %2385 = vpow2.f32 %v2308_v8  ;;  %v2992_v25 = vadd.f32 1.0, %v2384_v4  ;;  %v3021_v44 = vand.u32 4294901760, %v1320_v39  ;;  %1457 = vmatpush.msrb.mxu2 %v2965_v19 }
  0xfa   : > { %v781_v3 = vadd.f32 %v780_v40, %v734_v28  ;;  %2387 = vrcp.f32 %v2992_v25  ;;  %v3030_v28 = vand.u32 4294901760, %v3016_v43  ;;  %1322 = vmatpush.msra.mxu3 %v3021_v44  ;;  %1461 = vmatpush.msrb.mxu2 %v2997_v31  ;;  %vm845_vm2 = vweird.f32 %v2992_v25 }
  0xfc   : > { %v818_v9 = vadd.f32 %v817_v47, %v781_v3  ;;  %3485 = vst [vmem:[#allocation8_spill] sm:$0xff] %v3030_v28 }
  0xfd   : > { %v694_v27 = vpop.f32.mrf.mxu0 }
  0xfe   : > { %v739_v37 = vpop.f32.mrf.mxu1  ;;  %v784_v13 = vpop.f32.mrf.mxu2  ;;  %v695_v23 = vadd.f32 %v694_v27, %v650_v17  ;;  %v3005_v27 = vsub.f32 %v1227_v5, %v2989_v24  ;;  %v1332_v17 = vsub.f32 %v3016_v43, %v3030_v28 }
  0xff   : > { %v821_v16 = vpop.f32.mrf.mxu3  ;;  %v2386_v45 = vpop.eup %2385 }
 0x100   : > { %v740_v36 = vadd.f32 %v739_v37, %v695_v23  ;;  %v3013_v42 = vand.u32 4294901760, %v3005_v27  ;;  %1372 = vmatpush.msrb.mxu0 %v3005_v27  ;;  %v2309_v37 = vmul.f32 -1.442695, %v818_v9  ;;  %v3045_v4 = vand.u32 4294901760, %v1332_v17  ;;  %v3047_v5 = vpop.eup %2387 }
 0x101   : > { %vm846_vm1 = vweird.f32 %v3047_v5 }
 0x102   : > { %v785_v47 = vadd.f32 %v784_v13, %v740_v36  ;;  %v1326_v51 = vsub.f32 %v3005_v27, %v3013_v42  ;;  %1375 = vmatpush.msrb.mxu0 %v3016_v43  ;;  %v3039_v13 = vadd.f32 1.0, %v2386_v45  ;;  %2389 = vpow2.f32 %v2309_v37  ;;  %1465 = vmatpush.msrb.mxu2 %v3013_v42  ;;  %vm3104_vm3 = vmor %vm845_vm2, %vm846_vm1 }
 0x103   : > { %v360_v37 = vadd.f32 %v2903_v53, %v2900_v52 }
 0x104   : > { %v3035_v15 = vand.u32 4294901760, %v1326_v51  ;;  %v822_v3 = vadd.f32 %v821_v16, %v785_v47  ;;  %1469 = vmatpush.msrb.mxu2 %v3030_v28  ;;  %2391 = vrcp.f32 %v3039_v13  ;;  %v841_v16 = vmul.f32 %v3047_v5, %v2992_v25 }
 0x105   : > { %v2950_v41 = vpop.f32.mrf.mxu0  ;;  %vm860_vm5 = vweird.f32 %v3039_v13 }
 0x106   : > { %v2957_v48 = vpop.f32.mrf.mxu1  ;;  %v1061_v40 = vpop.f32.mrf.mxu2  ;;  %1328 = vmatpush.msra.mxu3 %v3035_v15  ;;  %v2310_v9 = vmul.f32 -1.442695, %v822_v3  ;;  %v842_v47 = vsub.f32 1.0, %v841_v16  ;;  %v402_v3 = vadd.f32 %v2905_v54, %v360_v37 }
 0x107   : > { %v1103_v8 = vpop.f32.mrf.mxu3  ;;  %v1020_v23 = vadd.f32 %v2957_v48, %v2950_v41  ;;  %v364_v48 = vadd.f32 %v2912_v57, %v2909_v56  ;;  %v368_v56 = vadd.f32 %v2920_v61, %v2918_v60 }
 0x108   : > { %1334 = vmatpush.msra.mxu3 %v3045_v4  ;;  %v2390_v39 = vpop.eup %2389  ;;  %2393 = vpow2.f32 %v2310_v9 }
 0x109   : > { %v1062_v41 = vadd.f32 %v1061_v40, %v1020_v23  ;;  %v3065_v51 = vadd.f32 1.0, %v2390_v39  ;;  %v407_v57 = vadd.f32 %v2914_v58, %v364_v48  ;;  %v843_v23 = vmul.f32 %v3047_v5, %v842_v47 }
 0x10a   : > { %1500 = vmatpush.msrb.mxu3 %v2955_v46  ;;  %v3067_v17 = vpop.eup %2391  ;;  %v412_v39 = vadd.f32 %v2922_v62, %v368_v56 }
 0x10b   : > { %v1104_v28 = vadd.f32 %v1103_v8, %v1062_v41  ;;  %v856_v16 = vmul.f32 %v3067_v17, %v3039_v13  ;;  %2395 = vrcp.f32 %v3065_v51  ;;  %v444_v8 = vadd.f32 %v2907_v55, %v402_v3 }
 0x10c   : > { %1502 = vmatpush.msrb.mxu3 %v2977_v18  ;;  %v450_v60 = vadd.f32 %v2916_v59, %v407_v57  ;;  %v844_v48 = vadd.f32 %v3047_v5, %v843_v23  ;;  %v3094_v59 = vadd.f32 %v2924_v63, %v412_v39  ;;  %v849_v3 = vand.u32 2147483647, %v2992_v25 }
 0x10d   : > { %v2968_v32 = vpop.f32.mrf.mxu0  ;;  %v495_v58 = vadd.f32 %v2934_v10, %v444_v8  ;;  %v857_v41 = vsub.f32 1.0, %v856_v16  ;;  %v864_v63 = vand.u32 2147483647, %v3039_v13  ;;  %v1233_v16 = vld [vmem:[#allocation2 + $0x18] sm:$0xff]  ;;  %vm861_vm7 = vweird.f32 %v3067_v17 }
 0x10e   : > { %v2979_v22 = vpop.f32.mrf.mxu1  ;;  %v1066_v35 = vpop.f32.mrf.mxu2  ;;  %1504 = vmatpush.msrb.mxu3 %v2989_v24  ;;  %v499_v10 = vadd.f32 %v2938_v26, %v450_v60  ;;  %vm850_vm4 = vcmp.eq.f32.partialorder %v849_v3, 8.507059e+37  ;;  %vm3153_vm8 = vmor %vm860_vm5, %vm861_vm7  ;;  %vm875_vm10 = vweird.f32 %v3065_v51 }
 0x10f   : > { %v1024_v52 = vadd.f32 %v2979_v22, %v2968_v32  ;;  %v1109_v53 = vpop.f32.mrf.mxu3  ;;  %v2394_v9 = vpop.eup %2393  ;;  %v858_v57 = vmul.f32 %v3067_v17, %v857_v41  ;;  %vm3125_vm6 = vcmp.eq.f32.partialorder %v864_v63, 8.507059e+37  ;;  %v1230_v63 = vld [vmem:[#allocation2] sm:$0xff] }
 0x110   : > { %1506 = vmatpush.msrb.mxu3 %v3007_v38  ;;  %v3087_v55 = vadd.f32 1.0, %v2394_v9  ;;  %v3110_v26 = vadd.f32 %v2940_v29, %v499_v10  ;;  %v866_v29 = vand.u32 2147483648, %v3039_v13 }
 0x111   : > { %v1067_v32 = vadd.f32 %v1066_v35, %v1024_v52  ;;  %v3091_v47 = vpop.eup %2395  ;;  %v3101_v52 = vadd.f32 %v2928_v1, %v2926_v0  ;;  %v848_v0 = vsel %vm3104_vm3, %v3047_v5, %v844_v48  ;;  %v859_v41 = vadd.f32 %v3067_v17, %v858_v57  ;;  %v1231_v48 = vld [vmem:[#allocation2 + $0x8] sm:$0xff] }
 0x112   : > { %vm876_vm9 = vweird.f32 %v3091_v47  ;;  %vm890_vm14 = vweird.f32 %v3087_v55 }
 0x113   : > { %v1110_v35 = vadd.f32 %v1109_v53, %v1067_v32  ;;  %v532_v53 = vadd.f32 %v2936_v11, %v495_v58  ;;  %v871_v11 = vmul.f32 %v3091_v47, %v3065_v51  ;;  %v863_v13 = vsel %vm3153_vm8, %v3067_v17, %v859_v41  ;;  %vm3213_vm11 = vmor %vm875_vm10, %vm876_vm9 }
 0x115   : > { %v2994_v30 = vpop.f32.mrf.mxu0 }
 0x116   : > { %v3025_v50 = vpop.f32.mrf.mxu1  ;;  %v1071_v37 = vpop.f32.mrf.mxu2 }
 0x117   : > { %v1028_v62 = vadd.f32 %v3025_v50, %v2994_v30  ;;  %v1115_v56 = vpop.f32.mrf.mxu3  ;;  %v867_v30 = vor.u32 1.1754944e-38, %v866_v29 }
 0x119   : > { %v868_v41 = vsel %vm3125_vm6, %v867_v30, %v863_v13 }
 0x11d   : > { %v3041_v21 = vpop.f32.mrf.mxu0 }
 0x11e   : > { %v3057_v36 = vpop.f32.mrf.mxu1  ;;  %v1076_v60 = vpop.f32.mrf.mxu2 }
 0x11f   : > { %v1032_v5 = vadd.f32 %v3057_v36, %v3041_v21  ;;  %v872_v21 = vsub.f32 1.0, %v871_v11 }
 0x125   : > { %v1154_v45 = vpop.f32.mrf.mxu0 }
 0x126   : > { %v1155_v40 = vadd.f32 %v1154_v45, %v1104_v28  ;;  %v1191_v54 = vpop.f32.mrf.mxu1  ;;  %v851_v45 = vand.u32 2147483648, %v2992_v25 }
 0x128   : > { %v1192_v22 = vadd.f32 %v1191_v54, %v1155_v40  ;;  %v852_v1 = vor.u32 1.1754944e-38, %v851_v45  ;;  %v1072_v40 = vadd.f32 %v1071_v37, %v1028_v62  ;;  %v3121_v54 = vand.u32 4294901760, %v1233_v16  ;;  %v1232_v37 = vld [vmem:[#allocation2 + $0x10] sm:$0xff] }
 0x129   : > { %v3139_v62 = vand.u32 4294901760, %v1231_v48 }
 0x12a   : > { %v1206_v61 = vmul.f32 1.442695, %v1192_v22  ;;  %v853_v32 = vsel %vm850_vm4, %v852_v1, %v848_v0  ;;  %1537 = vmatpush.msra.mxu0 %v3121_v54  ;;  %v1116_v36 = vadd.f32 %v1115_v56, %v1072_v40  ;;  %v881_v56 = vand.u32 2147483648, %v3065_v51 }
 0x12b   : > { %v3160_v40 = vand.u32 4294901760, %v1230_v63 }
 0x12c   : > { %2397 = vpow2.f32 %v1206_v61  ;;  %v3132_v61 = vsub.f32 %v1233_v16, %v3121_v54  ;;  %v1121_v16 = vpop.f32.mrf.mxu3 }
 0x12d   : > { %v1158_v28 = vpop.f32.mrf.mxu0  ;;  %2399 = vrcp.f32 %v3087_v55 }
 0x12e   : > { %v1159_v50 = vadd.f32 %v1158_v28, %v1110_v35  ;;  %v1195_v25 = vpop.f32.mrf.mxu1  ;;  %v3134_v28 = vand.u32 4294901760, %v1232_v37  ;;  %v1591_v35 = vand.u32 4294901760, %v3132_v61 }
 0x130   : > { %v1196_v23 = vadd.f32 %v1195_v25, %v1159_v50  ;;  %1539 = vmatpush.msra.mxu0 %v3134_v28  ;;  %v3142_v10 = vsub.f32 %v1232_v37, %v3134_v28  ;;  %v1592_v25 = vsub.f32 %v3132_v61, %v1591_v35 }
 0x132   : > { %v2398_v8 = vpop.eup %2397  ;;  %v1208_v9 = vmul.f32 1.442695, %v1196_v23  ;;  %1541 = vmatpush.msra.mxu0 %v3139_v62  ;;  %v1597_v11 = vand.u32 4294901760, %v3142_v10  ;;  %v873_v23 = vmul.f32 %v3091_v47, %v872_v21  ;;  %v3179_v21 = vsub.f32 %v1230_v63, %v3160_v40 }
 0x133   : > { %v1214_v58 = vsub.f32 %v532_v53, %v2398_v8  ;;  %v3144_v3 = vpop.eup %2399  ;;  %v1077_v53 = vadd.f32 %v1076_v60, %v1032_v5 }
 0x134   : > { %2401 = vpow2.f32 %v1208_v9  ;;  %v886_v5 = vmul.f32 %v3144_v3, %v3087_v55  ;;  %v1593_v9 = vand.u32 4294901760, %v1592_v25  ;;  %1543 = vmatpush.msra.mxu0 %v3160_v40  ;;  %v874_v30 = vadd.f32 %v3091_v47, %v873_v23 }
 0x135   : > { %v1162_v39 = vpop.f32.mrf.mxu0  ;;  %v1218_v45 = vmul.f32 %v1214_v58, %v853_v32  ;;  %vm891_vm13 = vweird.f32 %v3144_v3 }
 0x136   : > { %v1163_v50 = vadd.f32 %v1162_v39, %v1116_v36  ;;  %v1199_v1 = vpop.f32.mrf.mxu1  ;;  %v1598_v39 = vsub.f32 %v3142_v10, %v1597_v11  ;;  %v1122_v36 = vadd.f32 %v1121_v16, %v1077_v53  ;;  %1594 = vmatpush.msra.mxu1 %v1593_v9  ;;  %v1609_v53 = vand.u32 4294901760, %v3179_v21  ;;  %vm3258_vm15 = vmor %vm890_vm14, %vm891_vm13 }
 0x137   : > { %v3147_v57 = vadd.f32 %v2398_v8, %v1218_v45  ;;  %v3167_v8 = vsub.f32 %v1231_v48, %v3139_v62  ;;  %v417_v9 = vadd.f32 %v2930_v2, %v3101_v52  ;;  %v878_v52 = vsel %vm3213_vm11, %v3091_v47, %v874_v30 }
 0x138   : > { %v1200_v29 = vadd.f32 %v1199_v1, %v1163_v50  ;;  %v1599_v50 = vand.u32 4294901760, %v1598_v39  ;;  %v887_v1 = vsub.f32 1.0, %v886_v5  ;;  %v1610_v13 = vsub.f32 %v3179_v21, %v1609_v53 }
 0x139   : > { %v1235_v32 = vsel %vm255_vm0, %v3147_v57, 0  ;;  %v1603_v17 = vand.u32 4294901760, %v3167_v8  ;;  %v879_v5 = vand.u32 2147483647, %v3065_v51  ;;  %v462_v51 = vadd.f32 %v2932_v6, %v417_v9 }
 0x13a   : > { %v2402_v37 = vpop.eup %2401  ;;  %v3175_v60 = vand.u32 4294901760, %v1235_v32  ;;  %v1210_v58 = vmul.f32 1.442695, %v1200_v29  ;;  %1600 = vmatpush.msra.mxu1 %v1599_v50  ;;  %v503_v29 = vadd.f32 %v2942_v33, %v3094_v59  ;;  %v894_v6 = vand.u32 2147483647, %v3087_v55 }
 0x13b   : > { %v1215_v48 = vsub.f32 %v3110_v26, %v2402_v37  ;;  %v1604_v63 = vsub.f32 %v3167_v8, %v1603_v17  ;;  %vm880_vm12 = vcmp.eq.f32.partialorder %v879_v5, 8.507059e+37  ;;  %v507_v30 = vadd.f32 %v2946_v7, %v462_v51 }
 0x13c   : > { %2403 = vpow2.f32 %v1210_v58  ;;  %1336 = vmatmul.f32.vlgmr.msra.gmra.mxu3 %v3175_v60  ;;  %v3186_v0 = vsub.f32 %v1235_v32, %v3175_v60  ;;  %v540_v58 = vadd.f32 %v2944_v14, %v503_v29  ;;  %vm895_vm1 = vcmp.eq.f32.partialorder %v894_v6, 8.507059e+37 }
 0x13d   : > { %v1166_v45 = vpop.f32.mrf.mxu0  ;;  %v1219_v22 = vmul.f32 %v1215_v48, %v868_v41  ;;  %1688 = vmatpush.msra.mxu3 %v3121_v54  ;;  %v1605_v16 = vand.u32 4294901760, %v1604_v63  ;;  %v882_v48 = vor.u32 1.1754944e-38, %v881_v56 }
 0x13e   : > { %v1167_v26 = vadd.f32 %v1166_v45, %v1122_v36  ;;  %1378 = vmatmul.f32.vlgmr.msrb.gmra.mxu0 %v3186_v0  ;;  %v3197_v25 = vand.u32 4294901760, %v3186_v0  ;;  %v1203_v32 = vpop.f32.mrf.mxu1 }
 0x13f   : > { %v3204_v23 = vadd.f32 %v2402_v37, %v1219_v22  ;;  %1690 = vmatpush.msra.mxu3 %v3134_v28  ;;  %1735 = vmatpush.msrb.mxu0 %v1591_v35  ;;  %v1611_v37 = vand.u32 4294901760, %v1610_v13  ;;  %v888_v35 = vmul.f32 %v3144_v3, %v887_v1  ;;  %v883_v63 = vsel %vm880_vm12, %v882_v48, %v878_v52 }
 0x140   : > { %v1204_v33 = vadd.f32 %v1203_v32, %v1167_v26  ;;  %1420 = vmatmul.f32.vlgmr.msrb.gmra.mxu1 %v3197_v25  ;;  %v1269_v59 = vsub.f32 %v3186_v0, %v3197_v25 }
 0x141   : > { %v1238_v2 = vsel %vm255_vm0, %v3204_v23, 0  ;;  %1606 = vmatpush.msra.mxu1 %v1605_v16  ;;  %1692 = vmatpush.msra.mxu3 %v3139_v62  ;;  %v889_v1 = vadd.f32 %v3144_v3, %v888_v35 }
 0x142   : > { %v2404_v36 = vpop.eup %2403  ;;  %v3228_v41 = vand.u32 4294901760, %v1238_v2  ;;  %v1212_v45 = vmul.f32 1.442695, %v1204_v33  ;;  %v3232_v14 = vand.u32 4294901760, %v1269_v59  ;;  %1739 = vmatpush.msrb.mxu0 %v1597_v11  ;;  %v896_v11 = vand.u32 2147483648, %v3087_v55 }
 0x143   : > { %v1216_v50 = vsub.f32 %v540_v58, %v2404_v36  ;;  %1612 = vmatpush.msra.mxu1 %v1611_v37  ;;  %1694 = vmatpush.msra.mxu3 %v3160_v40  ;;  %v893_v55 = vsel %vm3258_vm15, %v3144_v3, %v889_v1 }
 0x144   : > { %2405 = vpow2.f32 %v1212_v45  ;;  %1271 = vmatmul.f32.vlgmr.msra.gmra.mxu2 %v3232_v14  ;;  %1340 = vmatmul.f32.gmra.mxu3 %v3228_v41  ;;  %v3238_v47 = vsub.f32 %v1238_v2, %v3228_v41  ;;  %v897_v13 = vor.u32 1.1754944e-38, %v896_v11 }
 0x145   : > { %v1220_v56 = vmul.f32 %v1216_v50, %v883_v63  ;;  %1644 = vmatpush.msra.mxu2 %v3132_v61  ;;  %1778 = vmatpush.msrb.mxu1 %v3121_v54  ;;  %v544_v61 = vadd.f32 %v2948_v34, %v507_v30 }
 0x146   : > { %1383 = vmatmul.f32.gmra.mxu0 %v3238_v47  ;;  %v3248_v22 = vand.u32 4294901760, %v3238_v47  ;;  %v898_v5 = vsel %vm895_vm1, %v897_v13, %v893_v55 }
 0x147   : > { %v3251_v26 = vadd.f32 %v2404_v36, %v1220_v56  ;;  %1647 = vmatpush.msra.mxu2 %v3142_v10  ;;  %1743 = vmatpush.msrb.mxu0 %v1603_v17 }
 0x148   : > { %1426 = vmatmul.f32.gmra.mxu1 %v3248_v22  ;;  %v1277_v7 = vsub.f32 %v3238_v47, %v3248_v22 }
 0x149   : > { %v1241_v16 = vsel %vm255_vm0, %v3251_v26, 0  ;;  %1650 = vmatpush.msra.mxu2 %v3167_v8  ;;  %1780 = vmatpush.msrb.mxu1 %v3134_v28 }
 0x14a   : > { %v2406_v10 = vpop.eup %2405  ;;  %v3273_v17 = vand.u32 4294901760, %v1241_v16  ;;  %v1278_v29 = vand.u32 4294901760, %v1277_v7  ;;  %1747 = vmatpush.msrb.mxu0 %v1609_v53 }
 0x14b   : > { %v1217_v34 = vsub.f32 %v544_v61, %v2406_v10  ;;  %1653 = vmatpush.msra.mxu2 %v3179_v21  ;;  %1782 = vmatpush.msrb.mxu1 %v3139_v62 }
 0x14c   : > { %1279 = vmatmul.f32.gmra.mxu2 %v1278_v29  ;;  %1344 = vmatmul.f32.gmra.mxu3 %v3273_v17  ;;  %v3281_v28 = vsub.f32 %v1241_v16, %v3273_v17 }
 0x14d   : > { %v1221_v3 = vmul.f32 %v1217_v34, %v898_v5  ;;  %1784 = vmatpush.msrb.mxu1 %v3160_v40 }
 0x14e   : > { %1388 = vmatmul.f32.gmra.mxu0 %v3281_v28  ;;  %v3286_v8 = vand.u32 4294901760, %v3281_v28 }
 0x14f   : > { %v3288_v53 = vadd.f32 %v2406_v10, %v1221_v3 }
 0x150   : > { %1432 = vmatmul.f32.gmra.mxu1 %v3286_v8  ;;  %v1285_v62 = vsub.f32 %v3281_v28, %v3286_v8 }
 0x151   : > { %v1244_v21 = vsel %vm255_vm0, %v3288_v53, 0 }
 0x152   : > { %v3295_v32 = vand.u32 4294901760, %v1244_v21  ;;  %v1286_v9 = vand.u32 4294901760, %v1285_v62 }
 0x154   : > { %1287 = vmatmul.f32.gmra.mxu2 %v1286_v9  ;;  %1348 = vmatmul.f32.gmra.mxu3 %v3295_v32  ;;  %v3299_v40 = vsub.f32 %v1244_v21, %v3295_v32 }
 0x156   : > { %1393 = vmatmul.f32.gmra.mxu0 %v3299_v40  ;;  %v3303_v39 = vand.u32 4294901760, %v3299_v40 }
 0x158   : > { %1438 = vmatmul.f32.gmra.mxu1 %v3303_v39  ;;  %v1293_v33 = vsub.f32 %v3299_v40, %v3303_v39 }
 0x15a   : > { %v1294_v59 = vand.u32 4294901760, %v1293_v33 }
 0x15c   : > { %1295 = vmatmul.f32.gmra.mxu2 %v1294_v59  ;;  %1508 = vmatmul.f32.vlgmr.msrb.gmra.mxu3 %v3175_v60 }
 0x15d   : > { %1976 = vmatpush.msrb.mxu3 %v2972_v20 }
 0x15e   : > { %1549 = vmatmul.f32.vlgmr.msra.gmra.mxu0 %v3232_v14 }
 0x15f   : > { %1982 = vmatpush.msrb.mxu3 %v3021_v44  ;;  %2026 = vmatpush.msra.mxu0 %v2961_v49  ;;  %v1878_v49 = vand.u32 2147483647, %v3147_v57 }
 0x160   : > { %1614 = vmatmul.f32.vlgmr.msra.gmra.mxu1 %v3175_v60 }
 0x161   : > { %1988 = vmatpush.msrb.mxu3 %v3035_v15  ;;  %2029 = vmatpush.msra.mxu0 %v2987_v12  ;;  %v1882_v20 = vadd.f32 1e-10, %v1878_v49  ;;  %v1879_v12 = vand.u32 2147483647, %v3204_v23 }
 0x162   : > { %2070 = vmatpush.msra.mxu1 %v2955_v46 }
 0x163   : > { %1994 = vmatpush.msrb.mxu3 %v3045_v4  ;;  %2032 = vmatpush.msra.mxu0 %v3005_v27  ;;  %2407 = vlog2.f32 %v1882_v20 }
 0x164   : > { %1471 = vmatmul.f32.vlgmr.msrb.gmra.mxu2 %v3175_v60  ;;  %1512 = vmatmul.f32.gmra.mxu3 %v3228_v41 }
 0x165   : > { %1919 = vmatpush.msrb.mxu2 %v2955_v46  ;;  %2072 = vmatpush.msra.mxu1 %v2977_v18 }
 0x166   : > { %1557 = vmatmul.f32.gmra.mxu0 %v1278_v29 }
 0x167   : > { %1921 = vmatpush.msrb.mxu2 %v2977_v18  ;;  %2035 = vmatpush.msra.mxu0 %v3016_v43 }
 0x168   : > { %1618 = vmatmul.f32.gmra.mxu1 %v3228_v41 }
 0x169   : > { %1923 = vmatpush.msrb.mxu2 %v2989_v24  ;;  %2074 = vmatpush.msra.mxu1 %v2989_v24 }
 0x16b   : > { %1925 = vmatpush.msrb.mxu2 %v3007_v38  ;;  %2076 = vmatpush.msra.mxu1 %v3007_v38 }
 0x16c   : > { %1475 = vmatmul.f32.gmra.mxu2 %v3228_v41  ;;  %1516 = vmatmul.f32.gmra.mxu3 %v3273_v17 }
 0x16e   : > { %1565 = vmatmul.f32.gmra.mxu0 %v1286_v9 }
 0x170   : > { %1622 = vmatmul.f32.gmra.mxu1 %v3273_v17 }
 0x174   : > { %1479 = vmatmul.f32.gmra.mxu2 %v3273_v17  ;;  %1520 = vmatmul.f32.gmra.mxu3 %v3295_v32 }
 0x176   : > { %1573 = vmatmul.f32.gmra.mxu0 %v1294_v59 }
 0x178   : > { %1626 = vmatmul.f32.gmra.mxu1 %v3295_v32 }
 0x17c   : > { %1483 = vmatmul.f32.gmra.mxu2 %v3295_v32  ;;  %1698 = vmatmul.f32.vlgmr.msra.gmra.mxu3 %v3197_v25 }
 0x17d   : > { %2160 = vmatpush.msra.mxu3 %v2955_v46  ;;  %v1883_v46 = vadd.f32 1e-10, %v1879_v12 }
 0x17e   : > { %1749 = vmatmul.f32.vlgmr.msrb.gmra.mxu0 %v3175_v60 }
 0x17f   : > { %2162 = vmatpush.msra.mxu3 %v2977_v18  ;;  %v2408_v18 = vpop.eup %2407  ;;  %2409 = vlog2.f32 %v1883_v46 }
 0x180   : > { %1786 = vmatmul.f32.vlgmr.msrb.gmra.mxu1 %v3175_v60  ;;  %v1887_v27 = vmul.f32 0.6931472, %v2408_v18 }
 0x181   : > { %2164 = vmatpush.msra.mxu3 %v2989_v24  ;;  %v1880_v24 = vand.u32 2147483647, %v3251_v26 }
 0x183   : > { %2166 = vmatpush.msra.mxu3 %v3007_v38  ;;  %v3496_v38 = vld [vmem:[#allocation8_spill] sm:$0xff] }
 0x184   : > { %1656 = vmatmul.f32.vlgmr.msra.gmra.mxu2 %v3186_v0  ;;  %1704 = vmatmul.f32.gmra.mxu3 %v3248_v22 }
 0x185   : > { %2117 = vmatpush.msra.mxu2 %v2965_v19  ;;  %v1884_v19 = vadd.f32 1e-10, %v1880_v24  ;;  %v2410_v43 = vpop.eup %2409 }
 0x186   : > { %1753 = vmatmul.f32.gmra.mxu0 %v3228_v41  ;;  %v1889_v15 = vmul.f32 0.6931472, %v2410_v43 }
 0x187   : > { %2121 = vmatpush.msra.mxu2 %v2997_v31  ;;  %v1895_v31 = vsel %vm255_vm0, %v1887_v27, 0  ;;  %2411 = vlog2.f32 %v1884_v19 }
 0x188   : > { %1790 = vmatmul.f32.gmra.mxu1 %v3228_v41  ;;  %v1926_v44 = vand.u32 4294901760, %v1895_v31  ;;  %v1898_v60 = vsel %vm255_vm0, %v1889_v15, 0 }
 0x189   : > { %2125 = vmatpush.msra.mxu2 %v3013_v42  ;;  %v1881_v42 = vand.u32 2147483647, %v3288_v53  ;;  %v1934_v23 = vand.u32 4294901760, %v1898_v60 }
 0x18a   : > { %v1927_v57 = vsub.f32 %v1895_v31, %v1926_v44 }
 0x18b   : > { %2129 = vmatpush.msra.mxu2 %v3496_v38  ;;  %v1885_v4 = vadd.f32 1e-10, %v1881_v42  ;;  %v1935_v35 = vsub.f32 %v1898_v60, %v1934_v23 }
 0x18c   : > { %1661 = vmatmul.f32.gmra.mxu2 %v3238_v47  ;;  %1710 = vmatmul.f32.gmra.mxu3 %v3286_v8  ;;  %v1928_v25 = vand.u32 4294901760, %v1927_v57 }
 0x18d   : > { %v2412_v0 = vpop.eup %2411  ;;  %2413 = vlog2.f32 %v1885_v4  ;;  %v1936_v41 = vand.u32 4294901760, %v1935_v35 }
 0x18e   : > { %1757 = vmatmul.f32.gmra.mxu0 %v3273_v17  ;;  %v1891_v37 = vmul.f32 0.6931472, %v2412_v0  ;;  %v1929_v58 = vsub.f32 %v1927_v57, %v1928_v25 }
 0x18f   : > { %v1937_v14 = vsub.f32 %v1935_v35, %v1936_v41 }
 0x190   : > { %1794 = vmatmul.f32.gmra.mxu1 %v3273_v17  ;;  %v1901_v2 = vsel %vm255_vm0, %v1891_v37, 0  ;;  %v1930_v36 = vand.u32 4294901760, %v1929_v58 }
 0x191   : > { %v1942_v48 = vand.u32 4294901760, %v1901_v2  ;;  %v1938_v47 = vand.u32 4294901760, %v1937_v14 }
 0x193   : > { %v2414_v52 = vpop.eup %2413  ;;  %v1943_v50 = vsub.f32 %v1901_v2, %v1942_v48 }
 0x194   : > { %1666 = vmatmul.f32.gmra.mxu2 %v3281_v28  ;;  %1716 = vmatmul.f32.gmra.mxu3 %v3303_v39  ;;  %v1893_v45 = vmul.f32 0.6931472, %v2414_v52 }
 0x195   : > { %v1944_v51 = vand.u32 4294901760, %v1943_v50 }
 0x196   : > { %1761 = vmatmul.f32.gmra.mxu0 %v3295_v32  ;;  %v1904_v63 = vsel %vm255_vm0, %v1893_v45, 0 }
 0x197   : > { %v1950_v56 = vand.u32 4294901760, %v1904_v63  ;;  %v1945_v1 = vsub.f32 %v1943_v50, %v1944_v51 }
 0x198   : > { %1798 = vmatmul.f32.gmra.mxu1 %v3295_v32 }
 0x199   : > { %v1951_v11 = vsub.f32 %v1904_v63, %v1950_v56  ;;  %v1946_v22 = vand.u32 4294901760, %v1945_v1 }
 0x19b   : > { %v1952_v30 = vand.u32 4294901760, %v1951_v11 }
 0x19c   : > { %1671 = vmatmul.f32.gmra.mxu2 %v3299_v40  ;;  %1996 = vmatmul.f32.vlgmr.msrb.gmra.mxu3 %v1926_v44 }
 0x19d   : > { %v1953_v26 = vsub.f32 %v1951_v11, %v1952_v30 }
 0x19e   : > { %2038 = vmatmul.f32.vlgmr.msra.gmra.mxu0 %v1927_v57 }
 0x19f   : > { %v1954_v6 = vand.u32 4294901760, %v1953_v26 }
 0x1a0   : > { %2080 = vmatmul.f32.vlgmr.msra.gmra.mxu1 %v1928_v25 }
 0x1a4   : > { %1931 = vmatmul.f32.vlgmr.msrb.gmra.mxu2 %v1930_v36  ;;  %2000 = vmatmul.f32.gmra.mxu3 %v1934_v23 }
 0x1a6   : > { %2043 = vmatmul.f32.gmra.mxu0 %v1935_v35 }
 0x1a8   : > { %2086 = vmatmul.f32.gmra.mxu1 %v1936_v41 }
 0x1ac   : > { %1939 = vmatmul.f32.gmra.mxu2 %v1938_v47  ;;  %2004 = vmatmul.f32.gmra.mxu3 %v1942_v48 }
 0x1ae   : > { %2048 = vmatmul.f32.gmra.mxu0 %v1943_v50 }
 0x1b0   : > { %2092 = vmatmul.f32.gmra.mxu1 %v1944_v51 }
 0x1b4   : > { %1947 = vmatmul.f32.gmra.mxu2 %v1946_v22  ;;  %2008 = vmatmul.f32.gmra.mxu3 %v1950_v56 }
 0x1b6   : > { %2053 = vmatmul.f32.gmra.mxu0 %v1951_v11 }
 0x1b8   : > { %2098 = vmatmul.f32.gmra.mxu1 %v1952_v30 }
 0x1bb   : > { %v1379_v7 = vpop.f32.mrf.mxu0 }
 0x1bc   : > { %1955 = vmatmul.f32.gmra.mxu2 %v1954_v6  ;;  %2168 = vmatmul.f32.vlgmr.msra.gmra.mxu3 %v1926_v44 }
 0x1bd   : > { %v1421_v61 = vpop.f32.mrf.mxu1 }
 0x1bf   : > { %v1337_v54 = vpop.f32.mrf.mxu3 }
 0x1c3   : > { %v1384_v13 = vpop.f32.mrf.mxu0 }
 0x1c4   : > { %2131 = vmatmul.f32.vlgmr.msra.gmra.mxu2 %v1926_v44  ;;  %2172 = vmatmul.f32.gmra.mxu3 %v1934_v23 }
 0x1c5   : > { %v1427_v34 = vpop.f32.mrf.mxu1 }
 0x1c7   : > { %v1272_v16 = vpop.f32.mrf.mxu2  ;;  %v1341_v55 = vpop.f32.mrf.mxu3 }
 0x1c8   : > { %v1338_v10 = vadd.f32 %v1337_v54, %v1272_v16 }
 0x1ca   : > { %v1380_v17 = vadd.f32 %v1379_v7, %v1338_v10 }
 0x1cb   : > { %v1389_v62 = vpop.f32.mrf.mxu0 }
 0x1cc   : > { %2135 = vmatmul.f32.gmra.mxu2 %v1934_v23  ;;  %2176 = vmatmul.f32.gmra.mxu3 %v1942_v48  ;;  %v1422_v29 = vadd.f32 %v1421_v61, %v1380_v17 }
 0x1cd   : > { %v1433_v40 = vpop.f32.mrf.mxu1 }
 0x1cf   : > { %v1280_v5 = vpop.f32.mrf.mxu2  ;;  %v1345_v28 = vpop.f32.mrf.mxu3 }
 0x1d0   : > { %v1342_v3 = vadd.f32 %v1341_v55, %v1280_v5 }
 0x1d2   : > { %v1385_v8 = vadd.f32 %v1384_v13, %v1342_v3 }
 0x1d3   : > { %v1394_v20 = vpop.f32.mrf.mxu0 }
 0x1d4   : > { %2139 = vmatmul.f32.gmra.mxu2 %v1942_v48  ;;  %2180 = vmatmul.f32.gmra.mxu3 %v1950_v56  ;;  %v1428_v53 = vadd.f32 %v1427_v34, %v1385_v8 }
 0x1d5   : > { %v1439_v18 = vpop.f32.mrf.mxu1 }
 0x1d7   : > { %v1288_v21 = vpop.f32.mrf.mxu2  ;;  %v1349_v32 = vpop.f32.mrf.mxu3 }
 0x1d8   : > { %v1346_v9 = vadd.f32 %v1345_v28, %v1288_v21 }
 0x1da   : > { %v1390_v39 = vadd.f32 %v1389_v62, %v1346_v9 }
 0x1db   : > { %v1550_v31 = vpop.f32.mrf.mxu0 }
 0x1dc   : > { %2143 = vmatmul.f32.gmra.mxu2 %v1950_v56  ;;  %v1434_v33 = vadd.f32 %v1433_v40, %v1390_v39 }
 0x1dd   : > { %v1615_v42 = vpop.f32.mrf.mxu1 }
 0x1de   : > { %v1616_v11 = vadd.f32 %v1615_v42, %v1550_v31 }
 0x1df   : > { %v1296_v59 = vpop.f32.mrf.mxu2  ;;  %v1509_v49 = vpop.f32.mrf.mxu3 }
 0x1e0   : > { %v1350_v12 = vadd.f32 %v1349_v32, %v1296_v59 }
 0x1e2   : > { %v1395_v46 = vadd.f32 %v1394_v20, %v1350_v12 }
 0x1e3   : > { %v1558_v60 = vpop.f32.mrf.mxu0 }
 0x1e4   : > { %v1440_v24 = vadd.f32 %v1439_v18, %v1395_v46 }
 0x1e5   : > { %v1619_v23 = vpop.f32.mrf.mxu1 }
 0x1e6   : > { %v1620_v7 = vadd.f32 %v1619_v23, %v1558_v60 }
 0x1e7   : > { %v1472_v27 = vpop.f32.mrf.mxu2  ;;  %v1513_v38 = vpop.f32.mrf.mxu3 }
 0x1e8   : > { %v1473_v19 = vadd.f32 %v1472_v27, %v1422_v29 }
 0x1ea   : > { %v3369_v43 = vadd.f32 %v1509_v49, %v1473_v19 }
 0x1eb   : > { %v1566_v35 = vpop.f32.mrf.mxu0 }
 0x1ed   : > { %v1623_v41 = vpop.f32.mrf.mxu1 }
 0x1ee   : > { %v1624_v5 = vadd.f32 %v1623_v41, %v1566_v35 }
 0x1ef   : > { %v1476_v44 = vpop.f32.mrf.mxu2  ;;  %v1517_v15 = vpop.f32.mrf.mxu3 }
 0x1f0   : > { %v1477_v4 = vadd.f32 %v1476_v44, %v1428_v53 }
 0x1f2   : > { %v3371_v57 = vadd.f32 %v1513_v38, %v1477_v4 }
 0x1f3   : > { %v1574_v50 = vpop.f32.mrf.mxu0 }
 0x1f5   : > { %v1627_v63 = vpop.f32.mrf.mxu1 }
 0x1f6   : > { %v1628_v40 = vadd.f32 %v1627_v63, %v1574_v50 }
 0x1f7   : > { %v1480_v0 = vpop.f32.mrf.mxu2  ;;  %v1521_v25 = vpop.f32.mrf.mxu3 }
 0x1f8   : > { %v1481_v37 = vadd.f32 %v1480_v0, %v1434_v33 }
 0x1fa   : > { %v3373_v58 = vadd.f32 %v1517_v15, %v1481_v37 }
 0x1fb   : > { %v1750_v56 = vpop.f32.mrf.mxu0 }
 0x1fd   : > { %v1787_v1 = vpop.f32.mrf.mxu1 }
 0x1ff   : > { %v1484_v2 = vpop.f32.mrf.mxu2  ;;  %v1699_v52 = vpop.f32.mrf.mxu3 }
 0x200   : > { %v1485_v36 = vadd.f32 %v1484_v2, %v1440_v24 }
 0x202   : > { %v3375_v48 = vadd.f32 %v1521_v25, %v1485_v36 }
 0x203   : > { %v1754_v6 = vpop.f32.mrf.mxu0 }
 0x205   : > { %v1791_v55 = vpop.f32.mrf.mxu1 }
 0x207   : > { %v1657_v45 = vpop.f32.mrf.mxu2  ;;  %v1705_v14 = vpop.f32.mrf.mxu3 }
 0x208   : > { %v1658_v26 = vadd.f32 %v1657_v45, %v1616_v11 }
 0x20a   : > { %v1700_v54 = vadd.f32 %v1699_v52, %v1658_v26 }
 0x20b   : > { %v1758_v34 = vpop.f32.mrf.mxu0 }
 0x20c   : > { %v1751_v10 = vadd.f32 %v1750_v56, %v1700_v54 }
 0x20d   : > { %v1795_v21 = vpop.f32.mrf.mxu1 }
 0x20e   : > { %v1788_v13 = vadd.f32 %v1787_v1, %v1751_v10 }
 0x20f   : > { %v1662_v47 = vpop.f32.mrf.mxu2  ;;  %v1711_v51 = vpop.f32.mrf.mxu3 }
 0x210   : > { %v1663_v17 = vadd.f32 %v1662_v47, %v1620_v7  ;;  %v2311_v8 = vmul.f32 -1.442695, %v1788_v13 }
 0x212   : > { %v1706_v29 = vadd.f32 %v1705_v14, %v1663_v17  ;;  %2415 = vpow2.f32 %v2311_v8 }
 0x213   : > { %v1762_v49 = vpop.f32.mrf.mxu0 }
 0x214   : > { %v1755_v53 = vadd.f32 %v1754_v6, %v1706_v29 }
 0x215   : > { %v1799_v18 = vpop.f32.mrf.mxu1 }
 0x216   : > { %v1792_v32 = vadd.f32 %v1791_v55, %v1755_v53 }
 0x217   : > { %v1667_v22 = vpop.f32.mrf.mxu2  ;;  %v1717_v30 = vpop.f32.mrf.mxu3 }
 0x218   : > { %v1668_v62 = vadd.f32 %v1667_v22, %v1624_v5  ;;  %v2312_v59 = vmul.f32 -1.442695, %v1792_v32  ;;  %v2416_v46 = vpop.eup %2415 }
 0x219   : > { %v3377_v38 = vadd.f32 1.0, %v2416_v46 }
 0x21a   : > { %v1712_v9 = vadd.f32 %v1711_v51, %v1668_v62  ;;  %2417 = vpow2.f32 %v2312_v59 }
 0x21b   : > { %2419 = vrcp.f32 %v3377_v38  ;;  %v2039_v4 = vpop.f32.mrf.mxu0  ;;  %vm1823_vm2 = vweird.f32 %v3377_v38  ;;  %v1827_v53 = vand.u32 2147483647, %v3377_v38 }
 0x21c   : > { %v1759_v20 = vadd.f32 %v1758_v34, %v1712_v9 }
 0x21d   : > { %v2081_v23 = vpop.f32.mrf.mxu1  ;;  %vm1828_vm4 = vcmp.eq.f32.partialorder %v1827_v53, 8.507059e+37 }
 0x21e   : > { %v1796_v24 = vadd.f32 %v1795_v21, %v1759_v20 }
 0x21f   : > { %v1672_v61 = vpop.f32.mrf.mxu2  ;;  %v1997_v16 = vpop.f32.mrf.mxu3 }
 0x220   : > { %v1673_v12 = vadd.f32 %v1672_v61, %v1628_v40  ;;  %v2313_v31 = vmul.f32 -1.442695, %v1796_v24  ;;  %v2418_v15 = vpop.eup %2417 }
 0x221   : > { %v3382_v0 = vadd.f32 1.0, %v2418_v15  ;;  %v2420_v35 = vpop.eup %2419 }
 0x222   : > { %v1718_v27 = vadd.f32 %v1717_v30, %v1673_v12  ;;  %2421 = vpow2.f32 %v2313_v31  ;;  %v1819_v41 = vmul.f32 %v2420_v35, %v3377_v38  ;;  %vm1824_vm0 = vweird.f32 %v2420_v35 }
 0x223   : > { %2423 = vrcp.f32 %v3382_v0  ;;  %v2044_v14 = vpop.f32.mrf.mxu0  ;;  %vm1825_vm3 = vmor %vm1823_vm2, %vm1824_vm0  ;;  %v1844_v15 = vand.u32 2147483648, %v3382_v0  ;;  %vm1838_vm6 = vweird.f32 %v3382_v0 }
 0x224   : > { %v1763_v42 = vadd.f32 %v1762_v49, %v1718_v27  ;;  %v1820_v51 = vsub.f32 1.0, %v1819_v41 }
 0x225   : > { %v2087_v22 = vpop.f32.mrf.mxu1 }
 0x226   : > { %v1800_v60 = vadd.f32 %v1799_v18, %v1763_v42  ;;  %v1821_v7 = vmul.f32 %v2420_v35, %v1820_v51 }
 0x227   : > { %v1932_v28 = vpop.f32.mrf.mxu2  ;;  %v2001_v3 = vpop.f32.mrf.mxu3 }
 0x228   : > { %v1998_v25 = vadd.f32 %v1997_v16, %v1932_v28  ;;  %v2314_v2 = vmul.f32 -1.442695, %v1800_v60  ;;  %v2422_v36 = vpop.eup %2421  ;;  %v1822_v34 = vadd.f32 %v2420_v35, %v1821_v7 }
 0x229   : > { %v3386_v50 = vadd.f32 1.0, %v2422_v36  ;;  %v3388_v1 = vpop.eup %2423  ;;  %v1845_v36 = vor.u32 1.1754944e-38, %v1844_v15 }
 0x22a   : > { %v2040_v52 = vadd.f32 %v2039_v4, %v1998_v25  ;;  %2425 = vpow2.f32 %v2314_v2  ;;  %v1834_v54 = vmul.f32 %v3388_v1, %v3382_v0  ;;  %v1826_v40 = vsel %vm1825_vm3, %v2420_v35, %v1822_v34 }
 0x22b   : > { %2427 = vrcp.f32 %v3386_v50  ;;  %v2049_v29 = vpop.f32.mrf.mxu0  ;;  %vm1839_vm5 = vweird.f32 %v3388_v1  ;;  %vm1853_vm10 = vweird.f32 %v3386_v50 }
 0x22c   : > { %v2082_v47 = vadd.f32 %v2081_v23, %v2040_v52  ;;  %v1835_v13 = vsub.f32 1.0, %v1834_v54  ;;  %vm1840_vm7 = vmor %vm1838_vm6, %vm1839_vm5 }
 0x22d   : > { %v2093_v9 = vpop.f32.mrf.mxu1 }
 0x22f   : > { %v1940_v39 = vpop.f32.mrf.mxu2  ;;  %v2005_v33 = vpop.f32.mrf.mxu3 }
 0x230   : > { %v2002_v63 = vadd.f32 %v2001_v3, %v1940_v39  ;;  %v2426_v6 = vpop.eup %2425  ;;  %v1829_v3 = vand.u32 2147483648, %v3377_v38  ;;  %v1836_v39 = vmul.f32 %v3388_v1, %v1835_v13 }
 0x231   : > { %v3393_v55 = vadd.f32 1.0, %v2426_v6  ;;  %v3395_v28 = vpop.eup %2427 }
 0x232   : > { %v2045_v30 = vadd.f32 %v2044_v14, %v2002_v63  ;;  %v1849_v32 = vmul.f32 %v3395_v28, %v3386_v50  ;;  %v1830_v59 = vor.u32 1.1754944e-38, %v1829_v3  ;;  %v1837_v38 = vadd.f32 %v3388_v1, %v1836_v39 }
 0x233   : > { %v2054_v60 = vpop.f32.mrf.mxu0  ;;  %vm1854_vm9 = vweird.f32 %v3395_v28  ;;  %v1874_v34 = vand.u32 2147483648, %v3393_v55  ;;  %vm1868_vm14 = vweird.f32 %v3393_v55 }
 0x234   : > { %v2088_v17 = vadd.f32 %v2087_v22, %v2045_v30  ;;  %v1831_v46 = vsel %vm1828_vm4, %v1830_v59, %v1826_v40  ;;  %v1850_v24 = vsub.f32 1.0, %v1849_v32  ;;  %v1841_v35 = vsel %vm1840_vm7, %v3388_v1, %v1837_v38  ;;  %vm1855_vm11 = vmor %vm1853_vm10, %vm1854_vm9 }
 0x236   : > { %v1851_v2 = vmul.f32 %v3395_v28, %v1850_v24 }
 0x237   : > { %v1948_v19 = vpop.f32.mrf.mxu2  ;;  %v3379_v44 = vpop.f32.mrf.mxu3 }
 0x238   : > { %v2006_v10 = vadd.f32 %v2005_v33, %v1948_v19 }
 0x23a   : > { %v2050_v62 = vadd.f32 %v2049_v29, %v2006_v10 }
 0x23c   : > { %v2094_v18 = vadd.f32 %v2093_v9, %v2050_v62 }
 0x23f   : > { %v1956_v37 = vpop.f32.mrf.mxu2  ;;  %v2169_v45 = vpop.f32.mrf.mxu3 }
 0x240   : > { %v2010_v12 = vadd.f32 %v3379_v44, %v1956_v37  ;;  %v1842_v44 = vand.u32 2147483647, %v3382_v0 }
 0x242   : > { %v2055_v25 = vadd.f32 %v2054_v60, %v2010_v12  ;;  %vm1843_vm8 = vcmp.eq.f32.partialorder %v1842_v44, 8.507059e+37 }
 0x243   : > { %v1846_v14 = vsel %vm1843_vm8, %v1845_v36, %v1841_v35 }
 0x247   : > { %v2132_v56 = vpop.f32.mrf.mxu2  ;;  %v2173_v16 = vpop.f32.mrf.mxu3 }
 0x248   : > { %v2133_v11 = vadd.f32 %v2132_v56, %v2082_v47  ;;  %v1852_v56 = vadd.f32 %v3395_v28, %v1851_v2 }
 0x24a   : > { %v2170_v26 = vadd.f32 %v2169_v45, %v2133_v11  ;;  %v2099_v45 = vpop.f32.mrf.mxu1  ;;  %v1859_v11 = vand.u32 2147483648, %v3386_v50  ;;  %v1856_v54 = vsel %vm1855_vm11, %v3395_v28, %v1852_v56  ;;  %v1872_v28 = vand.u32 2147483647, %v3393_v55 }
 0x24b   : > { %v2100_v63 = vadd.f32 %v2099_v45, %v2055_v25 }
 0x24c   : > { %v2184_v61 = vmul.f32 1.442695, %v2170_v26  ;;  %v1857_v26 = vand.u32 2147483647, %v3386_v50  ;;  %vm1873_vm1 = vcmp.eq.f32.partialorder %v1872_v28, 8.507059e+37 }
 0x24e   : > { %2429 = vpow2.f32 %v2184_v61  ;;  %vm1858_vm12 = vcmp.eq.f32.partialorder %v1857_v26, 8.507059e+37 }
 0x24f   : > { %v2136_v5 = vpop.f32.mrf.mxu2  ;;  %2431 = vrcp.f32 %v3393_v55  ;;  %v2177_v19 = vpop.f32.mrf.mxu3 }
 0x250   : > { %v2137_v8 = vadd.f32 %v2136_v5, %v2088_v17 }
 0x252   : > { %v2174_v21 = vadd.f32 %v2173_v16, %v2137_v8  ;;  %v1860_v16 = vor.u32 1.1754944e-38, %v1859_v11  ;;  %v1875_v8 = vor.u32 1.1754944e-38, %v1874_v34 }
 0x254   : > { %v2430_v33 = vpop.eup %2429  ;;  %v2186_v49 = vmul.f32 1.442695, %v2174_v21  ;;  %v1861_v13 = vsel %vm1858_vm12, %v1860_v16, %v1856_v54 }
 0x255   : > { %v2192_v20 = vsub.f32 %v3369_v43, %v2430_v33  ;;  %v3411_v42 = vpop.eup %2431 }
 0x256   : > { %2433 = vpow2.f32 %v2186_v49  ;;  %v1864_v37 = vmul.f32 %v3411_v42, %v3393_v55  ;;  %vm1869_vm13 = vweird.f32 %v3411_v42 }
 0x257   : > { %v2196_v27 = vmul.f32 %v2192_v20, %v1831_v46  ;;  %v2140_v31 = vpop.f32.mrf.mxu2  ;;  %vm1870_vm15 = vmor %vm1868_vm14, %vm1869_vm13 }
 0x258   : > { %v2141_v4 = vadd.f32 %v2140_v31, %v2094_v18  ;;  %v1865_v47 = vsub.f32 1.0, %v1864_v37 }
 0x259   : > { %v2200_v43 = vadd.f32 %v2430_v33, %v2196_v27 }
 0x25a   : > { %v2178_v23 = vadd.f32 %v2177_v19, %v2141_v4  ;;  %v1866_v7 = vmul.f32 %v3411_v42, %v1865_v47 }
 0x25b   : > { %2204 = vst [vmem:[%s3418_s11] sm:$0xff] %v2200_v43 }
 0x25c   : > { %v2434_v52 = vpop.eup %2433  ;;  %v2188_v41 = vmul.f32 1.442695, %v2178_v23  ;;  %v1867_v50 = vadd.f32 %v3411_v42, %v1866_v7 }
 0x25d   : > { %v2193_v0 = vsub.f32 %v3371_v57, %v2434_v52  ;;  %v2181_v57 = vpop.f32.mrf.mxu3 }
 0x25e   : > { %2435 = vpow2.f32 %v2188_v41 }
 0x25f   : > { %v2197_v51 = vmul.f32 %v2193_v0, %v1846_v14  ;;  %v2144_v1 = vpop.f32.mrf.mxu2 }
 0x260   : > { %v2145_v22 = vadd.f32 %v2144_v1, %v2100_v63 }
 0x261   : > { %v2201_v30 = vadd.f32 %v2434_v52, %v2197_v51 }
 0x262   : > { %v2182_v6 = vadd.f32 %v2181_v57, %v2145_v22 }
 0x263   : > { %2205 = vst [vmem:[%s3418_s11 + $0x8] sm:$0xff] %v2201_v30 }
 0x264   : > { %v2436_v61 = vpop.eup %2435  ;;  %v2190_v10 = vmul.f32 1.442695, %v2182_v6 }
 0x265   : > { %v2194_v17 = vsub.f32 %v3373_v58, %v2436_v61  ;;  %v1871_v58 = vsel %vm1870_vm15, %v3411_v42, %v1867_v50 }
 0x266   : > { %2437 = vpow2.f32 %v2190_v10  ;;  %v1876_v62 = vsel %vm1873_vm1, %v1875_v8, %v1871_v58 }
 0x267   : > { %v2198_v29 = vmul.f32 %v2194_v17, %v1861_v13 }
 0x269   : > { %v2202_v5 = vadd.f32 %v2436_v61, %v2198_v29 }
 0x26b   : > { %2206 = vst [vmem:[%s3418_s11 + $0x10] sm:$0xff] %v2202_v5 }
 0x26c   : > { %v2438_v3 = vpop.eup %2437 }
 0x26d   : > { %v2195_v53 = vsub.f32 %v3375_v48, %v2438_v3 }
 0x26f   : > { %v2199_v55 = vmul.f32 %v2195_v53, %v1876_v62 }
 0x271   : > { %v2203_v21 = vadd.f32 %v2438_v3, %v2199_v55 }
 0x273   : > { %2207 = vst [vmem:[%s3418_s11 + $0x18] sm:$0xff] %v2203_v21 }
 0x274   : > { %2496 = shalt.err (!%p2493_p8)
}
 0x275   : > { %s2540_s9 = smov 128   ;;  %s2541_s10 = smov 8  }
 0x276   : > { %2325 = dma.vmem_to_hbm [thread:$0]  (%p2610_p5), %s2222_s22, 512, %s2224_s17, %s2209_s16, %s2540_s9, %s2540_s9, %s2541_s10  }
 0x277 PF: > { %p2337_p9 = scmp.ge.s32.totalorder %s2535_s21, 2  ;;  %s2238_s11 = sand.u32 1, %s2523_s18  }
 0x278   : > { %s2239_s12 = scalar_lea.sflag [#allocation4], %s2238_s11 }
 0x279   : > { %p2332_p10 = pnand %p2337_p9, %p2614_p6 }
 0x27b   : > { %p2333_p11 = pneg %p2332_p10 }
 0x27d   : > { %2518 = dma.done.wait (%p2333_p11), %s2239_s12, 512  }
 0x27e   : > { %2520 = vsyncadd (%p2333_p11), %s2239_s12, 4294966784  ;;  %p16_p12 = scmp.ge.s32.totalorder %s2597_s24, 4   ;;  %s3497_s18 = smov %s2527_s19 }
 0x27f   : > { %s3498_s19 = smov %s2531_s20  ;;  %s3499_s20 = smov %s2608_s27 }
 0x280   : > { %s3500_s21 = smov %s2597_s24  ;;  %18 = sbr.rel (!%p16_p12) target bundleno = 4 (0x4), region = 80 }
 0x285   :  { %2245 = vsyncpa [#allocation3], 1 }
 0x286   :  { %2247 = vsyncpa [#allocation3 + $0x1], 1 }
 0x287   :  { %2248 = vsyncpa [#allocation4], 1 }
 0x288   :  { %2250 = vsyncpa [#allocation4 + $0x1], 1 }

</bundles_post_ra>
